<compile_context>
chip_gen: v6e
topology: v6e:2x2x1
jax: 0.10.0
libtpu: 0.0.40
codegen_flags: <defaults>
</compile_context>

<pallas_src>
import numpy as np
import jax
import jax.numpy as jnp
from jax import lax
from jax.experimental import pallas as pl
from jax.experimental.pallas import tpu as pltpu

BN_EPS = 1e-5


# ----------------------------------------------------------------------------
# Parameter construction (deterministic, mirrors CSNet_MST.__init__ shapes)
# ----------------------------------------------------------------------------
def make_params(key, n_chans, n_class, spatial_expansion, spatial_merge,
                filters, temporal_expansion):
    base_size = 2 if n_chans <= 64 else 3 if n_chans <= 128 else 4
    feature_dim = [(spatial_expansion // (n_chans - base_size ** i + 1), base_size ** i)
                   for i in range(2, 6) if base_size ** i < n_chans]
    feature_dim.append((spatial_expansion, n_chans))

    keys = iter(jax.random.split(key, 64))

    def nrm(shape, scale=0.1):
        return scale * jax.random.normal(next(keys), shape, jnp.float32)

    spatial = [dict(w=nrm((F, 1, k, 1)), b=nrm((F,))) for (F, k) in feature_dim]
    R = sum(F * (n_chans - k + 1) for F, k in feature_dim)

    merge = dict(w=nrm((spatial_merge, 1, R, 1)), b=nrm((spatial_merge,)),
                 gamma=1.0 + nrm((spatial_merge,)), beta=nrm((spatial_merge,)),
                 mean=nrm((spatial_merge,)),
                 var=0.5 + jax.random.uniform(next(keys), (spatial_merge,), jnp.float32))

    Dg = temporal_expansion * spatial_merge
    temporal = [dict(w=nrm((Dg, 1, 1, K)), b=nrm((Dg,)),
                     gamma=1.0 + nrm((Dg,)), beta=nrm((Dg,)),
                     mean=nrm((Dg,)),
                     var=0.5 + jax.random.uniform(next(keys), (Dg,), jnp.float32))
                for K in filters]

    Dtot = len(filters) * Dg
    fc_in = (Dtot + 1) * Dtot // 2
    fc = dict(w=nrm((n_class, fc_in), 0.05), b=nrm((n_class,), 0.05))

    return dict(feature_dim=feature_dim, spatial=spatial, merge=merge,
                temporal=temporal, fc=fc, R=R, Dg=Dg, Dtot=Dtot)


# ----------------------------------------------------------------------------
# Offline (host-side numpy) folding: convs / BN / grouped-conv replication /
# batch tiling / fc re-layout into dense operands for the kernel.
# ----------------------------------------------------------------------------
def fold_params(p, n_chans, n_class, spatial_merge, filters, temporal_expansion,
                batch_size):
    feature_dim, R, Dg, D = p["feature_dim"], p["R"], p["Dg"], p["Dtot"]
    B = batch_size

    # All spatial (k,1) convs -> one (R, C) matrix + bias.
    S = np.zeros((R, n_chans), np.float32)
    s_bias = np.zeros((R,), np.float32)
    off = 0
    for sp, (F, k) in zip(p["spatial"], feature_dim):
        Rb = n_chans - k + 1
        W2 = np.asarray(sp["w"])[:, 0, :, 0]
        bb = np.asarray(sp["b"])
        for f in range(F):
            for r in range(Rb):
                S[off + f * Rb + r, r:r + k] = W2[f]
                s_bias[off + f * Rb + r] = bb[f]
        off += F * Rb

    # Merge conv + BN folded, replicated to the grouped-conv row layout, then
    # composed with the spatial matrix -> single (D, C) channel-mix matrix.
    m = p["merge"]
    Mraw = np.asarray(m["w"])[:, 0, :, 0]                       # (sm, R)
    sc = np.asarray(m["gamma"]) / np.sqrt(np.asarray(m["var"]) + BN_EPS)
    Mf = Mraw * sc[:, None]
    mb_base = sc * (Mraw @ s_bias + np.asarray(m["b"]) - np.asarray(m["mean"])) + np.asarray(m["beta"])

    E = np.zeros((D, spatial_merge), np.float32)
    for fi in range(len(filters)):
        for o in range(Dg):
            E[fi * Dg + o, o // temporal_expansion] = 1.0
    W_sc = (E @ Mf @ S).astype(np.float32)                      # (D, C)
    mb = (E @ mb_base).astype(np.float32)[:, None]              # (D, 1)

    # Depthwise temporal conv weights, BN folded, centre-aligned in Kmax.
    Kmax = max(filters)
    wt = np.zeros((D, Kmax), np.float32)
    tb = np.zeros((D, 1), np.float32)
    for fi, K in enumerate(filters):
        t = p["temporal"][fi]
        w2 = np.asarray(t["w"])[:, 0, 0, :]
        sct = np.asarray(t["gamma"]) / np.sqrt(np.asarray(t["var"]) + BN_EPS)
        lo = Kmax // 2 - K // 2                                  # parity-correct centring
        wt[fi * Dg:(fi + 1) * Dg, lo:lo + K] = w2 * sct[:, None]
        tb[fi * Dg:(fi + 1) * Dg, 0] = sct * (np.asarray(t["b"]) - np.asarray(t["mean"])) + np.asarray(t["beta"])

    # fc weights re-laid-out to act on Lmod (Cholesky factor with log-diag):
    # Wcomb[n,i,j] = WD[n,i] on the diagonal, strict-lower WL below, 0 above;
    # then Wcomb_r[j, n*D+i] = Wcomb[n,i,j]  (so the kernel does Lmod @ Wcomb_r).
    Wfc = np.asarray(p["fc"]["w"]).astype(np.float32)
    bfc = np.asarray(p["fc"]["b"]).astype(np.float32)
    ri, ci = np.tril_indices(D, -1)                              # row-major strict-lower
    Wcomb = np.zeros((n_class, D, D), np.float32)
    Wcomb[:, np.arange(D), np.arange(D)] = Wfc[:, :D]
    Wcomb[:, ri, ci] = Wfc[:, D:]
    Wcomb_r = np.ascontiguousarray(np.transpose(Wcomb, (2, 0, 1)).reshape(D, n_class * D))

    # Batch-tiled / block-diagonal operands (all offline, host-side).
    W_bd = np.kron(np.eye(B, dtype=np.float32), W_sc)            # (B*D, B*C)
    mb_t = np.tile(mb, (B, 1))                                   # (B*D, 1)
    wt_t = np.tile(wt, (B, 1))                                   # (B*D, Kmax)
    tb_t = np.tile(tb, (B, 1))                                   # (B*D, 1)
    block_ones = np.kron(np.eye(B, dtype=np.float32),
                         np.ones((D, D), np.float32))            # (B*D, B*D)
    col_bsum = np.kron(np.eye(n_class, dtype=np.float32),
                       np.ones((D, 1), np.float32))              # (n_class*D, n_class)
    row_bsum = np.kron(np.eye(B, dtype=np.float32),
                       np.ones((1, D), np.float32))              # (B, B*D)
    fb_row = bfc[None, :].astype(np.float32)                     # (1, n_class)

    return (jnp.asarray(W_bd), jnp.asarray(mb_t), jnp.asarray(wt_t), jnp.asarray(tb_t),
            jnp.asarray(block_ones), jnp.asarray(Wcomb_r), jnp.asarray(col_bsum),
            jnp.asarray(row_bsum), jnp.asarray(fb_row), Kmax, D)


# ----------------------------------------------------------------------------
# Pallas kernel
# ----------------------------------------------------------------------------
def csnet_mst_pallas(x, folded, n_class):
    (W_bd, mb_t, wt_t, tb_t, block_ones, Wcomb_r, col_bsum, row_bsum, fb_row,
     Kmax, D) = folded
    B, C, T = x.shape
    BD, BC, nD = B * D, B * C, n_class * D
    PAD = Kmax // 2
    inv_Tm1 = 1.0 / (T - 1)

    # Contiguous leading-dim merge: metadata-only reshape (bitcast), no copy.
    x_flat = x.reshape(BC, T)

    def kernel(x_ref, w_ref, mb_ref, wt_ref, tb_ref, bo_ref, wc_ref, cb_ref,
               rb_ref, fb_ref, out_ref):
        # 1) folded spatial + merge + BN channel mix for the whole batch:
        #    one block-diagonal MXU matmul -> batch-stacked (B*D, T).
        xs = jnp.dot(w_ref[...], x_ref[...],
                     preferred_element_type=jnp.float32) + mb_ref[...]

        # 2) batched depthwise temporal conv: lane rolls (XLU) + static edge
        #    masks emulate per-sample zero 'same' padding.  Batch lives on
        #    sublanes, so rolls cannot bleed across batches.
        t_idx = lax.broadcasted_iota(jnp.int32, (1, T), 1)
        xt = wt_ref[:, PAD:PAD + 1] * xs + tb_ref[...]                         # centre tap
        for s in range(Kmax):
            if s == PAD:
                continue
            off = s - PAD                                    # source sample offset
            shifted = pltpu.roll(xs, (-off) % T, axis=1)     # [:, t] <- xs[:, t+off]
            valid = (t_idx >= -off) if off < 0 else (t_idx < T - off)
            xt = xt + wt_ref[:, s:s + 1] * jnp.where(valid, shifted, 0.0)

        # 3) per-batch Gram matrices, stacked along sublanes -> (B*D, D).
        grams = []
        for b in range(B):
            xb = xt[b * D:(b + 1) * D, :]                                      # (D, T)
            grams.append(lax.dot_general(xb, xb, (((1,), (1,)), ((), ())),
                                         preferred_element_type=jnp.float32))
        A = (grams[0] if B == 1 else jnp.concatenate(grams, axis=0)) * inv_Tm1

        # 4) BATCHED unrolled Cholesky: all B factorizations advance together.
        #    Per-block pivot/row broadcast = masked select + block-ones matmul
        #    on the otherwise-idle MXU.  Masks hoisted; raw pivots accumulated.
        rowmod = lax.broadcasted_iota(jnp.int32, (BD, 1), 0) % D
        colD = lax.broadcasted_iota(jnp.int32, (1, D), 1)
        bo = bo_ref[...]                                                       # (B*D, B*D)
        L = jnp.zeros((BD, D), jnp.float32)
        pivacc = jnp.zeros((BD, 1), jnp.float32)
        for j in range(D):                                   # D static -> unroll
            rowsel = jnp.where(rowmod == j, A, 0.0)                            # keep row j per block
            rowX = jnp.dot(bo, rowsel, preferred_element_type=jnp.float32)     # row j bcast down block
            piv = rowX[:, j:j + 1]                                             # (B*D, 1) pivots
            inv = lax.rsqrt(piv)
            pivacc = pivacc + jnp.where(rowmod == j, piv, 0.0)                 # raw pivot, log deferred
            lcol = jnp.where(rowmod >= j, A[:, j:j + 1] * inv, 0.0)            # L[:, j] per block
            L = jnp.where(colD == j, lcol, L)
            if j < D - 1:
                lrowX = jnp.where(colD >= j, rowX * inv, 0.0)                  # L[j, :] bcast down block
                A = A - lcol * lrowX                         # batched rank-1 update

        # 5) ONE log pass over all collected pivots; splice into the diagonal.
        logdiag = 0.5 * jnp.log(pivacc)                                        # (B*D, 1)
        Lmod = jnp.where(colD == rowmod, logdiag, L)                           # (B*D, D)

        # 6) fc, batched: tangent-space contraction as matmul + block-trace
        #    extraction + block-sum matmuls -> (B, n_class) directly.
        P = jnp.dot(Lmod, wc_ref[...], preferred_element_type=jnp.float32)     # (B*D, n_class*D)
        colmodP = lax.broadcasted_iota(jnp.int32, (1, nD), 1) % D
        masked = jnp.where(rowmod == colmodP, P, 0.0)
        tmp = jnp.dot(masked, cb_ref[...], preferred_element_type=jnp.float32) # (B*D, n_class)
        out_ref[...] = (jnp.dot(rb_ref[...], tmp,
                                preferred_element_type=jnp.float32)
                        + fb_ref[...])                                         # (B, n_class)

    out = pl.pallas_call(
        kernel,
        out_shape=jax.ShapeDtypeStruct((B, n_class), jnp.float32),
        grid_spec=pltpu.PrefetchScalarGridSpec(
            num_scalar_prefetch=0,
            grid=(1,),                      # single step: latency-bound, tiny footprint
            in_specs=[
                pl.BlockSpec((BC, T), lambda i: (0, 0)),
                pl.BlockSpec((BD, BC), lambda i: (0, 0)),
                pl.BlockSpec((BD, 1), lambda i: (0, 0)),
                pl.BlockSpec((BD, Kmax), lambda i: (0, 0)),
                pl.BlockSpec((BD, 1), lambda i: (0, 0)),
                pl.BlockSpec((BD, BD), lambda i: (0, 0)),
                pl.BlockSpec((D, nD), lambda i: (0, 0)),
                pl.BlockSpec((nD, n_class), lambda i: (0, 0)),
                pl.BlockSpec((B, BD), lambda i: (0, 0)),
                pl.BlockSpec((1, n_class), lambda i: (0, 0)),
            ],
            out_specs=pl.BlockSpec((B, n_class), lambda i: (0, 0)),
        ),
        compiler_params=pltpu.CompilerParams(dimension_semantics=("arbitrary",)),
    )(x_flat, W_bd, mb_t, wt_t, tb_t, block_ones, Wcomb_r, col_bsum, row_bsum, fb_row)
    return out                                                                 # (B, n_class)


# ----------------------------------------------------------------------------
# Pure-JAX reference (mirrors the PyTorch forward, BN in eval mode)
# ----------------------------------------------------------------------------
def reference_forward(x, p, n_chans, n_class, spatial_merge, filters, temporal_expansion):
    B, C, T = x.shape
    HI = lax.Precision.HIGHEST
    x4 = x[:, None, :, :]
    feats = []
    for sp, (F, k) in zip(p["spatial"], p["feature_dim"]):
        y = lax.conv_general_dilated(x4, sp["w"], (1, 1), "VALID",
                                     dimension_numbers=("NCHW", "OIHW", "NCHW"),
                                     precision=HI)
        feats.append((y + sp["b"][None, :, None, None]).reshape(B, -1, T))
    Xs = jnp.concatenate(feats, axis=1)[:, None, :, :]
    m = p["merge"]
    y = lax.conv_general_dilated(Xs, m["w"], (1, 1), "VALID",
                                 dimension_numbers=("NCHW", "OIHW", "NCHW"), precision=HI)
    y = y + m["b"][None, :, None, None]
    y = ((y - m["mean"][None, :, None, None]) / jnp.sqrt(m["var"] + BN_EPS)[None, :, None, None]
         * m["gamma"][None, :, None, None] + m["beta"][None, :, None, None])
    xts = []
    for t, K in zip(p["temporal"], filters):
        z = lax.conv_general_dilated(y, t["w"], (1, 1), ((0, 0), (K // 2, K // 2)),
                                     dimension_numbers=("NCHW", "OIHW", "NCHW"),
                                     feature_group_count=spatial_merge, precision=HI)
        z = z + t["b"][None, :, None, None]
        z = ((z - t["mean"][None, :, None, None]) / jnp.sqrt(t["var"] + BN_EPS)[None, :, None, None]
             * t["gamma"][None, :, None, None] + t["beta"][None, :, None, None])
        xts.append(z)
    Xt = jnp.stack(xts, axis=1).reshape(B, -1, T)
    Xb = jnp.einsum("bdt,bet->bde", Xt, Xt, precision=HI) / (T - 1)
    L = jnp.linalg.cholesky(Xb)
    D = p["Dtot"]
    logd = jnp.log(jnp.diagonal(L, axis1=1, axis2=2))
    ri, ci = np.tril_indices(D, -1)
    tang = jnp.concatenate([logd, L[:, ri, ci]], axis=1)
    return tang @ p["fc"]["w"].T + p["fc"]["b"]


if __name__ == "__main__":
    n_chans, n_class = 16, 4
    spatial_expansion, spatial_merge = 48, 8
    filters = [7]
    temporal_expansion = 2
    B, T = 2, 128

    key = jax.random.PRNGKey(0)
    kp, kx = jax.random.split(key)
    params = make_params(kp, n_chans, n_class, spatial_expansion, spatial_merge,
                         filters, temporal_expansion)
    x = jax.random.normal(kx, (B, n_chans, T), jnp.float32)

    folded = fold_params(params, n_chans, n_class, spatial_merge, filters,
                         temporal_expansion, B)
    out = jax.block_until_ready(csnet_mst_pallas(x, folded, n_class))

    ref = jax.block_until_ready(
        reference_forward(x, params, n_chans, n_class, spatial_merge, filters, temporal_expansion))

    assert out.shape == (B, n_class)
    assert bool(jnp.all(jnp.isfinite(out)))
    assert bool(jnp.allclose(out, ref, rtol=5e-2, atol=5e-2))
    print("KERNEL_OK")
</pallas_src>

<mosaic_0001>
module attributes {stable_mosaic.version = 11 : i64} {
  func.func @kernel(%arg0: i32, %arg1: memref<32x128xf32, #tpu.memory_space<vmem>>, %arg2: memref<32x32xf32, #tpu.memory_space<vmem>>, %arg3: memref<32x1xf32, #tpu.memory_space<vmem>>, %arg4: memref<32x7xf32, #tpu.memory_space<vmem>>, %arg5: memref<32x1xf32, #tpu.memory_space<vmem>>, %arg6: memref<32x32xf32, #tpu.memory_space<vmem>>, %arg7: memref<16x64xf32, #tpu.memory_space<vmem>>, %arg8: memref<64x4xf32, #tpu.memory_space<vmem>>, %arg9: memref<2x32xf32, #tpu.memory_space<vmem>>, %arg10: memref<1x4xf32, #tpu.memory_space<vmem>>, %arg11: memref<2x4xf32, #tpu.memory_space<vmem>>) attributes {dimension_semantics = [#tpu.dimension_semantics<arbitrary>], iteration_bounds = array<i64: 1>, scalar_prefetch = 0 : i64, scratch_operands = 0 : i64, tpu.core_type = #tpu.core_type<tc>, window_params = [{pipeline_mode = #tpu.pipeline_mode<synchronous>, transform_indices = @transform_0, window_bounds = array<i64: 32, 128>}, {pipeline_mode = #tpu.pipeline_mode<synchronous>, transform_indices = @transform_1, window_bounds = array<i64: 32, 32>}, {pipeline_mode = #tpu.pipeline_mode<synchronous>, transform_indices = @transform_2, window_bounds = array<i64: 32, 1>}, {pipeline_mode = #tpu.pipeline_mode<synchronous>, transform_indices = @transform_3, window_bounds = array<i64: 32, 7>}, {pipeline_mode = #tpu.pipeline_mode<synchronous>, transform_indices = @transform_4, window_bounds = array<i64: 32, 1>}, {pipeline_mode = #tpu.pipeline_mode<synchronous>, transform_indices = @transform_5, window_bounds = array<i64: 32, 32>}, {pipeline_mode = #tpu.pipeline_mode<synchronous>, transform_indices = @transform_6, window_bounds = array<i64: 16, 64>}, {pipeline_mode = #tpu.pipeline_mode<synchronous>, transform_indices = @transform_7, window_bounds = array<i64: 64, 4>}, {pipeline_mode = #tpu.pipeline_mode<synchronous>, transform_indices = @transform_8, window_bounds = array<i64: 2, 32>}, {pipeline_mode = #tpu.pipeline_mode<synchronous>, transform_indices = @transform_9, window_bounds = array<i64: 1, 4>}, {pipeline_mode = #tpu.pipeline_mode<synchronous>, transform_indices = @transform_10, window_bounds = array<i64: 2, 4>}]} {
    %c0 = arith.constant 0 : index
    %c0_0 = arith.constant 0 : index
    %0 = vector.load %arg2[%c0, %c0_0] : memref<32x32xf32, #tpu.memory_space<vmem>>, vector<32x32xf32>
    %c0_1 = arith.constant 0 : index
    %c0_2 = arith.constant 0 : index
    %1 = vector.load %arg1[%c0_1, %c0_2] : memref<32x128xf32, #tpu.memory_space<vmem>>, vector<32x128xf32>
    %cst = arith.constant dense<0.000000e+00> : vector<32x128xf32>
    %2 = tpu.matmul %0, %1, %cst {dimension_numbers = #tpu.dot_dimension_numbers<[1], [0], [0], [1], [0, 0, 1, 1], [], []>} : vector<32x32xf32>, vector<32x128xf32>, vector<32x128xf32> -> vector<32x128xf32>
    %c0_3 = arith.constant 0 : index
    %c0_4 = arith.constant 0 : index
    %3 = vector.load %arg3[%c0_3, %c0_4] : memref<32x1xf32, #tpu.memory_space<vmem>>, vector<32x1xf32>
    %4 = vector.broadcast %3 : vector<32x1xf32> to vector<32x128xf32>
    %5 = arith.addf %2, %4 : vector<32x128xf32>
    %6 = tpu.iota {dimensions = array<i32: 1>} : vector<1x128xi32>
    %c0_5 = arith.constant 0 : index
    %c3 = arith.constant 3 : index
    %7 = vector.load %arg4[%c0_5, %c3] : memref<32x7xf32, #tpu.memory_space<vmem>>, vector<32x1xf32>
    %8 = vector.broadcast %7 : vector<32x1xf32> to vector<32x128xf32>
    %9 = arith.mulf %8, %5 : vector<32x128xf32>
    %c0_6 = arith.constant 0 : index
    %c0_7 = arith.constant 0 : index
    %10 = vector.load %arg5[%c0_6, %c0_7] : memref<32x1xf32, #tpu.memory_space<vmem>>, vector<32x1xf32>
    %11 = vector.broadcast %10 : vector<32x1xf32> to vector<32x128xf32>
    %12 = arith.addf %9, %11 : vector<32x128xf32>
    %c3_i32 = arith.constant 3 : i32
    %13 = tpu.dynamic_rotate %5 by %c3_i32 dim 1 : vector<32x128xf32>, i32 -> vector<32x128xf32>
    %c3_i32_8 = arith.constant 3 : i32
    %14 = vector.broadcast %c3_i32_8 : i32 to vector<1x128xi32>
    %15 = arith.cmpi sge, %6, %14 : vector<1x128xi32>
    %c0_9 = arith.constant 0 : index
    %c0_10 = arith.constant 0 : index
    %16 = vector.load %arg4[%c0_9, %c0_10] : memref<32x7xf32, #tpu.memory_space<vmem>>, vector<32x1xf32>
    %cst_11 = arith.constant 0.000000e+00 : f32
    %17 = vector.shape_cast %15 : vector<1x128xi1> to vector<1x128xi1>
    %18 = vector.broadcast %17 : vector<1x128xi1> to vector<32x128xi1>
    %19 = vector.broadcast %cst_11 : f32 to vector<32x128xf32>
    %20 = arith.select %18, %13, %19 : vector<32x128xi1>, vector<32x128xf32>
    %21 = vector.broadcast %16 : vector<32x1xf32> to vector<32x128xf32>
    %22 = arith.mulf %21, %20 : vector<32x128xf32>
    %23 = arith.addf %12, %22 : vector<32x128xf32>
    %c2_i32 = arith.constant 2 : i32
    %24 = tpu.dynamic_rotate %5 by %c2_i32 dim 1 : vector<32x128xf32>, i32 -> vector<32x128xf32>
    %c2_i32_12 = arith.constant 2 : i32
    %25 = vector.broadcast %c2_i32_12 : i32 to vector<1x128xi32>
    %26 = arith.cmpi sge, %6, %25 : vector<1x128xi32>
    %c0_13 = arith.constant 0 : index
    %c1 = arith.constant 1 : index
    %27 = vector.load %arg4[%c0_13, %c1] : memref<32x7xf32, #tpu.memory_space<vmem>>, vector<32x1xf32>
    %cst_14 = arith.constant 0.000000e+00 : f32
    %28 = vector.shape_cast %26 : vector<1x128xi1> to vector<1x128xi1>
    %29 = vector.broadcast %28 : vector<1x128xi1> to vector<32x128xi1>
    %30 = vector.broadcast %cst_14 : f32 to vector<32x128xf32>
    %31 = arith.select %29, %24, %30 : vector<32x128xi1>, vector<32x128xf32>
    %32 = vector.broadcast %27 : vector<32x1xf32> to vector<32x128xf32>
    %33 = arith.mulf %32, %31 : vector<32x128xf32>
    %34 = arith.addf %23, %33 : vector<32x128xf32>
    %c1_i32 = arith.constant 1 : i32
    %35 = tpu.dynamic_rotate %5 by %c1_i32 dim 1 : vector<32x128xf32>, i32 -> vector<32x128xf32>
    %c1_i32_15 = arith.constant 1 : i32
    %36 = vector.broadcast %c1_i32_15 : i32 to vector<1x128xi32>
    %37 = arith.cmpi sge, %6, %36 : vector<1x128xi32>
    %c0_16 = arith.constant 0 : index
    %c2 = arith.constant 2 : index
    %38 = vector.load %arg4[%c0_16, %c2] : memref<32x7xf32, #tpu.memory_space<vmem>>, vector<32x1xf32>
    %cst_17 = arith.constant 0.000000e+00 : f32
    %39 = vector.shape_cast %37 : vector<1x128xi1> to vector<1x128xi1>
    %40 = vector.broadcast %39 : vector<1x128xi1> to vector<32x128xi1>
    %41 = vector.broadcast %cst_17 : f32 to vector<32x128xf32>
    %42 = arith.select %40, %35, %41 : vector<32x128xi1>, vector<32x128xf32>
    %43 = vector.broadcast %38 : vector<32x1xf32> to vector<32x128xf32>
    %44 = arith.mulf %43, %42 : vector<32x128xf32>
    %45 = arith.addf %34, %44 : vector<32x128xf32>
    %c127_i32 = arith.constant 127 : i32
    %46 = tpu.dynamic_rotate %5 by %c127_i32 dim 1 : vector<32x128xf32>, i32 -> vector<32x128xf32>
    %c127_i32_18 = arith.constant 127 : i32
    %47 = vector.broadcast %c127_i32_18 : i32 to vector<1x128xi32>
    %48 = arith.cmpi slt, %6, %47 : vector<1x128xi32>
    %c0_19 = arith.constant 0 : index
    %c4 = arith.constant 4 : index
    %49 = vector.load %arg4[%c0_19, %c4] : memref<32x7xf32, #tpu.memory_space<vmem>>, vector<32x1xf32>
    %cst_20 = arith.constant 0.000000e+00 : f32
    %50 = vector.shape_cast %48 : vector<1x128xi1> to vector<1x128xi1>
    %51 = vector.broadcast %50 : vector<1x128xi1> to vector<32x128xi1>
    %52 = vector.broadcast %cst_20 : f32 to vector<32x128xf32>
    %53 = arith.select %51, %46, %52 : vector<32x128xi1>, vector<32x128xf32>
    %54 = vector.broadcast %49 : vector<32x1xf32> to vector<32x128xf32>
    %55 = arith.mulf %54, %53 : vector<32x128xf32>
    %56 = arith.addf %45, %55 : vector<32x128xf32>
    %c126_i32 = arith.constant 126 : i32
    %57 = tpu.dynamic_rotate %5 by %c126_i32 dim 1 : vector<32x128xf32>, i32 -> vector<32x128xf32>
    %c126_i32_21 = arith.constant 126 : i32
    %58 = vector.broadcast %c126_i32_21 : i32 to vector<1x128xi32>
    %59 = arith.cmpi slt, %6, %58 : vector<1x128xi32>
    %c0_22 = arith.constant 0 : index
    %c5 = arith.constant 5 : index
    %60 = vector.load %arg4[%c0_22, %c5] : memref<32x7xf32, #tpu.memory_space<vmem>>, vector<32x1xf32>
    %cst_23 = arith.constant 0.000000e+00 : f32
    %61 = vector.shape_cast %59 : vector<1x128xi1> to vector<1x128xi1>
    %62 = vector.broadcast %61 : vector<1x128xi1> to vector<32x128xi1>
    %63 = vector.broadcast %cst_23 : f32 to vector<32x128xf32>
    %64 = arith.select %62, %57, %63 : vector<32x128xi1>, vector<32x128xf32>
    %65 = vector.broadcast %60 : vector<32x1xf32> to vector<32x128xf32>
    %66 = arith.mulf %65, %64 : vector<32x128xf32>
    %67 = arith.addf %56, %66 : vector<32x128xf32>
    %c125_i32 = arith.constant 125 : i32
    %68 = tpu.dynamic_rotate %5 by %c125_i32 dim 1 : vector<32x128xf32>, i32 -> vector<32x128xf32>
    %c125_i32_24 = arith.constant 125 : i32
    %69 = vector.broadcast %c125_i32_24 : i32 to vector<1x128xi32>
    %70 = arith.cmpi slt, %6, %69 : vector<1x128xi32>
    %c0_25 = arith.constant 0 : index
    %c6 = arith.constant 6 : index
    %71 = vector.load %arg4[%c0_25, %c6] : memref<32x7xf32, #tpu.memory_space<vmem>>, vector<32x1xf32>
    %cst_26 = arith.constant 0.000000e+00 : f32
    %72 = vector.shape_cast %70 : vector<1x128xi1> to vector<1x128xi1>
    %73 = vector.broadcast %72 : vector<1x128xi1> to vector<32x128xi1>
    %74 = vector.broadcast %cst_26 : f32 to vector<32x128xf32>
    %75 = arith.select %73, %68, %74 : vector<32x128xi1>, vector<32x128xf32>
    %76 = vector.broadcast %71 : vector<32x1xf32> to vector<32x128xf32>
    %77 = arith.mulf %76, %75 : vector<32x128xf32>
    %78 = arith.addf %67, %77 : vector<32x128xf32>
    %79 = vector.extract_strided_slice %78 {offsets = [0, 0], sizes = [16, 128], strides = [1, 1]} : vector<32x128xf32> to vector<16x128xf32>
    %cst_27 = arith.constant dense<0.000000e+00> : vector<16x16xf32>
    %80 = tpu.matmul %79, %79, %cst_27 {dimension_numbers = #tpu.dot_dimension_numbers<[1], [1], [0], [0], [0, 0, 1, 0], [], []>} : vector<16x128xf32>, vector<16x128xf32>, vector<16x16xf32> -> vector<16x16xf32>
    %81 = vector.extract_strided_slice %78 {offsets = [16, 0], sizes = [16, 128], strides = [1, 1]} : vector<32x128xf32> to vector<16x128xf32>
    %cst_28 = arith.constant dense<0.000000e+00> : vector<16x16xf32>
    %82 = tpu.matmul %81, %81, %cst_28 {dimension_numbers = #tpu.dot_dimension_numbers<[1], [1], [0], [0], [0, 0, 1, 0], [], []>} : vector<16x128xf32>, vector<16x128xf32>, vector<16x16xf32> -> vector<16x16xf32>
    %83 = tpu.concatenate %80, %82 in 0 : vector<16x16xf32>, vector<16x16xf32> -> vector<32x16xf32>
    %cst_29 = arith.constant 0.00787401571 : f32
    %84 = vector.broadcast %cst_29 : f32 to vector<32x16xf32>
    %85 = arith.mulf %83, %84 : vector<32x16xf32>
    %86 = tpu.iota {dimensions = array<i32: 0>} : vector<32x1xi32>
    %c16_i32 = arith.constant 16 : i32
    %c0_i32 = arith.constant 0 : i32
    %87 = arith.cmpi eq, %c16_i32, %c0_i32 : i32
    %c1_i32_30 = arith.constant 1 : i32
    %88 = arith.select %87, %c1_i32_30, %c16_i32 : i32
    %89 = vector.broadcast %88 : i32 to vector<32x1xi32>
    %90 = arith.remsi %86, %89 : vector<32x1xi32>
    %c0_i32_31 = arith.constant 0 : i32
    %91 = vector.broadcast %c0_i32_31 : i32 to vector<32x1xi32>
    %92 = arith.cmpi ne, %90, %91 : vector<32x1xi32>
    %c0_i32_32 = arith.constant 0 : i32
    %93 = vector.broadcast %c0_i32_32 : i32 to vector<32x1xi32>
    %94 = arith.cmpi slt, %90, %93 : vector<32x1xi32>
    %c0_i32_33 = arith.constant 0 : i32
    %95 = arith.cmpi slt, %88, %c0_i32_33 : i32
    %96 = vector.broadcast %95 : i1 to vector<32x1xi1>
    %97 = vector.broadcast %96 : vector<32x1xi1> to vector<32x1xi1>
    %98 = arith.xori %94, %97 : vector<32x1xi1>
    %99 = arith.andi %98, %92 : vector<32x1xi1>
    %100 = vector.broadcast %88 : i32 to vector<32x1xi32>
    %101 = arith.addi %90, %100 : vector<32x1xi32>
    %102 = arith.select %99, %101, %90 : vector<32x1xi1>, vector<32x1xi32>
    %103 = tpu.iota {dimensions = array<i32: 1>} : vector<1x16xi32>
    %c0_34 = arith.constant 0 : index
    %c0_35 = arith.constant 0 : index
    %104 = vector.load %arg6[%c0_34, %c0_35] : memref<32x32xf32, #tpu.memory_space<vmem>>, vector<32x32xf32>
    %cst_36 = arith.constant 0.000000e+00 : f32
    %105 = vector.broadcast %cst_36 : f32 to vector<32x16xf32>
    %cst_37 = arith.constant 0.000000e+00 : f32
    %106 = vector.broadcast %cst_37 : f32 to vector<32x1xf32>
    %c0_i32_38 = arith.constant 0 : i32
    %107 = vector.broadcast %c0_i32_38 : i32 to vector<32x1xi32>
    %108 = arith.cmpi eq, %102, %107 : vector<32x1xi32>
    %cst_39 = arith.constant 0.000000e+00 : f32
    %109 = vector.shape_cast %108 : vector<32x1xi1> to vector<32x1xi1>
    %110 = vector.broadcast %109 : vector<32x1xi1> to vector<32x16xi1>
    %111 = vector.broadcast %cst_39 : f32 to vector<32x16xf32>
    %112 = arith.select %110, %85, %111 : vector<32x16xi1>, vector<32x16xf32>
    %cst_40 = arith.constant dense<0.000000e+00> : vector<32x16xf32>
    %113 = tpu.matmul %104, %112, %cst_40 {dimension_numbers = #tpu.dot_dimension_numbers<[1], [0], [0], [1], [0, 0, 1, 1], [], []>} : vector<32x32xf32>, vector<32x16xf32>, vector<32x16xf32> -> vector<32x16xf32>
    %114 = vector.extract_strided_slice %113 {offsets = [0, 0], sizes = [32, 1], strides = [1, 1]} : vector<32x16xf32> to vector<32x1xf32>
    %115 = math.rsqrt %114 : vector<32x1xf32>
    %c0_i32_41 = arith.constant 0 : i32
    %116 = vector.broadcast %c0_i32_41 : i32 to vector<32x1xi32>
    %117 = arith.cmpi eq, %102, %116 : vector<32x1xi32>
    %cst_42 = arith.constant 0.000000e+00 : f32
    %118 = vector.broadcast %cst_42 : f32 to vector<32x1xf32>
    %119 = arith.select %117, %114, %118 : vector<32x1xi1>, vector<32x1xf32>
    %120 = arith.addf %106, %119 : vector<32x1xf32>
    %c0_i32_43 = arith.constant 0 : i32
    %121 = vector.broadcast %c0_i32_43 : i32 to vector<32x1xi32>
    %122 = arith.cmpi sge, %102, %121 : vector<32x1xi32>
    %123 = vector.extract_strided_slice %85 {offsets = [0, 0], sizes = [32, 1], strides = [1, 1]} : vector<32x16xf32> to vector<32x1xf32>
    %124 = arith.mulf %123, %115 : vector<32x1xf32>
    %cst_44 = arith.constant 0.000000e+00 : f32
    %125 = vector.broadcast %cst_44 : f32 to vector<32x1xf32>
    %126 = arith.select %122, %124, %125 : vector<32x1xi1>, vector<32x1xf32>
    %c0_i32_45 = arith.constant 0 : i32
    %127 = vector.broadcast %c0_i32_45 : i32 to vector<1x16xi32>
    %128 = arith.cmpi eq, %103, %127 : vector<1x16xi32>
    %129 = vector.shape_cast %128 : vector<1x16xi1> to vector<1x16xi1>
    %130 = vector.broadcast %129 : vector<1x16xi1> to vector<32x16xi1>
    %131 = vector.shape_cast %126 : vector<32x1xf32> to vector<32x1xf32>
    %132 = vector.broadcast %131 : vector<32x1xf32> to vector<32x16xf32>
    %133 = arith.select %130, %132, %105 : vector<32x16xi1>, vector<32x16xf32>
    %c0_i32_46 = arith.constant 0 : i32
    %134 = vector.broadcast %c0_i32_46 : i32 to vector<1x16xi32>
    %135 = arith.cmpi sge, %103, %134 : vector<1x16xi32>
    %136 = vector.broadcast %115 : vector<32x1xf32> to vector<32x16xf32>
    %137 = arith.mulf %113, %136 : vector<32x16xf32>
    %cst_47 = arith.constant 0.000000e+00 : f32
    %138 = vector.shape_cast %135 : vector<1x16xi1> to vector<1x16xi1>
    %139 = vector.broadcast %138 : vector<1x16xi1> to vector<32x16xi1>
    %140 = vector.broadcast %cst_47 : f32 to vector<32x16xf32>
    %141 = arith.select %139, %137, %140 : vector<32x16xi1>, vector<32x16xf32>
    %142 = vector.broadcast %126 : vector<32x1xf32> to vector<32x16xf32>
    %143 = arith.mulf %142, %141 : vector<32x16xf32>
    %144 = arith.subf %85, %143 : vector<32x16xf32>
    %c1_i32_48 = arith.constant 1 : i32
    %145 = vector.broadcast %c1_i32_48 : i32 to vector<32x1xi32>
    %146 = arith.cmpi eq, %102, %145 : vector<32x1xi32>
    %cst_49 = arith.constant 0.000000e+00 : f32
    %147 = vector.shape_cast %146 : vector<32x1xi1> to vector<32x1xi1>
    %148 = vector.broadcast %147 : vector<32x1xi1> to vector<32x16xi1>
    %149 = vector.broadcast %cst_49 : f32 to vector<32x16xf32>
    %150 = arith.select %148, %144, %149 : vector<32x16xi1>, vector<32x16xf32>
    %cst_50 = arith.constant dense<0.000000e+00> : vector<32x16xf32>
    %151 = tpu.matmul %104, %150, %cst_50 {dimension_numbers = #tpu.dot_dimension_numbers<[1], [0], [0], [1], [0, 0, 1, 1], [], []>} : vector<32x32xf32>, vector<32x16xf32>, vector<32x16xf32> -> vector<32x16xf32>
    %152 = vector.extract_strided_slice %151 {offsets = [0, 1], sizes = [32, 1], strides = [1, 1]} : vector<32x16xf32> to vector<32x1xf32>
    %153 = math.rsqrt %152 : vector<32x1xf32>
    %c1_i32_51 = arith.constant 1 : i32
    %154 = vector.broadcast %c1_i32_51 : i32 to vector<32x1xi32>
    %155 = arith.cmpi eq, %102, %154 : vector<32x1xi32>
    %cst_52 = arith.constant 0.000000e+00 : f32
    %156 = vector.broadcast %cst_52 : f32 to vector<32x1xf32>
    %157 = arith.select %155, %152, %156 : vector<32x1xi1>, vector<32x1xf32>
    %158 = arith.addf %120, %157 : vector<32x1xf32>
    %c1_i32_53 = arith.constant 1 : i32
    %159 = vector.broadcast %c1_i32_53 : i32 to vector<32x1xi32>
    %160 = arith.cmpi sge, %102, %159 : vector<32x1xi32>
    %161 = vector.extract_strided_slice %144 {offsets = [0, 1], sizes = [32, 1], strides = [1, 1]} : vector<32x16xf32> to vector<32x1xf32>
    %162 = arith.mulf %161, %153 : vector<32x1xf32>
    %cst_54 = arith.constant 0.000000e+00 : f32
    %163 = vector.broadcast %cst_54 : f32 to vector<32x1xf32>
    %164 = arith.select %160, %162, %163 : vector<32x1xi1>, vector<32x1xf32>
    %c1_i32_55 = arith.constant 1 : i32
    %165 = vector.broadcast %c1_i32_55 : i32 to vector<1x16xi32>
    %166 = arith.cmpi eq, %103, %165 : vector<1x16xi32>
    %167 = vector.shape_cast %166 : vector<1x16xi1> to vector<1x16xi1>
    %168 = vector.broadcast %167 : vector<1x16xi1> to vector<32x16xi1>
    %169 = vector.shape_cast %164 : vector<32x1xf32> to vector<32x1xf32>
    %170 = vector.broadcast %169 : vector<32x1xf32> to vector<32x16xf32>
    %171 = arith.select %168, %170, %133 : vector<32x16xi1>, vector<32x16xf32>
    %c1_i32_56 = arith.constant 1 : i32
    %172 = vector.broadcast %c1_i32_56 : i32 to vector<1x16xi32>
    %173 = arith.cmpi sge, %103, %172 : vector<1x16xi32>
    %174 = vector.broadcast %153 : vector<32x1xf32> to vector<32x16xf32>
    %175 = arith.mulf %151, %174 : vector<32x16xf32>
    %cst_57 = arith.constant 0.000000e+00 : f32
    %176 = vector.shape_cast %173 : vector<1x16xi1> to vector<1x16xi1>
    %177 = vector.broadcast %176 : vector<1x16xi1> to vector<32x16xi1>
    %178 = vector.broadcast %cst_57 : f32 to vector<32x16xf32>
    %179 = arith.select %177, %175, %178 : vector<32x16xi1>, vector<32x16xf32>
    %180 = vector.broadcast %164 : vector<32x1xf32> to vector<32x16xf32>
    %181 = arith.mulf %180, %179 : vector<32x16xf32>
    %182 = arith.subf %144, %181 : vector<32x16xf32>
    %c2_i32_58 = arith.constant 2 : i32
    %183 = vector.broadcast %c2_i32_58 : i32 to vector<32x1xi32>
    %184 = arith.cmpi eq, %102, %183 : vector<32x1xi32>
    %cst_59 = arith.constant 0.000000e+00 : f32
    %185 = vector.shape_cast %184 : vector<32x1xi1> to vector<32x1xi1>
    %186 = vector.broadcast %185 : vector<32x1xi1> to vector<32x16xi1>
    %187 = vector.broadcast %cst_59 : f32 to vector<32x16xf32>
    %188 = arith.select %186, %182, %187 : vector<32x16xi1>, vector<32x16xf32>
    %cst_60 = arith.constant dense<0.000000e+00> : vector<32x16xf32>
    %189 = tpu.matmul %104, %188, %cst_60 {dimension_numbers = #tpu.dot_dimension_numbers<[1], [0], [0], [1], [0, 0, 1, 1], [], []>} : vector<32x32xf32>, vector<32x16xf32>, vector<32x16xf32> -> vector<32x16xf32>
    %190 = vector.extract_strided_slice %189 {offsets = [0, 2], sizes = [32, 1], strides = [1, 1]} : vector<32x16xf32> to vector<32x1xf32>
    %191 = math.rsqrt %190 : vector<32x1xf32>
    %c2_i32_61 = arith.constant 2 : i32
    %192 = vector.broadcast %c2_i32_61 : i32 to vector<32x1xi32>
    %193 = arith.cmpi eq, %102, %192 : vector<32x1xi32>
    %cst_62 = arith.constant 0.000000e+00 : f32
    %194 = vector.broadcast %cst_62 : f32 to vector<32x1xf32>
    %195 = arith.select %193, %190, %194 : vector<32x1xi1>, vector<32x1xf32>
    %196 = arith.addf %158, %195 : vector<32x1xf32>
    %c2_i32_63 = arith.constant 2 : i32
    %197 = vector.broadcast %c2_i32_63 : i32 to vector<32x1xi32>
    %198 = arith.cmpi sge, %102, %197 : vector<32x1xi32>
    %199 = vector.extract_strided_slice %182 {offsets = [0, 2], sizes = [32, 1], strides = [1, 1]} : vector<32x16xf32> to vector<32x1xf32>
    %200 = arith.mulf %199, %191 : vector<32x1xf32>
    %cst_64 = arith.constant 0.000000e+00 : f32
    %201 = vector.broadcast %cst_64 : f32 to vector<32x1xf32>
    %202 = arith.select %198, %200, %201 : vector<32x1xi1>, vector<32x1xf32>
    %c2_i32_65 = arith.constant 2 : i32
    %203 = vector.broadcast %c2_i32_65 : i32 to vector<1x16xi32>
    %204 = arith.cmpi eq, %103, %203 : vector<1x16xi32>
    %205 = vector.shape_cast %204 : vector<1x16xi1> to vector<1x16xi1>
    %206 = vector.broadcast %205 : vector<1x16xi1> to vector<32x16xi1>
    %207 = vector.shape_cast %202 : vector<32x1xf32> to vector<32x1xf32>
    %208 = vector.broadcast %207 : vector<32x1xf32> to vector<32x16xf32>
    %209 = arith.select %206, %208, %171 : vector<32x16xi1>, vector<32x16xf32>
    %c2_i32_66 = arith.constant 2 : i32
    %210 = vector.broadcast %c2_i32_66 : i32 to vector<1x16xi32>
    %211 = arith.cmpi sge, %103, %210 : vector<1x16xi32>
    %212 = vector.broadcast %191 : vector<32x1xf32> to vector<32x16xf32>
    %213 = arith.mulf %189, %212 : vector<32x16xf32>
    %cst_67 = arith.constant 0.000000e+00 : f32
    %214 = vector.shape_cast %211 : vector<1x16xi1> to vector<1x16xi1>
    %215 = vector.broadcast %214 : vector<1x16xi1> to vector<32x16xi1>
    %216 = vector.broadcast %cst_67 : f32 to vector<32x16xf32>
    %217 = arith.select %215, %213, %216 : vector<32x16xi1>, vector<32x16xf32>
    %218 = vector.broadcast %202 : vector<32x1xf32> to vector<32x16xf32>
    %219 = arith.mulf %218, %217 : vector<32x16xf32>
    %220 = arith.subf %182, %219 : vector<32x16xf32>
    %c3_i32_68 = arith.constant 3 : i32
    %221 = vector.broadcast %c3_i32_68 : i32 to vector<32x1xi32>
    %222 = arith.cmpi eq, %102, %221 : vector<32x1xi32>
    %cst_69 = arith.constant 0.000000e+00 : f32
    %223 = vector.shape_cast %222 : vector<32x1xi1> to vector<32x1xi1>
    %224 = vector.broadcast %223 : vector<32x1xi1> to vector<32x16xi1>
    %225 = vector.broadcast %cst_69 : f32 to vector<32x16xf32>
    %226 = arith.select %224, %220, %225 : vector<32x16xi1>, vector<32x16xf32>
    %cst_70 = arith.constant dense<0.000000e+00> : vector<32x16xf32>
    %227 = tpu.matmul %104, %226, %cst_70 {dimension_numbers = #tpu.dot_dimension_numbers<[1], [0], [0], [1], [0, 0, 1, 1], [], []>} : vector<32x32xf32>, vector<32x16xf32>, vector<32x16xf32> -> vector<32x16xf32>
    %228 = vector.extract_strided_slice %227 {offsets = [0, 3], sizes = [32, 1], strides = [1, 1]} : vector<32x16xf32> to vector<32x1xf32>
    %229 = math.rsqrt %228 : vector<32x1xf32>
    %c3_i32_71 = arith.constant 3 : i32
    %230 = vector.broadcast %c3_i32_71 : i32 to vector<32x1xi32>
    %231 = arith.cmpi eq, %102, %230 : vector<32x1xi32>
    %cst_72 = arith.constant 0.000000e+00 : f32
    %232 = vector.broadcast %cst_72 : f32 to vector<32x1xf32>
    %233 = arith.select %231, %228, %232 : vector<32x1xi1>, vector<32x1xf32>
    %234 = arith.addf %196, %233 : vector<32x1xf32>
    %c3_i32_73 = arith.constant 3 : i32
    %235 = vector.broadcast %c3_i32_73 : i32 to vector<32x1xi32>
    %236 = arith.cmpi sge, %102, %235 : vector<32x1xi32>
    %237 = vector.extract_strided_slice %220 {offsets = [0, 3], sizes = [32, 1], strides = [1, 1]} : vector<32x16xf32> to vector<32x1xf32>
    %238 = arith.mulf %237, %229 : vector<32x1xf32>
    %cst_74 = arith.constant 0.000000e+00 : f32
    %239 = vector.broadcast %cst_74 : f32 to vector<32x1xf32>
    %240 = arith.select %236, %238, %239 : vector<32x1xi1>, vector<32x1xf32>
    %c3_i32_75 = arith.constant 3 : i32
    %241 = vector.broadcast %c3_i32_75 : i32 to vector<1x16xi32>
    %242 = arith.cmpi eq, %103, %241 : vector<1x16xi32>
    %243 = vector.shape_cast %242 : vector<1x16xi1> to vector<1x16xi1>
    %244 = vector.broadcast %243 : vector<1x16xi1> to vector<32x16xi1>
    %245 = vector.shape_cast %240 : vector<32x1xf32> to vector<32x1xf32>
    %246 = vector.broadcast %245 : vector<32x1xf32> to vector<32x16xf32>
    %247 = arith.select %244, %246, %209 : vector<32x16xi1>, vector<32x16xf32>
    %c3_i32_76 = arith.constant 3 : i32
    %248 = vector.broadcast %c3_i32_76 : i32 to vector<1x16xi32>
    %249 = arith.cmpi sge, %103, %248 : vector<1x16xi32>
    %250 = vector.broadcast %229 : vector<32x1xf32> to vector<32x16xf32>
    %251 = arith.mulf %227, %250 : vector<32x16xf32>
    %cst_77 = arith.constant 0.000000e+00 : f32
    %252 = vector.shape_cast %249 : vector<1x16xi1> to vector<1x16xi1>
    %253 = vector.broadcast %252 : vector<1x16xi1> to vector<32x16xi1>
    %254 = vector.broadcast %cst_77 : f32 to vector<32x16xf32>
    %255 = arith.select %253, %251, %254 : vector<32x16xi1>, vector<32x16xf32>
    %256 = vector.broadcast %240 : vector<32x1xf32> to vector<32x16xf32>
    %257 = arith.mulf %256, %255 : vector<32x16xf32>
    %258 = arith.subf %220, %257 : vector<32x16xf32>
    %c4_i32 = arith.constant 4 : i32
    %259 = vector.broadcast %c4_i32 : i32 to vector<32x1xi32>
    %260 = arith.cmpi eq, %102, %259 : vector<32x1xi32>
    %cst_78 = arith.constant 0.000000e+00 : f32
    %261 = vector.shape_cast %260 : vector<32x1xi1> to vector<32x1xi1>
    %262 = vector.broadcast %261 : vector<32x1xi1> to vector<32x16xi1>
    %263 = vector.broadcast %cst_78 : f32 to vector<32x16xf32>
    %264 = arith.select %262, %258, %263 : vector<32x16xi1>, vector<32x16xf32>
    %cst_79 = arith.constant dense<0.000000e+00> : vector<32x16xf32>
    %265 = tpu.matmul %104, %264, %cst_79 {dimension_numbers = #tpu.dot_dimension_numbers<[1], [0], [0], [1], [0, 0, 1, 1], [], []>} : vector<32x32xf32>, vector<32x16xf32>, vector<32x16xf32> -> vector<32x16xf32>
    %266 = vector.extract_strided_slice %265 {offsets = [0, 4], sizes = [32, 1], strides = [1, 1]} : vector<32x16xf32> to vector<32x1xf32>
    %267 = math.rsqrt %266 : vector<32x1xf32>
    %c4_i32_80 = arith.constant 4 : i32
    %268 = vector.broadcast %c4_i32_80 : i32 to vector<32x1xi32>
    %269 = arith.cmpi eq, %102, %268 : vector<32x1xi32>
    %cst_81 = arith.constant 0.000000e+00 : f32
    %270 = vector.broadcast %cst_81 : f32 to vector<32x1xf32>
    %271 = arith.select %269, %266, %270 : vector<32x1xi1>, vector<32x1xf32>
    %272 = arith.addf %234, %271 : vector<32x1xf32>
    %c4_i32_82 = arith.constant 4 : i32
    %273 = vector.broadcast %c4_i32_82 : i32 to vector<32x1xi32>
    %274 = arith.cmpi sge, %102, %273 : vector<32x1xi32>
    %275 = vector.extract_strided_slice %258 {offsets = [0, 4], sizes = [32, 1], strides = [1, 1]} : vector<32x16xf32> to vector<32x1xf32>
    %276 = arith.mulf %275, %267 : vector<32x1xf32>
    %cst_83 = arith.constant 0.000000e+00 : f32
    %277 = vector.broadcast %cst_83 : f32 to vector<32x1xf32>
    %278 = arith.select %274, %276, %277 : vector<32x1xi1>, vector<32x1xf32>
    %c4_i32_84 = arith.constant 4 : i32
    %279 = vector.broadcast %c4_i32_84 : i32 to vector<1x16xi32>
    %280 = arith.cmpi eq, %103, %279 : vector<1x16xi32>
    %281 = vector.shape_cast %280 : vector<1x16xi1> to vector<1x16xi1>
    %282 = vector.broadcast %281 : vector<1x16xi1> to vector<32x16xi1>
    %283 = vector.shape_cast %278 : vector<32x1xf32> to vector<32x1xf32>
    %284 = vector.broadcast %283 : vector<32x1xf32> to vector<32x16xf32>
    %285 = arith.select %282, %284, %247 : vector<32x16xi1>, vector<32x16xf32>
    %c4_i32_85 = arith.constant 4 : i32
    %286 = vector.broadcast %c4_i32_85 : i32 to vector<1x16xi32>
    %287 = arith.cmpi sge, %103, %286 : vector<1x16xi32>
    %288 = vector.broadcast %267 : vector<32x1xf32> to vector<32x16xf32>
    %289 = arith.mulf %265, %288 : vector<32x16xf32>
    %cst_86 = arith.constant 0.000000e+00 : f32
    %290 = vector.shape_cast %287 : vector<1x16xi1> to vector<1x16xi1>
    %291 = vector.broadcast %290 : vector<1x16xi1> to vector<32x16xi1>
    %292 = vector.broadcast %cst_86 : f32 to vector<32x16xf32>
    %293 = arith.select %291, %289, %292 : vector<32x16xi1>, vector<32x16xf32>
    %294 = vector.broadcast %278 : vector<32x1xf32> to vector<32x16xf32>
    %295 = arith.mulf %294, %293 : vector<32x16xf32>
    %296 = arith.subf %258, %295 : vector<32x16xf32>
    %c5_i32 = arith.constant 5 : i32
    %297 = vector.broadcast %c5_i32 : i32 to vector<32x1xi32>
    %298 = arith.cmpi eq, %102, %297 : vector<32x1xi32>
    %cst_87 = arith.constant 0.000000e+00 : f32
    %299 = vector.shape_cast %298 : vector<32x1xi1> to vector<32x1xi1>
    %300 = vector.broadcast %299 : vector<32x1xi1> to vector<32x16xi1>
    %301 = vector.broadcast %cst_87 : f32 to vector<32x16xf32>
    %302 = arith.select %300, %296, %301 : vector<32x16xi1>, vector<32x16xf32>
    %cst_88 = arith.constant dense<0.000000e+00> : vector<32x16xf32>
    %303 = tpu.matmul %104, %302, %cst_88 {dimension_numbers = #tpu.dot_dimension_numbers<[1], [0], [0], [1], [0, 0, 1, 1], [], []>} : vector<32x32xf32>, vector<32x16xf32>, vector<32x16xf32> -> vector<32x16xf32>
    %304 = vector.extract_strided_slice %303 {offsets = [0, 5], sizes = [32, 1], strides = [1, 1]} : vector<32x16xf32> to vector<32x1xf32>
    %305 = math.rsqrt %304 : vector<32x1xf32>
    %c5_i32_89 = arith.constant 5 : i32
    %306 = vector.broadcast %c5_i32_89 : i32 to vector<32x1xi32>
    %307 = arith.cmpi eq, %102, %306 : vector<32x1xi32>
    %cst_90 = arith.constant 0.000000e+00 : f32
    %308 = vector.broadcast %cst_90 : f32 to vector<32x1xf32>
    %309 = arith.select %307, %304, %308 : vector<32x1xi1>, vector<32x1xf32>
    %310 = arith.addf %272, %309 : vector<32x1xf32>
    %c5_i32_91 = arith.constant 5 : i32
    %311 = vector.broadcast %c5_i32_91 : i32 to vector<32x1xi32>
    %312 = arith.cmpi sge, %102, %311 : vector<32x1xi32>
    %313 = vector.extract_strided_slice %296 {offsets = [0, 5], sizes = [32, 1], strides = [1, 1]} : vector<32x16xf32> to vector<32x1xf32>
    %314 = arith.mulf %313, %305 : vector<32x1xf32>
    %cst_92 = arith.constant 0.000000e+00 : f32
    %315 = vector.broadcast %cst_92 : f32 to vector<32x1xf32>
    %316 = arith.select %312, %314, %315 : vector<32x1xi1>, vector<32x1xf32>
    %c5_i32_93 = arith.constant 5 : i32
    %317 = vector.broadcast %c5_i32_93 : i32 to vector<1x16xi32>
    %318 = arith.cmpi eq, %103, %317 : vector<1x16xi32>
    %319 = vector.shape_cast %318 : vector<1x16xi1> to vector<1x16xi1>
    %320 = vector.broadcast %319 : vector<1x16xi1> to vector<32x16xi1>
    %321 = vector.shape_cast %316 : vector<32x1xf32> to vector<32x1xf32>
    %322 = vector.broadcast %321 : vector<32x1xf32> to vector<32x16xf32>
    %323 = arith.select %320, %322, %285 : vector<32x16xi1>, vector<32x16xf32>
    %c5_i32_94 = arith.constant 5 : i32
    %324 = vector.broadcast %c5_i32_94 : i32 to vector<1x16xi32>
    %325 = arith.cmpi sge, %103, %324 : vector<1x16xi32>
    %326 = vector.broadcast %305 : vector<32x1xf32> to vector<32x16xf32>
    %327 = arith.mulf %303, %326 : vector<32x16xf32>
    %cst_95 = arith.constant 0.000000e+00 : f32
    %328 = vector.shape_cast %325 : vector<1x16xi1> to vector<1x16xi1>
    %329 = vector.broadcast %328 : vector<1x16xi1> to vector<32x16xi1>
    %330 = vector.broadcast %cst_95 : f32 to vector<32x16xf32>
    %331 = arith.select %329, %327, %330 : vector<32x16xi1>, vector<32x16xf32>
    %332 = vector.broadcast %316 : vector<32x1xf32> to vector<32x16xf32>
    %333 = arith.mulf %332, %331 : vector<32x16xf32>
    %334 = arith.subf %296, %333 : vector<32x16xf32>
    %c6_i32 = arith.constant 6 : i32
    %335 = vector.broadcast %c6_i32 : i32 to vector<32x1xi32>
    %336 = arith.cmpi eq, %102, %335 : vector<32x1xi32>
    %cst_96 = arith.constant 0.000000e+00 : f32
    %337 = vector.shape_cast %336 : vector<32x1xi1> to vector<32x1xi1>
    %338 = vector.broadcast %337 : vector<32x1xi1> to vector<32x16xi1>
    %339 = vector.broadcast %cst_96 : f32 to vector<32x16xf32>
    %340 = arith.select %338, %334, %339 : vector<32x16xi1>, vector<32x16xf32>
    %cst_97 = arith.constant dense<0.000000e+00> : vector<32x16xf32>
    %341 = tpu.matmul %104, %340, %cst_97 {dimension_numbers = #tpu.dot_dimension_numbers<[1], [0], [0], [1], [0, 0, 1, 1], [], []>} : vector<32x32xf32>, vector<32x16xf32>, vector<32x16xf32> -> vector<32x16xf32>
    %342 = vector.extract_strided_slice %341 {offsets = [0, 6], sizes = [32, 1], strides = [1, 1]} : vector<32x16xf32> to vector<32x1xf32>
    %343 = math.rsqrt %342 : vector<32x1xf32>
    %c6_i32_98 = arith.constant 6 : i32
    %344 = vector.broadcast %c6_i32_98 : i32 to vector<32x1xi32>
    %345 = arith.cmpi eq, %102, %344 : vector<32x1xi32>
    %cst_99 = arith.constant 0.000000e+00 : f32
    %346 = vector.broadcast %cst_99 : f32 to vector<32x1xf32>
    %347 = arith.select %345, %342, %346 : vector<32x1xi1>, vector<32x1xf32>
    %348 = arith.addf %310, %347 : vector<32x1xf32>
    %c6_i32_100 = arith.constant 6 : i32
    %349 = vector.broadcast %c6_i32_100 : i32 to vector<32x1xi32>
    %350 = arith.cmpi sge, %102, %349 : vector<32x1xi32>
    %351 = vector.extract_strided_slice %334 {offsets = [0, 6], sizes = [32, 1], strides = [1, 1]} : vector<32x16xf32> to vector<32x1xf32>
    %352 = arith.mulf %351, %343 : vector<32x1xf32>
    %cst_101 = arith.constant 0.000000e+00 : f32
    %353 = vector.broadcast %cst_101 : f32 to vector<32x1xf32>
    %354 = arith.select %350, %352, %353 : vector<32x1xi1>, vector<32x1xf32>
    %c6_i32_102 = arith.constant 6 : i32
    %355 = vector.broadcast %c6_i32_102 : i32 to vector<1x16xi32>
    %356 = arith.cmpi eq, %103, %355 : vector<1x16xi32>
    %357 = vector.shape_cast %356 : vector<1x16xi1> to vector<1x16xi1>
    %358 = vector.broadcast %357 : vector<1x16xi1> to vector<32x16xi1>
    %359 = vector.shape_cast %354 : vector<32x1xf32> to vector<32x1xf32>
    %360 = vector.broadcast %359 : vector<32x1xf32> to vector<32x16xf32>
    %361 = arith.select %358, %360, %323 : vector<32x16xi1>, vector<32x16xf32>
    %c6_i32_103 = arith.constant 6 : i32
    %362 = vector.broadcast %c6_i32_103 : i32 to vector<1x16xi32>
    %363 = arith.cmpi sge, %103, %362 : vector<1x16xi32>
    %364 = vector.broadcast %343 : vector<32x1xf32> to vector<32x16xf32>
    %365 = arith.mulf %341, %364 : vector<32x16xf32>
    %cst_104 = arith.constant 0.000000e+00 : f32
    %366 = vector.shape_cast %363 : vector<1x16xi1> to vector<1x16xi1>
    %367 = vector.broadcast %366 : vector<1x16xi1> to vector<32x16xi1>
    %368 = vector.broadcast %cst_104 : f32 to vector<32x16xf32>
    %369 = arith.select %367, %365, %368 : vector<32x16xi1>, vector<32x16xf32>
    %370 = vector.broadcast %354 : vector<32x1xf32> to vector<32x16xf32>
    %371 = arith.mulf %370, %369 : vector<32x16xf32>
    %372 = arith.subf %334, %371 : vector<32x16xf32>
    %c7_i32 = arith.constant 7 : i32
    %373 = vector.broadcast %c7_i32 : i32 to vector<32x1xi32>
    %374 = arith.cmpi eq, %102, %373 : vector<32x1xi32>
    %cst_105 = arith.constant 0.000000e+00 : f32
    %375 = vector.shape_cast %374 : vector<32x1xi1> to vector<32x1xi1>
    %376 = vector.broadcast %375 : vector<32x1xi1> to vector<32x16xi1>
    %377 = vector.broadcast %cst_105 : f32 to vector<32x16xf32>
    %378 = arith.select %376, %372, %377 : vector<32x16xi1>, vector<32x16xf32>
    %cst_106 = arith.constant dense<0.000000e+00> : vector<32x16xf32>
    %379 = tpu.matmul %104, %378, %cst_106 {dimension_numbers = #tpu.dot_dimension_numbers<[1], [0], [0], [1], [0, 0, 1, 1], [], []>} : vector<32x32xf32>, vector<32x16xf32>, vector<32x16xf32> -> vector<32x16xf32>
    %380 = vector.extract_strided_slice %379 {offsets = [0, 7], sizes = [32, 1], strides = [1, 1]} : vector<32x16xf32> to vector<32x1xf32>
    %381 = math.rsqrt %380 : vector<32x1xf32>
    %c7_i32_107 = arith.constant 7 : i32
    %382 = vector.broadcast %c7_i32_107 : i32 to vector<32x1xi32>
    %383 = arith.cmpi eq, %102, %382 : vector<32x1xi32>
    %cst_108 = arith.constant 0.000000e+00 : f32
    %384 = vector.broadcast %cst_108 : f32 to vector<32x1xf32>
    %385 = arith.select %383, %380, %384 : vector<32x1xi1>, vector<32x1xf32>
    %386 = arith.addf %348, %385 : vector<32x1xf32>
    %c7_i32_109 = arith.constant 7 : i32
    %387 = vector.broadcast %c7_i32_109 : i32 to vector<32x1xi32>
    %388 = arith.cmpi sge, %102, %387 : vector<32x1xi32>
    %389 = vector.extract_strided_slice %372 {offsets = [0, 7], sizes = [32, 1], strides = [1, 1]} : vector<32x16xf32> to vector<32x1xf32>
    %390 = arith.mulf %389, %381 : vector<32x1xf32>
    %cst_110 = arith.constant 0.000000e+00 : f32
    %391 = vector.broadcast %cst_110 : f32 to vector<32x1xf32>
    %392 = arith.select %388, %390, %391 : vector<32x1xi1>, vector<32x1xf32>
    %c7_i32_111 = arith.constant 7 : i32
    %393 = vector.broadcast %c7_i32_111 : i32 to vector<1x16xi32>
    %394 = arith.cmpi eq, %103, %393 : vector<1x16xi32>
    %395 = vector.shape_cast %394 : vector<1x16xi1> to vector<1x16xi1>
    %396 = vector.broadcast %395 : vector<1x16xi1> to vector<32x16xi1>
    %397 = vector.shape_cast %392 : vector<32x1xf32> to vector<32x1xf32>
    %398 = vector.broadcast %397 : vector<32x1xf32> to vector<32x16xf32>
    %399 = arith.select %396, %398, %361 : vector<32x16xi1>, vector<32x16xf32>
    %c7_i32_112 = arith.constant 7 : i32
    %400 = vector.broadcast %c7_i32_112 : i32 to vector<1x16xi32>
    %401 = arith.cmpi sge, %103, %400 : vector<1x16xi32>
    %402 = vector.broadcast %381 : vector<32x1xf32> to vector<32x16xf32>
    %403 = arith.mulf %379, %402 : vector<32x16xf32>
    %cst_113 = arith.constant 0.000000e+00 : f32
    %404 = vector.shape_cast %401 : vector<1x16xi1> to vector<1x16xi1>
    %405 = vector.broadcast %404 : vector<1x16xi1> to vector<32x16xi1>
    %406 = vector.broadcast %cst_113 : f32 to vector<32x16xf32>
    %407 = arith.select %405, %403, %406 : vector<32x16xi1>, vector<32x16xf32>
    %408 = vector.broadcast %392 : vector<32x1xf32> to vector<32x16xf32>
    %409 = arith.mulf %408, %407 : vector<32x16xf32>
    %410 = arith.subf %372, %409 : vector<32x16xf32>
    %c8_i32 = arith.constant 8 : i32
    %411 = vector.broadcast %c8_i32 : i32 to vector<32x1xi32>
    %412 = arith.cmpi eq, %102, %411 : vector<32x1xi32>
    %cst_114 = arith.constant 0.000000e+00 : f32
    %413 = vector.shape_cast %412 : vector<32x1xi1> to vector<32x1xi1>
    %414 = vector.broadcast %413 : vector<32x1xi1> to vector<32x16xi1>
    %415 = vector.broadcast %cst_114 : f32 to vector<32x16xf32>
    %416 = arith.select %414, %410, %415 : vector<32x16xi1>, vector<32x16xf32>
    %cst_115 = arith.constant dense<0.000000e+00> : vector<32x16xf32>
    %417 = tpu.matmul %104, %416, %cst_115 {dimension_numbers = #tpu.dot_dimension_numbers<[1], [0], [0], [1], [0, 0, 1, 1], [], []>} : vector<32x32xf32>, vector<32x16xf32>, vector<32x16xf32> -> vector<32x16xf32>
    %418 = vector.extract_strided_slice %417 {offsets = [0, 8], sizes = [32, 1], strides = [1, 1]} : vector<32x16xf32> to vector<32x1xf32>
    %419 = math.rsqrt %418 : vector<32x1xf32>
    %c8_i32_116 = arith.constant 8 : i32
    %420 = vector.broadcast %c8_i32_116 : i32 to vector<32x1xi32>
    %421 = arith.cmpi eq, %102, %420 : vector<32x1xi32>
    %cst_117 = arith.constant 0.000000e+00 : f32
    %422 = vector.broadcast %cst_117 : f32 to vector<32x1xf32>
    %423 = arith.select %421, %418, %422 : vector<32x1xi1>, vector<32x1xf32>
    %424 = arith.addf %386, %423 : vector<32x1xf32>
    %c8_i32_118 = arith.constant 8 : i32
    %425 = vector.broadcast %c8_i32_118 : i32 to vector<32x1xi32>
    %426 = arith.cmpi sge, %102, %425 : vector<32x1xi32>
    %427 = vector.extract_strided_slice %410 {offsets = [0, 8], sizes = [32, 1], strides = [1, 1]} : vector<32x16xf32> to vector<32x1xf32>
    %428 = arith.mulf %427, %419 : vector<32x1xf32>
    %cst_119 = arith.constant 0.000000e+00 : f32
    %429 = vector.broadcast %cst_119 : f32 to vector<32x1xf32>
    %430 = arith.select %426, %428, %429 : vector<32x1xi1>, vector<32x1xf32>
    %c8_i32_120 = arith.constant 8 : i32
    %431 = vector.broadcast %c8_i32_120 : i32 to vector<1x16xi32>
    %432 = arith.cmpi eq, %103, %431 : vector<1x16xi32>
    %433 = vector.shape_cast %432 : vector<1x16xi1> to vector<1x16xi1>
    %434 = vector.broadcast %433 : vector<1x16xi1> to vector<32x16xi1>
    %435 = vector.shape_cast %430 : vector<32x1xf32> to vector<32x1xf32>
    %436 = vector.broadcast %435 : vector<32x1xf32> to vector<32x16xf32>
    %437 = arith.select %434, %436, %399 : vector<32x16xi1>, vector<32x16xf32>
    %c8_i32_121 = arith.constant 8 : i32
    %438 = vector.broadcast %c8_i32_121 : i32 to vector<1x16xi32>
    %439 = arith.cmpi sge, %103, %438 : vector<1x16xi32>
    %440 = vector.broadcast %419 : vector<32x1xf32> to vector<32x16xf32>
    %441 = arith.mulf %417, %440 : vector<32x16xf32>
    %cst_122 = arith.constant 0.000000e+00 : f32
    %442 = vector.shape_cast %439 : vector<1x16xi1> to vector<1x16xi1>
    %443 = vector.broadcast %442 : vector<1x16xi1> to vector<32x16xi1>
    %444 = vector.broadcast %cst_122 : f32 to vector<32x16xf32>
    %445 = arith.select %443, %441, %444 : vector<32x16xi1>, vector<32x16xf32>
    %446 = vector.broadcast %430 : vector<32x1xf32> to vector<32x16xf32>
    %447 = arith.mulf %446, %445 : vector<32x16xf32>
    %448 = arith.subf %410, %447 : vector<32x16xf32>
    %c9_i32 = arith.constant 9 : i32
    %449 = vector.broadcast %c9_i32 : i32 to vector<32x1xi32>
    %450 = arith.cmpi eq, %102, %449 : vector<32x1xi32>
    %cst_123 = arith.constant 0.000000e+00 : f32
    %451 = vector.shape_cast %450 : vector<32x1xi1> to vector<32x1xi1>
    %452 = vector.broadcast %451 : vector<32x1xi1> to vector<32x16xi1>
    %453 = vector.broadcast %cst_123 : f32 to vector<32x16xf32>
    %454 = arith.select %452, %448, %453 : vector<32x16xi1>, vector<32x16xf32>
    %cst_124 = arith.constant dense<0.000000e+00> : vector<32x16xf32>
    %455 = tpu.matmul %104, %454, %cst_124 {dimension_numbers = #tpu.dot_dimension_numbers<[1], [0], [0], [1], [0, 0, 1, 1], [], []>} : vector<32x32xf32>, vector<32x16xf32>, vector<32x16xf32> -> vector<32x16xf32>
    %456 = vector.extract_strided_slice %455 {offsets = [0, 9], sizes = [32, 1], strides = [1, 1]} : vector<32x16xf32> to vector<32x1xf32>
    %457 = math.rsqrt %456 : vector<32x1xf32>
    %c9_i32_125 = arith.constant 9 : i32
    %458 = vector.broadcast %c9_i32_125 : i32 to vector<32x1xi32>
    %459 = arith.cmpi eq, %102, %458 : vector<32x1xi32>
    %cst_126 = arith.constant 0.000000e+00 : f32
    %460 = vector.broadcast %cst_126 : f32 to vector<32x1xf32>
    %461 = arith.select %459, %456, %460 : vector<32x1xi1>, vector<32x1xf32>
    %462 = arith.addf %424, %461 : vector<32x1xf32>
    %c9_i32_127 = arith.constant 9 : i32
    %463 = vector.broadcast %c9_i32_127 : i32 to vector<32x1xi32>
    %464 = arith.cmpi sge, %102, %463 : vector<32x1xi32>
    %465 = vector.extract_strided_slice %448 {offsets = [0, 9], sizes = [32, 1], strides = [1, 1]} : vector<32x16xf32> to vector<32x1xf32>
    %466 = arith.mulf %465, %457 : vector<32x1xf32>
    %cst_128 = arith.constant 0.000000e+00 : f32
    %467 = vector.broadcast %cst_128 : f32 to vector<32x1xf32>
    %468 = arith.select %464, %466, %467 : vector<32x1xi1>, vector<32x1xf32>
    %c9_i32_129 = arith.constant 9 : i32
    %469 = vector.broadcast %c9_i32_129 : i32 to vector<1x16xi32>
    %470 = arith.cmpi eq, %103, %469 : vector<1x16xi32>
    %471 = vector.shape_cast %470 : vector<1x16xi1> to vector<1x16xi1>
    %472 = vector.broadcast %471 : vector<1x16xi1> to vector<32x16xi1>
    %473 = vector.shape_cast %468 : vector<32x1xf32> to vector<32x1xf32>
    %474 = vector.broadcast %473 : vector<32x1xf32> to vector<32x16xf32>
    %475 = arith.select %472, %474, %437 : vector<32x16xi1>, vector<32x16xf32>
    %c9_i32_130 = arith.constant 9 : i32
    %476 = vector.broadcast %c9_i32_130 : i32 to vector<1x16xi32>
    %477 = arith.cmpi sge, %103, %476 : vector<1x16xi32>
    %478 = vector.broadcast %457 : vector<32x1xf32> to vector<32x16xf32>
    %479 = arith.mulf %455, %478 : vector<32x16xf32>
    %cst_131 = arith.constant 0.000000e+00 : f32
    %480 = vector.shape_cast %477 : vector<1x16xi1> to vector<1x16xi1>
    %481 = vector.broadcast %480 : vector<1x16xi1> to vector<32x16xi1>
    %482 = vector.broadcast %cst_131 : f32 to vector<32x16xf32>
    %483 = arith.select %481, %479, %482 : vector<32x16xi1>, vector<32x16xf32>
    %484 = vector.broadcast %468 : vector<32x1xf32> to vector<32x16xf32>
    %485 = arith.mulf %484, %483 : vector<32x16xf32>
    %486 = arith.subf %448, %485 : vector<32x16xf32>
    %c10_i32 = arith.constant 10 : i32
    %487 = vector.broadcast %c10_i32 : i32 to vector<32x1xi32>
    %488 = arith.cmpi eq, %102, %487 : vector<32x1xi32>
    %cst_132 = arith.constant 0.000000e+00 : f32
    %489 = vector.shape_cast %488 : vector<32x1xi1> to vector<32x1xi1>
    %490 = vector.broadcast %489 : vector<32x1xi1> to vector<32x16xi1>
    %491 = vector.broadcast %cst_132 : f32 to vector<32x16xf32>
    %492 = arith.select %490, %486, %491 : vector<32x16xi1>, vector<32x16xf32>
    %cst_133 = arith.constant dense<0.000000e+00> : vector<32x16xf32>
    %493 = tpu.matmul %104, %492, %cst_133 {dimension_numbers = #tpu.dot_dimension_numbers<[1], [0], [0], [1], [0, 0, 1, 1], [], []>} : vector<32x32xf32>, vector<32x16xf32>, vector<32x16xf32> -> vector<32x16xf32>
    %494 = vector.extract_strided_slice %493 {offsets = [0, 10], sizes = [32, 1], strides = [1, 1]} : vector<32x16xf32> to vector<32x1xf32>
    %495 = math.rsqrt %494 : vector<32x1xf32>
    %c10_i32_134 = arith.constant 10 : i32
    %496 = vector.broadcast %c10_i32_134 : i32 to vector<32x1xi32>
    %497 = arith.cmpi eq, %102, %496 : vector<32x1xi32>
    %cst_135 = arith.constant 0.000000e+00 : f32
    %498 = vector.broadcast %cst_135 : f32 to vector<32x1xf32>
    %499 = arith.select %497, %494, %498 : vector<32x1xi1>, vector<32x1xf32>
    %500 = arith.addf %462, %499 : vector<32x1xf32>
    %c10_i32_136 = arith.constant 10 : i32
    %501 = vector.broadcast %c10_i32_136 : i32 to vector<32x1xi32>
    %502 = arith.cmpi sge, %102, %501 : vector<32x1xi32>
    %503 = vector.extract_strided_slice %486 {offsets = [0, 10], sizes = [32, 1], strides = [1, 1]} : vector<32x16xf32> to vector<32x1xf32>
    %504 = arith.mulf %503, %495 : vector<32x1xf32>
    %cst_137 = arith.constant 0.000000e+00 : f32
    %505 = vector.broadcast %cst_137 : f32 to vector<32x1xf32>
    %506 = arith.select %502, %504, %505 : vector<32x1xi1>, vector<32x1xf32>
    %c10_i32_138 = arith.constant 10 : i32
    %507 = vector.broadcast %c10_i32_138 : i32 to vector<1x16xi32>
    %508 = arith.cmpi eq, %103, %507 : vector<1x16xi32>
    %509 = vector.shape_cast %508 : vector<1x16xi1> to vector<1x16xi1>
    %510 = vector.broadcast %509 : vector<1x16xi1> to vector<32x16xi1>
    %511 = vector.shape_cast %506 : vector<32x1xf32> to vector<32x1xf32>
    %512 = vector.broadcast %511 : vector<32x1xf32> to vector<32x16xf32>
    %513 = arith.select %510, %512, %475 : vector<32x16xi1>, vector<32x16xf32>
    %c10_i32_139 = arith.constant 10 : i32
    %514 = vector.broadcast %c10_i32_139 : i32 to vector<1x16xi32>
    %515 = arith.cmpi sge, %103, %514 : vector<1x16xi32>
    %516 = vector.broadcast %495 : vector<32x1xf32> to vector<32x16xf32>
    %517 = arith.mulf %493, %516 : vector<32x16xf32>
    %cst_140 = arith.constant 0.000000e+00 : f32
    %518 = vector.shape_cast %515 : vector<1x16xi1> to vector<1x16xi1>
    %519 = vector.broadcast %518 : vector<1x16xi1> to vector<32x16xi1>
    %520 = vector.broadcast %cst_140 : f32 to vector<32x16xf32>
    %521 = arith.select %519, %517, %520 : vector<32x16xi1>, vector<32x16xf32>
    %522 = vector.broadcast %506 : vector<32x1xf32> to vector<32x16xf32>
    %523 = arith.mulf %522, %521 : vector<32x16xf32>
    %524 = arith.subf %486, %523 : vector<32x16xf32>
    %c11_i32 = arith.constant 11 : i32
    %525 = vector.broadcast %c11_i32 : i32 to vector<32x1xi32>
    %526 = arith.cmpi eq, %102, %525 : vector<32x1xi32>
    %cst_141 = arith.constant 0.000000e+00 : f32
    %527 = vector.shape_cast %526 : vector<32x1xi1> to vector<32x1xi1>
    %528 = vector.broadcast %527 : vector<32x1xi1> to vector<32x16xi1>
    %529 = vector.broadcast %cst_141 : f32 to vector<32x16xf32>
    %530 = arith.select %528, %524, %529 : vector<32x16xi1>, vector<32x16xf32>
    %cst_142 = arith.constant dense<0.000000e+00> : vector<32x16xf32>
    %531 = tpu.matmul %104, %530, %cst_142 {dimension_numbers = #tpu.dot_dimension_numbers<[1], [0], [0], [1], [0, 0, 1, 1], [], []>} : vector<32x32xf32>, vector<32x16xf32>, vector<32x16xf32> -> vector<32x16xf32>
    %532 = vector.extract_strided_slice %531 {offsets = [0, 11], sizes = [32, 1], strides = [1, 1]} : vector<32x16xf32> to vector<32x1xf32>
    %533 = math.rsqrt %532 : vector<32x1xf32>
    %c11_i32_143 = arith.constant 11 : i32
    %534 = vector.broadcast %c11_i32_143 : i32 to vector<32x1xi32>
    %535 = arith.cmpi eq, %102, %534 : vector<32x1xi32>
    %cst_144 = arith.constant 0.000000e+00 : f32
    %536 = vector.broadcast %cst_144 : f32 to vector<32x1xf32>
    %537 = arith.select %535, %532, %536 : vector<32x1xi1>, vector<32x1xf32>
    %538 = arith.addf %500, %537 : vector<32x1xf32>
    %c11_i32_145 = arith.constant 11 : i32
    %539 = vector.broadcast %c11_i32_145 : i32 to vector<32x1xi32>
    %540 = arith.cmpi sge, %102, %539 : vector<32x1xi32>
    %541 = vector.extract_strided_slice %524 {offsets = [0, 11], sizes = [32, 1], strides = [1, 1]} : vector<32x16xf32> to vector<32x1xf32>
    %542 = arith.mulf %541, %533 : vector<32x1xf32>
    %cst_146 = arith.constant 0.000000e+00 : f32
    %543 = vector.broadcast %cst_146 : f32 to vector<32x1xf32>
    %544 = arith.select %540, %542, %543 : vector<32x1xi1>, vector<32x1xf32>
    %c11_i32_147 = arith.constant 11 : i32
    %545 = vector.broadcast %c11_i32_147 : i32 to vector<1x16xi32>
    %546 = arith.cmpi eq, %103, %545 : vector<1x16xi32>
    %547 = vector.shape_cast %546 : vector<1x16xi1> to vector<1x16xi1>
    %548 = vector.broadcast %547 : vector<1x16xi1> to vector<32x16xi1>
    %549 = vector.shape_cast %544 : vector<32x1xf32> to vector<32x1xf32>
    %550 = vector.broadcast %549 : vector<32x1xf32> to vector<32x16xf32>
    %551 = arith.select %548, %550, %513 : vector<32x16xi1>, vector<32x16xf32>
    %c11_i32_148 = arith.constant 11 : i32
    %552 = vector.broadcast %c11_i32_148 : i32 to vector<1x16xi32>
    %553 = arith.cmpi sge, %103, %552 : vector<1x16xi32>
    %554 = vector.broadcast %533 : vector<32x1xf32> to vector<32x16xf32>
    %555 = arith.mulf %531, %554 : vector<32x16xf32>
    %cst_149 = arith.constant 0.000000e+00 : f32
    %556 = vector.shape_cast %553 : vector<1x16xi1> to vector<1x16xi1>
    %557 = vector.broadcast %556 : vector<1x16xi1> to vector<32x16xi1>
    %558 = vector.broadcast %cst_149 : f32 to vector<32x16xf32>
    %559 = arith.select %557, %555, %558 : vector<32x16xi1>, vector<32x16xf32>
    %560 = vector.broadcast %544 : vector<32x1xf32> to vector<32x16xf32>
    %561 = arith.mulf %560, %559 : vector<32x16xf32>
    %562 = arith.subf %524, %561 : vector<32x16xf32>
    %c12_i32 = arith.constant 12 : i32
    %563 = vector.broadcast %c12_i32 : i32 to vector<32x1xi32>
    %564 = arith.cmpi eq, %102, %563 : vector<32x1xi32>
    %cst_150 = arith.constant 0.000000e+00 : f32
    %565 = vector.shape_cast %564 : vector<32x1xi1> to vector<32x1xi1>
    %566 = vector.broadcast %565 : vector<32x1xi1> to vector<32x16xi1>
    %567 = vector.broadcast %cst_150 : f32 to vector<32x16xf32>
    %568 = arith.select %566, %562, %567 : vector<32x16xi1>, vector<32x16xf32>
    %cst_151 = arith.constant dense<0.000000e+00> : vector<32x16xf32>
    %569 = tpu.matmul %104, %568, %cst_151 {dimension_numbers = #tpu.dot_dimension_numbers<[1], [0], [0], [1], [0, 0, 1, 1], [], []>} : vector<32x32xf32>, vector<32x16xf32>, vector<32x16xf32> -> vector<32x16xf32>
    %570 = vector.extract_strided_slice %569 {offsets = [0, 12], sizes = [32, 1], strides = [1, 1]} : vector<32x16xf32> to vector<32x1xf32>
    %571 = math.rsqrt %570 : vector<32x1xf32>
    %c12_i32_152 = arith.constant 12 : i32
    %572 = vector.broadcast %c12_i32_152 : i32 to vector<32x1xi32>
    %573 = arith.cmpi eq, %102, %572 : vector<32x1xi32>
    %cst_153 = arith.constant 0.000000e+00 : f32
    %574 = vector.broadcast %cst_153 : f32 to vector<32x1xf32>
    %575 = arith.select %573, %570, %574 : vector<32x1xi1>, vector<32x1xf32>
    %576 = arith.addf %538, %575 : vector<32x1xf32>
    %c12_i32_154 = arith.constant 12 : i32
    %577 = vector.broadcast %c12_i32_154 : i32 to vector<32x1xi32>
    %578 = arith.cmpi sge, %102, %577 : vector<32x1xi32>
    %579 = vector.extract_strided_slice %562 {offsets = [0, 12], sizes = [32, 1], strides = [1, 1]} : vector<32x16xf32> to vector<32x1xf32>
    %580 = arith.mulf %579, %571 : vector<32x1xf32>
    %cst_155 = arith.constant 0.000000e+00 : f32
    %581 = vector.broadcast %cst_155 : f32 to vector<32x1xf32>
    %582 = arith.select %578, %580, %581 : vector<32x1xi1>, vector<32x1xf32>
    %c12_i32_156 = arith.constant 12 : i32
    %583 = vector.broadcast %c12_i32_156 : i32 to vector<1x16xi32>
    %584 = arith.cmpi eq, %103, %583 : vector<1x16xi32>
    %585 = vector.shape_cast %584 : vector<1x16xi1> to vector<1x16xi1>
    %586 = vector.broadcast %585 : vector<1x16xi1> to vector<32x16xi1>
    %587 = vector.shape_cast %582 : vector<32x1xf32> to vector<32x1xf32>
    %588 = vector.broadcast %587 : vector<32x1xf32> to vector<32x16xf32>
    %589 = arith.select %586, %588, %551 : vector<32x16xi1>, vector<32x16xf32>
    %c12_i32_157 = arith.constant 12 : i32
    %590 = vector.broadcast %c12_i32_157 : i32 to vector<1x16xi32>
    %591 = arith.cmpi sge, %103, %590 : vector<1x16xi32>
    %592 = vector.broadcast %571 : vector<32x1xf32> to vector<32x16xf32>
    %593 = arith.mulf %569, %592 : vector<32x16xf32>
    %cst_158 = arith.constant 0.000000e+00 : f32
    %594 = vector.shape_cast %591 : vector<1x16xi1> to vector<1x16xi1>
    %595 = vector.broadcast %594 : vector<1x16xi1> to vector<32x16xi1>
    %596 = vector.broadcast %cst_158 : f32 to vector<32x16xf32>
    %597 = arith.select %595, %593, %596 : vector<32x16xi1>, vector<32x16xf32>
    %598 = vector.broadcast %582 : vector<32x1xf32> to vector<32x16xf32>
    %599 = arith.mulf %598, %597 : vector<32x16xf32>
    %600 = arith.subf %562, %599 : vector<32x16xf32>
    %c13_i32 = arith.constant 13 : i32
    %601 = vector.broadcast %c13_i32 : i32 to vector<32x1xi32>
    %602 = arith.cmpi eq, %102, %601 : vector<32x1xi32>
    %cst_159 = arith.constant 0.000000e+00 : f32
    %603 = vector.shape_cast %602 : vector<32x1xi1> to vector<32x1xi1>
    %604 = vector.broadcast %603 : vector<32x1xi1> to vector<32x16xi1>
    %605 = vector.broadcast %cst_159 : f32 to vector<32x16xf32>
    %606 = arith.select %604, %600, %605 : vector<32x16xi1>, vector<32x16xf32>
    %cst_160 = arith.constant dense<0.000000e+00> : vector<32x16xf32>
    %607 = tpu.matmul %104, %606, %cst_160 {dimension_numbers = #tpu.dot_dimension_numbers<[1], [0], [0], [1], [0, 0, 1, 1], [], []>} : vector<32x32xf32>, vector<32x16xf32>, vector<32x16xf32> -> vector<32x16xf32>
    %608 = vector.extract_strided_slice %607 {offsets = [0, 13], sizes = [32, 1], strides = [1, 1]} : vector<32x16xf32> to vector<32x1xf32>
    %609 = math.rsqrt %608 : vector<32x1xf32>
    %c13_i32_161 = arith.constant 13 : i32
    %610 = vector.broadcast %c13_i32_161 : i32 to vector<32x1xi32>
    %611 = arith.cmpi eq, %102, %610 : vector<32x1xi32>
    %cst_162 = arith.constant 0.000000e+00 : f32
    %612 = vector.broadcast %cst_162 : f32 to vector<32x1xf32>
    %613 = arith.select %611, %608, %612 : vector<32x1xi1>, vector<32x1xf32>
    %614 = arith.addf %576, %613 : vector<32x1xf32>
    %c13_i32_163 = arith.constant 13 : i32
    %615 = vector.broadcast %c13_i32_163 : i32 to vector<32x1xi32>
    %616 = arith.cmpi sge, %102, %615 : vector<32x1xi32>
    %617 = vector.extract_strided_slice %600 {offsets = [0, 13], sizes = [32, 1], strides = [1, 1]} : vector<32x16xf32> to vector<32x1xf32>
    %618 = arith.mulf %617, %609 : vector<32x1xf32>
    %cst_164 = arith.constant 0.000000e+00 : f32
    %619 = vector.broadcast %cst_164 : f32 to vector<32x1xf32>
    %620 = arith.select %616, %618, %619 : vector<32x1xi1>, vector<32x1xf32>
    %c13_i32_165 = arith.constant 13 : i32
    %621 = vector.broadcast %c13_i32_165 : i32 to vector<1x16xi32>
    %622 = arith.cmpi eq, %103, %621 : vector<1x16xi32>
    %623 = vector.shape_cast %622 : vector<1x16xi1> to vector<1x16xi1>
    %624 = vector.broadcast %623 : vector<1x16xi1> to vector<32x16xi1>
    %625 = vector.shape_cast %620 : vector<32x1xf32> to vector<32x1xf32>
    %626 = vector.broadcast %625 : vector<32x1xf32> to vector<32x16xf32>
    %627 = arith.select %624, %626, %589 : vector<32x16xi1>, vector<32x16xf32>
    %c13_i32_166 = arith.constant 13 : i32
    %628 = vector.broadcast %c13_i32_166 : i32 to vector<1x16xi32>
    %629 = arith.cmpi sge, %103, %628 : vector<1x16xi32>
    %630 = vector.broadcast %609 : vector<32x1xf32> to vector<32x16xf32>
    %631 = arith.mulf %607, %630 : vector<32x16xf32>
    %cst_167 = arith.constant 0.000000e+00 : f32
    %632 = vector.shape_cast %629 : vector<1x16xi1> to vector<1x16xi1>
    %633 = vector.broadcast %632 : vector<1x16xi1> to vector<32x16xi1>
    %634 = vector.broadcast %cst_167 : f32 to vector<32x16xf32>
    %635 = arith.select %633, %631, %634 : vector<32x16xi1>, vector<32x16xf32>
    %636 = vector.broadcast %620 : vector<32x1xf32> to vector<32x16xf32>
    %637 = arith.mulf %636, %635 : vector<32x16xf32>
    %638 = arith.subf %600, %637 : vector<32x16xf32>
    %c14_i32 = arith.constant 14 : i32
    %639 = vector.broadcast %c14_i32 : i32 to vector<32x1xi32>
    %640 = arith.cmpi eq, %102, %639 : vector<32x1xi32>
    %cst_168 = arith.constant 0.000000e+00 : f32
    %641 = vector.shape_cast %640 : vector<32x1xi1> to vector<32x1xi1>
    %642 = vector.broadcast %641 : vector<32x1xi1> to vector<32x16xi1>
    %643 = vector.broadcast %cst_168 : f32 to vector<32x16xf32>
    %644 = arith.select %642, %638, %643 : vector<32x16xi1>, vector<32x16xf32>
    %cst_169 = arith.constant dense<0.000000e+00> : vector<32x16xf32>
    %645 = tpu.matmul %104, %644, %cst_169 {dimension_numbers = #tpu.dot_dimension_numbers<[1], [0], [0], [1], [0, 0, 1, 1], [], []>} : vector<32x32xf32>, vector<32x16xf32>, vector<32x16xf32> -> vector<32x16xf32>
    %646 = vector.extract_strided_slice %645 {offsets = [0, 14], sizes = [32, 1], strides = [1, 1]} : vector<32x16xf32> to vector<32x1xf32>
    %647 = math.rsqrt %646 : vector<32x1xf32>
    %c14_i32_170 = arith.constant 14 : i32
    %648 = vector.broadcast %c14_i32_170 : i32 to vector<32x1xi32>
    %649 = arith.cmpi eq, %102, %648 : vector<32x1xi32>
    %cst_171 = arith.constant 0.000000e+00 : f32
    %650 = vector.broadcast %cst_171 : f32 to vector<32x1xf32>
    %651 = arith.select %649, %646, %650 : vector<32x1xi1>, vector<32x1xf32>
    %652 = arith.addf %614, %651 : vector<32x1xf32>
    %c14_i32_172 = arith.constant 14 : i32
    %653 = vector.broadcast %c14_i32_172 : i32 to vector<32x1xi32>
    %654 = arith.cmpi sge, %102, %653 : vector<32x1xi32>
    %655 = vector.extract_strided_slice %638 {offsets = [0, 14], sizes = [32, 1], strides = [1, 1]} : vector<32x16xf32> to vector<32x1xf32>
    %656 = arith.mulf %655, %647 : vector<32x1xf32>
    %cst_173 = arith.constant 0.000000e+00 : f32
    %657 = vector.broadcast %cst_173 : f32 to vector<32x1xf32>
    %658 = arith.select %654, %656, %657 : vector<32x1xi1>, vector<32x1xf32>
    %c14_i32_174 = arith.constant 14 : i32
    %659 = vector.broadcast %c14_i32_174 : i32 to vector<1x16xi32>
    %660 = arith.cmpi eq, %103, %659 : vector<1x16xi32>
    %661 = vector.shape_cast %660 : vector<1x16xi1> to vector<1x16xi1>
    %662 = vector.broadcast %661 : vector<1x16xi1> to vector<32x16xi1>
    %663 = vector.shape_cast %658 : vector<32x1xf32> to vector<32x1xf32>
    %664 = vector.broadcast %663 : vector<32x1xf32> to vector<32x16xf32>
    %665 = arith.select %662, %664, %627 : vector<32x16xi1>, vector<32x16xf32>
    %c14_i32_175 = arith.constant 14 : i32
    %666 = vector.broadcast %c14_i32_175 : i32 to vector<1x16xi32>
    %667 = arith.cmpi sge, %103, %666 : vector<1x16xi32>
    %668 = vector.broadcast %647 : vector<32x1xf32> to vector<32x16xf32>
    %669 = arith.mulf %645, %668 : vector<32x16xf32>
    %cst_176 = arith.constant 0.000000e+00 : f32
    %670 = vector.shape_cast %667 : vector<1x16xi1> to vector<1x16xi1>
    %671 = vector.broadcast %670 : vector<1x16xi1> to vector<32x16xi1>
    %672 = vector.broadcast %cst_176 : f32 to vector<32x16xf32>
    %673 = arith.select %671, %669, %672 : vector<32x16xi1>, vector<32x16xf32>
    %674 = vector.broadcast %658 : vector<32x1xf32> to vector<32x16xf32>
    %675 = arith.mulf %674, %673 : vector<32x16xf32>
    %676 = arith.subf %638, %675 : vector<32x16xf32>
    %c15_i32 = arith.constant 15 : i32
    %677 = vector.broadcast %c15_i32 : i32 to vector<32x1xi32>
    %678 = arith.cmpi eq, %102, %677 : vector<32x1xi32>
    %cst_177 = arith.constant 0.000000e+00 : f32
    %679 = vector.shape_cast %678 : vector<32x1xi1> to vector<32x1xi1>
    %680 = vector.broadcast %679 : vector<32x1xi1> to vector<32x16xi1>
    %681 = vector.broadcast %cst_177 : f32 to vector<32x16xf32>
    %682 = arith.select %680, %676, %681 : vector<32x16xi1>, vector<32x16xf32>
    %cst_178 = arith.constant dense<0.000000e+00> : vector<32x16xf32>
    %683 = tpu.matmul %104, %682, %cst_178 {dimension_numbers = #tpu.dot_dimension_numbers<[1], [0], [0], [1], [0, 0, 1, 1], [], []>} : vector<32x32xf32>, vector<32x16xf32>, vector<32x16xf32> -> vector<32x16xf32>
    %684 = vector.extract_strided_slice %683 {offsets = [0, 15], sizes = [32, 1], strides = [1, 1]} : vector<32x16xf32> to vector<32x1xf32>
    %685 = math.rsqrt %684 : vector<32x1xf32>
    %c15_i32_179 = arith.constant 15 : i32
    %686 = vector.broadcast %c15_i32_179 : i32 to vector<32x1xi32>
    %687 = arith.cmpi eq, %102, %686 : vector<32x1xi32>
    %cst_180 = arith.constant 0.000000e+00 : f32
    %688 = vector.broadcast %cst_180 : f32 to vector<32x1xf32>
    %689 = arith.select %687, %684, %688 : vector<32x1xi1>, vector<32x1xf32>
    %690 = arith.addf %652, %689 : vector<32x1xf32>
    %c15_i32_181 = arith.constant 15 : i32
    %691 = vector.broadcast %c15_i32_181 : i32 to vector<32x1xi32>
    %692 = arith.cmpi sge, %102, %691 : vector<32x1xi32>
    %693 = vector.extract_strided_slice %676 {offsets = [0, 15], sizes = [32, 1], strides = [1, 1]} : vector<32x16xf32> to vector<32x1xf32>
    %694 = arith.mulf %693, %685 : vector<32x1xf32>
    %cst_182 = arith.constant 0.000000e+00 : f32
    %695 = vector.broadcast %cst_182 : f32 to vector<32x1xf32>
    %696 = arith.select %692, %694, %695 : vector<32x1xi1>, vector<32x1xf32>
    %c15_i32_183 = arith.constant 15 : i32
    %697 = vector.broadcast %c15_i32_183 : i32 to vector<1x16xi32>
    %698 = arith.cmpi eq, %103, %697 : vector<1x16xi32>
    %699 = vector.shape_cast %698 : vector<1x16xi1> to vector<1x16xi1>
    %700 = vector.broadcast %699 : vector<1x16xi1> to vector<32x16xi1>
    %701 = vector.shape_cast %696 : vector<32x1xf32> to vector<32x1xf32>
    %702 = vector.broadcast %701 : vector<32x1xf32> to vector<32x16xf32>
    %703 = arith.select %700, %702, %665 : vector<32x16xi1>, vector<32x16xf32>
    %704 = math.log %690 : vector<32x1xf32>
    %cst_184 = arith.constant 5.000000e-01 : f32
    %705 = vector.broadcast %cst_184 : f32 to vector<32x1xf32>
    %706 = arith.mulf %705, %704 : vector<32x1xf32>
    %707 = vector.broadcast %103 : vector<1x16xi32> to vector<32x16xi32>
    %708 = vector.broadcast %102 : vector<32x1xi32> to vector<32x16xi32>
    %709 = arith.cmpi eq, %707, %708 : vector<32x16xi32>
    %710 = vector.shape_cast %706 : vector<32x1xf32> to vector<32x1xf32>
    %711 = vector.broadcast %710 : vector<32x1xf32> to vector<32x16xf32>
    %712 = arith.select %709, %711, %703 : vector<32x16xi1>, vector<32x16xf32>
    %c0_185 = arith.constant 0 : index
    %c0_186 = arith.constant 0 : index
    %713 = vector.load %arg7[%c0_185, %c0_186] : memref<16x64xf32, #tpu.memory_space<vmem>>, vector<16x64xf32>
    %cst_187 = arith.constant dense<0.000000e+00> : vector<32x64xf32>
    %714 = tpu.matmul %712, %713, %cst_187 {dimension_numbers = #tpu.dot_dimension_numbers<[1], [0], [0], [1], [0, 0, 1, 1], [], []>} : vector<32x16xf32>, vector<16x64xf32>, vector<32x64xf32> -> vector<32x64xf32>
    %715 = tpu.iota {dimensions = array<i32: 1>} : vector<1x64xi32>
    %c16_i32_188 = arith.constant 16 : i32
    %c0_i32_189 = arith.constant 0 : i32
    %716 = arith.cmpi eq, %c16_i32_188, %c0_i32_189 : i32
    %c1_i32_190 = arith.constant 1 : i32
    %717 = arith.select %716, %c1_i32_190, %c16_i32_188 : i32
    %718 = vector.broadcast %717 : i32 to vector<1x64xi32>
    %719 = arith.remsi %715, %718 : vector<1x64xi32>
    %c0_i32_191 = arith.constant 0 : i32
    %720 = vector.broadcast %c0_i32_191 : i32 to vector<1x64xi32>
    %721 = arith.cmpi ne, %719, %720 : vector<1x64xi32>
    %c0_i32_192 = arith.constant 0 : i32
    %722 = vector.broadcast %c0_i32_192 : i32 to vector<1x64xi32>
    %723 = arith.cmpi slt, %719, %722 : vector<1x64xi32>
    %c0_i32_193 = arith.constant 0 : i32
    %724 = arith.cmpi slt, %717, %c0_i32_193 : i32
    %725 = vector.broadcast %724 : i1 to vector<1x64xi1>
    %726 = vector.broadcast %725 : vector<1x64xi1> to vector<1x64xi1>
    %727 = arith.xori %723, %726 : vector<1x64xi1>
    %728 = arith.andi %727, %721 : vector<1x64xi1>
    %729 = vector.broadcast %717 : i32 to vector<1x64xi32>
    %730 = arith.addi %719, %729 : vector<1x64xi32>
    %731 = arith.select %728, %730, %719 : vector<1x64xi1>, vector<1x64xi32>
    %732 = vector.broadcast %102 : vector<32x1xi32> to vector<32x64xi32>
    %733 = vector.broadcast %731 : vector<1x64xi32> to vector<32x64xi32>
    %734 = arith.cmpi eq, %732, %733 : vector<32x64xi32>
    %cst_194 = arith.constant 0.000000e+00 : f32
    %735 = vector.broadcast %cst_194 : f32 to vector<32x64xf32>
    %736 = arith.select %734, %714, %735 : vector<32x64xi1>, vector<32x64xf32>
    %c0_195 = arith.constant 0 : index
    %c0_196 = arith.constant 0 : index
    %737 = vector.load %arg8[%c0_195, %c0_196] : memref<64x4xf32, #tpu.memory_space<vmem>>, vector<64x4xf32>
    %cst_197 = arith.constant dense<0.000000e+00> : vector<32x4xf32>
    %738 = tpu.matmul %736, %737, %cst_197 {dimension_numbers = #tpu.dot_dimension_numbers<[1], [0], [0], [1], [0, 0, 1, 1], [], []>} : vector<32x64xf32>, vector<64x4xf32>, vector<32x4xf32> -> vector<32x4xf32>
    %c0_198 = arith.constant 0 : index
    %c0_199 = arith.constant 0 : index
    %739 = vector.load %arg9[%c0_198, %c0_199] : memref<2x32xf32, #tpu.memory_space<vmem>>, vector<2x32xf32>
    %cst_200 = arith.constant dense<0.000000e+00> : vector<2x4xf32>
    %740 = tpu.matmul %739, %738, %cst_200 {dimension_numbers = #tpu.dot_dimension_numbers<[1], [0], [0], [1], [0, 0, 1, 1], [], []>} : vector<2x32xf32>, vector<32x4xf32>, vector<2x4xf32> -> vector<2x4xf32>
    %c0_201 = arith.constant 0 : index
    %c0_202 = arith.constant 0 : index
    %741 = vector.load %arg10[%c0_201, %c0_202] : memref<1x4xf32, #tpu.memory_space<vmem>>, vector<1x4xf32>
    %742 = vector.broadcast %741 : vector<1x4xf32> to vector<2x4xf32>
    %743 = arith.addf %740, %742 : vector<2x4xf32>
    %c0_203 = arith.constant 0 : index
    %c0_204 = arith.constant 0 : index
    %744 = vector.load %arg11[%c0_203, %c0_204] : memref<2x4xf32, #tpu.memory_space<vmem>>, vector<2x4xf32>
    tpu.vector_store %arg11[%c0_203, %c0_204], %743 {strides = array<i32>} : memref<2x4xf32, #tpu.memory_space<vmem>>, vector<2x4xf32>,
    return
  }
  func.func @transform_0(%arg0: i32) -> (i32, i32) {
    %c0_i32 = arith.constant 0 : i32
    %c0_i32_0 = arith.constant 0 : i32
    %c0_i32_1 = arith.constant 0 : i32
    return %c0_i32, %c0_i32_0 : i32, i32
  }
  func.func @transform_1(%arg0: i32) -> (i32, i32) {
    %c0_i32 = arith.constant 0 : i32
    %c0_i32_0 = arith.constant 0 : i32
    %c0_i32_1 = arith.constant 0 : i32
    return %c0_i32, %c0_i32_0 : i32, i32
  }
  func.func @transform_2(%arg0: i32) -> (i32, i32) {
    %c0_i32 = arith.constant 0 : i32
    %c0_i32_0 = arith.constant 0 : i32
    %c0_i32_1 = arith.constant 0 : i32
    return %c0_i32, %c0_i32_0 : i32, i32
  }
  func.func @transform_3(%arg0: i32) -> (i32, i32) {
    %c0_i32 = arith.constant 0 : i32
    %c0_i32_0 = arith.constant 0 : i32
    %c0_i32_1 = arith.constant 0 : i32
    return %c0_i32, %c0_i32_0 : i32, i32
  }
  func.func @transform_4(%arg0: i32) -> (i32, i32) {
    %c0_i32 = arith.constant 0 : i32
    %c0_i32_0 = arith.constant 0 : i32
    %c0_i32_1 = arith.constant 0 : i32
    return %c0_i32, %c0_i32_0 : i32, i32
  }
  func.func @transform_5(%arg0: i32) -> (i32, i32) {
    %c0_i32 = arith.constant 0 : i32
    %c0_i32_0 = arith.constant 0 : i32
    %c0_i32_1 = arith.constant 0 : i32
    return %c0_i32, %c0_i32_0 : i32, i32
  }
  func.func @transform_6(%arg0: i32) -> (i32, i32) {
    %c0_i32 = arith.constant 0 : i32
    %c0_i32_0 = arith.constant 0 : i32
    %c0_i32_1 = arith.constant 0 : i32
    return %c0_i32, %c0_i32_0 : i32, i32
  }
  func.func @transform_7(%arg0: i32) -> (i32, i32) {
    %c0_i32 = arith.constant 0 : i32
    %c0_i32_0 = arith.constant 0 : i32
    %c0_i32_1 = arith.constant 0 : i32
    return %c0_i32, %c0_i32_0 : i32, i32
  }
  func.func @transform_8(%arg0: i32) -> (i32, i32) {
    %c0_i32 = arith.constant 0 : i32
    %c0_i32_0 = arith.constant 0 : i32
    %c0_i32_1 = arith.constant 0 : i32
    return %c0_i32, %c0_i32_0 : i32, i32
  }
  func.func @transform_9(%arg0: i32) -> (i32, i32) {
    %c0_i32 = arith.constant 0 : i32
    %c0_i32_0 = arith.constant 0 : i32
    %c0_i32_1 = arith.constant 0 : i32
    return %c0_i32, %c0_i32_0 : i32, i32
  }
  func.func @transform_10(%arg0: i32) -> (i32, i32) {
    %c0_i32 = arith.constant 0 : i32
    %c0_i32_0 = arith.constant 0 : i32
    %c0_i32_1 = arith.constant 0 : i32
    return %c0_i32, %c0_i32_0 : i32, i32
  }
}

</mosaic_0001>

<bundles_post_ra>
// kernel: tpu_custom_call.1
= control target key start
LH: loop header
LB: loop body
LE: loop exit
PB: predicated region body
PF: predicated region fallthrough
CT: control target
= control target key end

     0   :  { %vm68_vm0 = vcmask 261120   ;;  %v6941_v3 = vmov 0   ;;  %s6924_s0 = inlined_call_operand.vmem [shape: f32[32,128], index: 0, kind: input, shape index: {}]   ;;  %s6925_s1 = inlined_call_operand.vmem [shape: f32[32,32], index: 1, kind: input, shape index: {}]   ;;  %s6926_s2 = inlined_call_operand.vmem [shape: f32[32,1], index: 2, kind: input, shape index: {}]   ;;  %s6927_s3 = inlined_call_operand.vmem [shape: f32[32,7], index: 3, kind: input, shape index: {}]   ;;  %s6928_s4 = inlined_call_operand.vmem [shape: f32[32,1], index: 4, kind: input, shape index: {}]   ;;  %s6929_s5 = inlined_call_operand.vmem [shape: f32[32,32], index: 5, kind: input, shape index: {}]   ;;  %s6930_s6 = inlined_call_operand.vmem [shape: f32[16,64], index: 6, kind: input, shape index: {}]   ;;  %s6931_s7 = inlined_call_operand.vmem [shape: f32[64,4], index: 7, kind: input, shape index: {}]   ;;  %s6932_s8 = inlined_call_operand.vmem [shape: f32[2,32], index: 8, kind: input, shape index: {}]   ;;  %s6933_s9 = inlined_call_operand.vmem [shape: f32[1,4], index: 9, kind: input, shape index: {}]   ;;  %s6934_s10 = inlined_call_operand.hbm [shape: f32[2,4], index: 10, kind: output, shape index: {}]  }
   0x1   :  { %v43_v0 = vld [vmem:[%s6924_s0 + $0x18] sm:$0xff]  ;;  %v42_v1 = vld [vmem:[%s6924_s0 + $0x10] sm:$0xff]  ;;  %v36_v2 = vld [vmem:[%s6925_s1] sm:$0xff]  ;;  %4878 = vset.pattern.permute.xlu1 %v6941_v3  ;;  %4877 = vset.pattern.permute.xlu0 %v6941_v3 }
   0x2   :  { %4561 = vmatprep.subr.mxu1 %v43_v0  ;;  %v41_v4 = vld [vmem:[%s6924_s0 + $0x8] sm:$0xff]  ;;  %4569 = vmatprep.mubr.msk.f32.mxu1 %vm68_vm0, %v36_v2  ;;  %v46_v5 = vld [vmem:[%s6926_s2 + $0x10] sm:$0xff]  ;;  %v40_v6 = vld [vmem:[%s6924_s0] sm:$0xff] }
   0x3   :  { %4562 = vmatpush3.msra.mxu1 %v43_v0  ;;  %60 = vperm.xlu1 %4878, %v46_v5   ;;  %v44_v7 = vld [vmem:[%s6926_s2] sm:$0xff]  ;;  %v47_v8 = vld [vmem:[%s6926_s2 + $0x18] sm:$0xff]  ;;  %v37_v9 = vld [vmem:[%s6925_s1 + $0x8] sm:$0xff] }
   0x4   :  { %4563 = vmatprep.subr.mxu1 %v42_v1  ;;  %65 = vperm.xlu0 %4877, %v47_v8  }
   0x5   :  { %4564 = vmatpush3.msra.mxu1 %v42_v1 }
   0x6   :  { %4565 = vmatprep.subr.mxu1 %v41_v4 }
   0x7   :  { %4566 = vmatpush3.msra.mxu1 %v41_v4 }
   0x8   :  { %15 = vsyncpa [#allocation3], 0  ;;  %4567 = vmatprep.subr.mxu1 %v40_v6  ;;  %v38_v10 = vld [vmem:[%s6925_s1 + $0x10] sm:$0xff]  ;;  %50 = vperm.xlu1 %4878, %v44_v7   ;;  %v45_v11 = vld [vmem:[%s6926_s2 + $0x8] sm:$0xff]  ;;  %v5233_v15 = vmov 3   ;;  %v5234_v19 = vmov 1  }
   0x9   :  { %4568 = vmatpush3.msra.mxu1 %v40_v6  ;;  %v199_v12 = vld [vmem:[%s6928_s4 + $0x18] sm:$0xff]  ;;  %55 = vperm.xlu0 %4877, %v45_v11   ;;  %v170_v16 = vld [vmem:[%s6927_s3 + $0x10] sm:$0xff]  ;;  %v169_v17 = vld [vmem:[%s6927_s3 + $0x8] sm:$0xff]  ;;  %v6948_v21 = vmov 4   ;;  %v5236_v22 = vmov 2   ;;  %v6943_v24 = vmov 5   ;;  %v166_v11 = vlaneseq }
   0xa   :  { %4570 = vmatmul.mubr.msk.f32.vlgmr.msra.gmra.mxu1 %vm68_vm0, %v37_v9  ;;  %v39_v13 = vld [vmem:[%s6925_s1 + $0x18] sm:$0xff]  ;;  %v197_v18 = vld [vmem:[%s6928_s4 + $0x8] sm:$0xff]  ;;  %v198_v20 = vld [vmem:[%s6928_s4 + $0x10] sm:$0xff]  ;;  %v6935_v25 = vmov 6   ;;  %s5240_s29 = smov 3   ;;  %s5241_s30 = smov 127  }
   0xb   :  { %4572 = vmatprep.mubr.msk.f32.mxu1 %vm68_vm0, %v38_v10  ;;  %v171_v14 = vld [vmem:[%s6927_s3 + $0x18] sm:$0xff]  ;;  %v5394_v23 = vld [vmem:[%s6927_s3] sm:$0xff]  ;;  %s5242_s0 = smov 1   ;;  %s5243_s11 = smov 126  }
   0xc   :  { %217 = vperm.xlu1 %4878, %v199_v12   ;;  %v196_v26 = vld [vmem:[%s6928_s4] sm:$0xff]  ;;  %s5239_s4 = smov 2   ;;  %s5244_s12 = smov 125  }
   0xd   :  { %4879 = vset.pattern.permute.xlu0 %v5233_v15  ;;  %s5255_s27 = smov 123   ;;  %s5256_s3 = smov 122  }
   0xe   :  { %4573 = vmatmul.mubr.msk.f32.gmra.mxu1 %vm68_vm0, %v39_v13  ;;  %189 = vperm.xlu0 %4879, %v171_v14   ;;  %s5257_s28 = smov 121   ;;  %s5264_s13 = smov 114  }
   0xf   :  { %s5265_s14 = smov 113  }
  0x10   :  { %252 = vperm.xlu1 %4878, %v171_v14  }
  0x12   :  { %179 = vperm.xlu0 %4879, %v169_v17  }
  0x14   :  { %4880 = vset.pattern.permute.xlu1 %v5233_v15 }
  0x15   :  { %184 = vperm.xlu1 %4880, %v170_v16  }
  0x16   :  { %4881 = vset.pattern.permute.xlu0 %v5234_v19 }
  0x17   :  { %291 = vperm.xlu0 %4881, %v171_v14  }
  0x19   :  { %4882 = vset.pattern.permute.xlu1 %v6941_v3 }
  0x1a   :  { %207 = vperm.xlu1 %4882, %v197_v18  }
  0x1b   :  { %287 = vperm.xlu0 %4881, %v170_v16  }
  0x1e   :  { %212 = vperm.xlu1 %4882, %v198_v20  }
  0x1f   :  { %4892 = vset.pattern.permute.xlu0 %v6948_v21 }
  0x20   :  { %365 = vperm.xlu0 %4892, %v170_v16  }
  0x22   :  { %244 = vperm.xlu1 %4882, %v169_v17  }
  0x24   :  { %4893 = vset.pattern.permute.xlu0 %v5236_v22 }
  0x25   :  { %326 = vperm.xlu0 %4893, %v170_v16  }
  0x26   :  { %4883 = vset.pattern.permute.xlu1 %v5236_v22 }
  0x27   :  { %330 = vperm.xlu1 %4883, %v171_v14  }
  0x29   :  { %318 = vperm.xlu0 %4893, %v5394_v23  }
  0x2b   :  { %4884 = vset.pattern.permute.xlu1 %v5233_v15 }
  0x2c   :  { %174 = vperm.xlu1 %4884, %v5394_v23  }
  0x2d   :  { %4896 = vset.pattern.permute.xlu0 %v6943_v24 }
  0x2e   :  { %404 = vperm.xlu0 %4896, %v170_v16  }
  0x30   :  { %4885 = vset.pattern.permute.xlu1 %v5234_v19 }
  0x31   :  { %283 = vperm.xlu1 %4885, %v169_v17  }
  0x32   :  { %4899 = vset.pattern.permute.xlu0 %v6935_v25 }
  0x33   :  { %443 = vperm.xlu0 %4899, %v170_v16  }
  0x35   :  { %4886 = vset.pattern.permute.xlu1 %v6948_v21 }
  0x36   :  { %369 = vperm.xlu1 %4886, %v171_v14  }
  0x37   :  { %4900 = vset.pattern.permute.xlu0 %v6941_v3 }
  0x38   :  { %248 = vperm.xlu0 %4900, %v170_v16  }
  0x3a   :  { %4887 = vset.pattern.permute.xlu1 %v6941_v3 }
  0x3b   :  { %202 = vperm.xlu1 %4887, %v196_v26  }
  0x3c   :  { %240 = vperm.xlu0 %4900, %v5394_v23  }
  0x3f   :  { %4888 = vset.pattern.permute.xlu1 %v5236_v22 }
  0x40   :  { %322 = vperm.xlu1 %4888, %v169_v17  }
  0x44   :  { %4889 = vset.pattern.permute.xlu1 %v6943_v24 }
  0x45   :  { %408 = vperm.xlu1 %4889, %v171_v14  }
  0x49   :  { %4890 = vset.pattern.permute.xlu1 %v5234_v19 }
  0x4a   :  { %279 = vperm.xlu1 %4890, %v5394_v23  }
  0x4e   :  { %4891 = vset.pattern.permute.xlu1 %v6948_v21 }
  0x4f   :  { %361 = vperm.xlu1 %4891, %v169_v17  }
  0x53   :  { %4894 = vset.pattern.permute.xlu1 %v6935_v25 }
  0x54   :  { %447 = vperm.xlu1 %4894, %v171_v14   ;;  %v5529_v14 = vand.u32 127, %v166_v11 }
  0x56   :  { %vm232_vm1 = vcmp.ge.s32.totalorder %v5529_v14, 3  ;;  %vm271_vm2 = vcmp.ge.s32.totalorder %v5529_v14, 2  ;;  %vm310_vm3 = vcmp.ge.s32.totalorder %v5529_v14, 1  ;;  %vm349_vm4 = vcmp.lt.s32.totalorder %v5529_v14, 127 }
  0x57   :  { %vm427_vm5 = vcmp.lt.s32.totalorder %v5529_v14, 125  ;;  %vm388_vm6 = vcmp.lt.s32.totalorder %v5529_v14, 126 }
  0x58   :  { %4895 = vset.pattern.permute.xlu1 %v6943_v24 }
  0x59   :  { %400 = vperm.xlu1 %4895, %v169_v17  }
  0x5d   :  { %4897 = vset.pattern.permute.xlu1 %v6948_v21 }
  0x5e   :  { %357 = vperm.xlu1 %4897, %v5394_v23  }
  0x62   :  { %4898 = vset.pattern.permute.xlu1 %v6935_v25 }
  0x63   :  { %439 = vperm.xlu1 %4898, %v169_v17  }
  0x67   :  { %4901 = vset.pattern.permute.xlu1 %v6943_v24 }
  0x68   :  { %396 = vperm.xlu1 %4901, %v5394_v23  }
  0x6c   :  { %4902 = vset.pattern.permute.xlu1 %v6935_v25 }
  0x7e   :  { %v61_v27 = vpop.permute.xlu1 %60 }
  0x7f   :  { %v66_v29 = vpop.permute.xlu0 %65 }
  0x83   :  { %v51_v28 = vpop.permute.xlu1 %50 }
  0x84   :  { %v56_v31 = vpop.permute.xlu0 %55 }
  0x87   :  { %v5422_v30 = vpop.permute.xlu1 %217 }
  0x89   :  { %v190_v48 = vpop.permute.xlu0 %189 }
  0x8b   :  { %v5430_v34 = vpop.permute.xlu1 %252 }
  0x8d   :  { %v180_v50 = vpop.permute.xlu0 %179 }
  0x90   :  { %v5437_v38 = vpop.permute.xlu1 %184 }
  0x92   :  { %v292_v52 = vpop.permute.xlu0 %291 }
  0x95   :  { %v5449_v40 = vpop.permute.xlu1 %207 }
  0x96   :  { %v5496_v54 = vpop.permute.xlu0 %287 }
  0x99   :  { %v5455_v41 = vpop.permute.xlu1 %212 }
  0x9b   :  { %v5500_v56 = vpop.permute.xlu0 %365 }
  0x9d   :  { %v245_v43 = vpop.permute.xlu1 %244 }
  0xa0   :  { %v5504_v58 = vpop.permute.xlu0 %326 }
  0xa2   :  { %v5469_v45 = vpop.permute.xlu1 %330 }
  0xa4   :  { %v5508_v60 = vpop.permute.xlu0 %318 }
  0xa7   :  { %v5478_v46 = vpop.permute.xlu1 %174 }
  0xa9   :  { %v5510_v62 = vpop.permute.xlu0 %404 }
  0xac   :  { %v5484_v47 = vpop.permute.xlu1 %283 }
  0xae   :  { %v5514_v0 = vpop.permute.xlu0 %443 }
  0xb1   :  { %v370_v49 = vpop.permute.xlu1 %369 }
  0xb3   :  { %v5518_v2 = vpop.permute.xlu0 %248 }
  0xb6   :  { %v5492_v51 = vpop.permute.xlu1 %202 }
  0xb7   :  { %v5522_v5 = vpop.permute.xlu0 %240 }
  0xbb   :  { %v5494_v53 = vpop.permute.xlu1 %322 }
  0xc0   :  { %v5498_v55 = vpop.permute.xlu1 %408 }
  0xc5   :  { %v5502_v57 = vpop.permute.xlu1 %279 }
  0xca   :  { %v4571_v32 = vpop.f32.mrf.mxu1  ;;  %v5506_v59 = vpop.permute.xlu1 %361 }
  0xcb   :  { %v5424_v33 = vadd.f32 %v4571_v32, %v56_v31 }
  0xcc   :  { %v147_v35 = vpop.f32.mrf.mxu1 }
  0xcd   :  { %265 = vrot.lane.b32.xlu1 %v5424_v33, %s5239_s4  ;;  %226 = vrot.lane.b32.xlu0 %v5424_v33, %s5240_s29  ;;  %v5435_v36 = vadd.f32 %v147_v35, %v51_v28  ;;  %v193_v28 = vmul.f32 %v180_v50, %v5424_v33 }
  0xce   :  { %v4574_v37 = vpop.f32.mrf.mxu1 }
  0xcf   :  { %v5443_v39 = vadd.f32 %v4574_v37, %v66_v29  ;;  %v448_v61 = vpop.permute.xlu1 %447  ;;  %v221_v25 = vadd.f32 %v5449_v40, %v193_v28 }
  0xd0   :  { %v157_v42 = vpop.f32.mrf.mxu1 }
  0xd1   :  { %343 = vrot.lane.b32.xlu1 %v5424_v33, %s5241_s30  ;;  %304 = vrot.lane.b32.xlu0 %v5424_v33, %s5242_s0  ;;  %v5463_v44 = vadd.f32 %v157_v42, %v61_v27  ;;  %v195_v27 = vmul.f32 %v190_v48, %v5443_v39 }
  0xd3   :  { %v223_v42 = vadd.f32 %v5422_v30, %v195_v27 }
  0xd4   :  { %v5512_v63 = vpop.permute.xlu1 %400 }
  0xd5   :  { %382 = vrot.lane.b32.xlu1 %v5424_v33, %s5243_s11  ;;  %341 = vrot.lane.b32.xlu0 %v5435_v36, %s5241_s30 }
  0xd9   :  { %230 = vrot.lane.b32.xlu0 %v5443_v39, %s5240_s29  ;;  %224 = vrot.lane.b32.xlu1 %v5435_v36, %s5240_s29  ;;  %v5516_v1 = vpop.permute.xlu1 %357 }
  0xdd   :  { %269 = vrot.lane.b32.xlu0 %v5443_v39, %s5239_s4  ;;  %263 = vrot.lane.b32.xlu1 %v5435_v36, %s5239_s4 }
  0xde   :  { %v5520_v4 = vpop.permute.xlu1 %439 }
  0xe1   :  { %347 = vrot.lane.b32.xlu0 %v5443_v39, %s5241_s30  ;;  %302 = vrot.lane.b32.xlu1 %v5435_v36, %s5242_s0 }
  0xe3   :  { %v5524_v6 = vpop.permute.xlu1 %396 }
  0xe5   :  { %425 = vrot.lane.b32.xlu0 %v5443_v39, %s5244_s12  ;;  %308 = vrot.lane.b32.xlu1 %v5443_v39, %s5242_s0 }
  0xe9   :  { %267 = vrot.lane.b32.xlu0 %v5463_v44, %s5239_s4  ;;  %386 = vrot.lane.b32.xlu1 %v5443_v39, %s5243_s11  ;;  %s5258_s4 = smov 120  }
  0xed   :  { %345 = vrot.lane.b32.xlu0 %v5463_v44, %s5241_s30  ;;  %228 = vrot.lane.b32.xlu1 %v5463_v44, %s5240_s29  ;;  %s5259_s29 = smov 119  }
  0xf1   :  { %384 = vrot.lane.b32.xlu0 %v5463_v44, %s5243_s11  ;;  %306 = vrot.lane.b32.xlu1 %v5463_v44, %s5242_s0  ;;  %s5261_s0 = smov 117  }
  0xf5   :  { %423 = vrot.lane.b32.xlu0 %v5463_v44, %s5244_s12  ;;  %421 = vrot.lane.b32.xlu1 %v5424_v33, %s5244_s12 }
  0xf9   :  { %380 = vrot.lane.b32.xlu0 %v5435_v36, %s5243_s11  ;;  %435 = vperm.xlu1 %4902, %v5394_v23  }
  0xfd   :  { %419 = vrot.lane.b32.xlu1 %v5435_v36, %s5244_s12 }
  0xfe   :  { %4903 = vset.pattern.permute.xlu1 %v6941_v3 }
 0x13f   :  { %v266_v7 = vpop.permute.xlu1 %265  ;;  %v227_v8 = vpop.permute.xlu0 %226 }
 0x140   :  { %v236_v26 = vsel %vm232_vm1, %v227_v8, 0.0  ;;  %v275_v39 = vsel %vm271_vm2, %v266_v7, 0.0 }
 0x141   :  { %v256_v37 = vmul.f32 %v245_v43, %v236_v26  ;;  %v295_v7 = vmul.f32 %v5484_v47, %v275_v39  ;;  %v194_v47 = vmul.f32 %v5437_v38, %v5463_v44 }
 0x143   :  { %v344_v9 = vpop.permute.xlu1 %343  ;;  %v305_v10 = vpop.permute.xlu0 %304 }
 0x144   :  { %v314_v40 = vsel %vm310_vm3, %v305_v10, 0.0 }
 0x145   :  { %v334_v28 = vmul.f32 %v5494_v53, %v314_v40 }
 0x147   :  { %v383_v12 = vpop.permute.xlu1 %382  ;;  %v5526_v13 = vpop.permute.xlu0 %341 }
 0x14b   :  { %v231_v16 = vpop.permute.xlu0 %230  ;;  %v5531_v17 = vpop.permute.xlu1 %224 }
 0x14c   :  { %v238_v23 = vsel %vm232_vm1, %v231_v16, 0.0 }
 0x14d   :  { %v258_v31 = vmul.f32 %v5430_v34, %v238_v23  ;;  %v260_v34 = vadd.f32 %v256_v37, %v221_v25 }
 0x14f   :  { %v270_v18 = vpop.permute.xlu0 %269  ;;  %v5534_v20 = vpop.permute.xlu1 %263  ;;  %v262_v33 = vadd.f32 %v258_v31, %v223_v42  ;;  %v299_v27 = vadd.f32 %v295_v7, %v260_v34 }
 0x150   :  { %v277_v29 = vsel %vm271_vm2, %v270_v18, 0.0 }
 0x151   :  { %v297_v16 = vmul.f32 %v292_v52, %v277_v29  ;;  %v338_v53 = vadd.f32 %v334_v28, %v299_v27 }
 0x153   :  { %v348_v32 = vpop.permute.xlu0 %347  ;;  %v5546_v35 = vpop.permute.xlu1 %302  ;;  %v301_v43 = vadd.f32 %v297_v16, %v262_v33 }
 0x154   :  { %v355_v8 = vsel %vm349_vm4, %v348_v32, 0.0 }
 0x155   :  { %v375_v18 = vmul.f32 %v370_v49, %v355_v8  ;;  %v353_v49 = vsel %vm349_vm4, %v344_v9, 0.0 }
 0x157   :  { %v426_v48 = vpop.permute.xlu0 %425  ;;  %v309_v50 = vpop.permute.xlu1 %308 }
 0x158   :  { %v316_v30 = vsel %vm310_vm3, %v309_v50, 0.0  ;;  %v433_v29 = vsel %vm427_vm5, %v426_v48, 0.0  ;;  %v222_v48 = vadd.f32 %v5455_v41, %v194_v47 }
 0x159   :  { %v336_v52 = vmul.f32 %v5469_v45, %v316_v30  ;;  %v453_v32 = vmul.f32 %v448_v61, %v433_v29  ;;  %v373_v61 = vmul.f32 %v5506_v59, %v353_v49  ;;  %v274_v29 = vsel %vm271_vm2, %v5534_v20, 0.0 }
 0x15b   :  { %v340_v25 = vadd.f32 %v336_v52, %v301_v43  ;;  %v268_v23 = vpop.permute.xlu0 %267  ;;  %v387_v26 = vpop.permute.xlu1 %386  ;;  %v377_v30 = vadd.f32 %v373_v61, %v338_v53  ;;  %v6945_v61 = vmov 0.0  }
 0x15c   :  { %v394_v10 = vsel %vm388_vm6, %v387_v26, 0.0  ;;  %v276_v39 = vsel %vm271_vm2, %v268_v23, 0.0  ;;  %v235_v26 = vsel %vm232_vm1, %v5531_v17, 0.0 }
 0x15d   :  { %v379_v31 = vadd.f32 %v375_v18, %v340_v25  ;;  %v414_v45 = vmul.f32 %v5498_v55, %v394_v10  ;;  %v392_v55 = vsel %vm388_vm6, %v383_v12, 0.0  ;;  %v296_v9 = vmul.f32 %v5496_v54, %v276_v39 }
 0x15e   :  { %v412_v40 = vmul.f32 %v5512_v63, %v392_v55  ;;  %v255_v47 = vmul.f32 %v5522_v5, %v235_v26  ;;  %v352_v5 = vsel %vm349_vm4, %v5526_v13, 0.0  ;;  %v5627_v13 = vld [vmem:[%s6929_s5] sm:$0xff] }
 0x15f   :  { %v418_v37 = vadd.f32 %v414_v45, %v379_v31  ;;  %v346_v42 = vpop.permute.xlu0 %345  ;;  %v229_v16 = vpop.permute.xlu1 %228 }
 0x160   :  { %v237_v33 = vsel %vm232_vm1, %v229_v16, 0.0  ;;  %v354_v43 = vsel %vm349_vm4, %v346_v42, 0.0  ;;  %v416_v25 = vadd.f32 %v412_v40, %v377_v30  ;;  %v5664_v30 = vld [vmem:[%s6929_s5 + $0x10] sm:$0xff]  ;;  %v5675_v40 = vld [vmem:[%s6929_s5 + $0x18] sm:$0xff] }
 0x161   :  { %v257_v38 = vmul.f32 %v5518_v2, %v237_v33  ;;  %v457_v44 = vadd.f32 %v453_v32, %v418_v37  ;;  %v374_v59 = vmul.f32 %v5500_v56, %v354_v43  ;;  %v192_v56 = vmul.f32 %v5478_v46, %v5435_v36 }
 0x162   :  { %v294_v36 = vmul.f32 %v5502_v57, %v274_v29  ;;  %v372_v57 = vmul.f32 %v5516_v1, %v352_v5  ;;  %v5634_v1 = vshrl.u32 %v166_v11, 7 }
 0x163   :  { %v261_v50 = vadd.f32 %v257_v38, %v222_v48  ;;  %v385_v34 = vpop.permute.xlu0 %384  ;;  %4582 = vmatprep.subr.mxu0 %v457_v44  ;;  %v307_v8 = vpop.permute.xlu1 %306 }
 0x164   :  { %v315_v41 = vsel %vm310_vm3, %v307_v8, 0.0  ;;  %4583 = vmatpush3.xpose.msra.mxu0 %v457_v44  ;;  %v393_v54 = vsel %vm388_vm6, %v385_v34, 0.0  ;;  %v5649_v11 = vand.u32 15, %v5634_v1  ;;  %v5657_v8 = vld [vmem:[%s6929_s5 + $0x8] sm:$0xff] }
 0x165   :  { %v300_v2 = vadd.f32 %v296_v9, %v261_v50  ;;  %v335_v12 = vmul.f32 %v5504_v58, %v315_v41  ;;  %v413_v58 = vmul.f32 %v5510_v62, %v393_v54  ;;  %v313_v62 = vsel %vm310_vm3, %v5546_v35, 0.0 }
 0x166   :  { %vm6937_vm8 = vcmp.eq.s32.totalorder %v5649_v11, 0  ;;  %vm872_vm10 = vcmp.eq.s32.totalorder %v5649_v11, 1  ;;  %vm1001_vm12 = vcmp.ge.s32.totalorder %v5649_v11, 1  ;;  %vm1076_vm14 = vcmp.eq.s32.totalorder %v5649_v11, 2 }
 0x167   :  { %v339_v52 = vadd.f32 %v335_v12, %v300_v2  ;;  %v424_v7 = vpop.permute.xlu0 %423  ;;  %v422_v18 = vpop.permute.xlu1 %421  ;;  %vm1205_vm4 = vcmp.ge.s32.totalorder %v5649_v11, 2 }
 0x168   :  { %v432_v63 = vsel %vm427_vm5, %v424_v7, 0.0  ;;  %v431_v23 = vsel %vm427_vm5, %v422_v18, 0.0 }
 0x169   :  { %v378_v27 = vadd.f32 %v374_v59, %v339_v52  ;;  %v451_v28 = vmul.f32 %v5520_v4, %v431_v23  ;;  %v452_v10 = vmul.f32 %v5514_v0, %v432_v63  ;;  %v220_v4 = vadd.f32 %v5492_v51, %v192_v56 }
 0x16a   :  { %v333_v0 = vmul.f32 %v5508_v60, %v313_v62 }
 0x16b   :  { %v455_v31 = vadd.f32 %v451_v28, %v416_v25  ;;  %v417_v45 = vadd.f32 %v413_v58, %v378_v27  ;;  %v259_v46 = vadd.f32 %v255_v47, %v220_v4  ;;  %v381_v20 = vpop.permute.xlu0 %380 }
 0x16c   :  { %v391_v35 = vsel %vm388_vm6, %v381_v20, 0.0  ;;  %vm1280_vm6 = vcmp.eq.s32.totalorder %v5649_v11, 3 }
 0x16d   :  { %4575 = vmatprep.subr.mxu1 %v455_v31  ;;  %v456_v17 = vadd.f32 %v452_v10, %v417_v45  ;;  %v298_v49 = vadd.f32 %v294_v36, %v259_v46  ;;  %v411_v37 = vmul.f32 %v5524_v6, %v391_v35  ;;  %v615_v6 = vadd.s32 16, %v5634_v1 }
 0x16e   :  { %4576 = vmatpush3.xpose.msra.mxu1 %v455_v31 }
 0x16f   :  { %4584 = vmatprep.subr.mxu0 %v456_v17  ;;  %4586 = vmatprep.mubr.f32.mxu0 %v456_v17  ;;  %v337_v51 = vadd.f32 %v333_v0, %v298_v49  ;;  %v5637_v55 = vand.u32 15, %v615_v6 }
 0x170   :  { %4585 = vmatpush3.xpose.msra.mxu0 %v456_v17 }
 0x171   :  { %v376_v42 = vadd.f32 %v372_v57, %v337_v51  ;;  %vm6938_vm7 = vcmp.eq.s32.totalorder %v5637_v55, 0  ;;  %vm874_vm9 = vcmp.eq.s32.totalorder %v5637_v55, 1  ;;  %vm1003_vm11 = vcmp.ge.s32.totalorder %v5637_v55, 1 }
 0x172   :  { %vm1078_vm13 = vcmp.eq.s32.totalorder %v5637_v55, 2  ;;  %vm1207_vm15 = vcmp.ge.s32.totalorder %v5637_v55, 2 }
 0x173   :  { %4587 = vmatmul.mubr.f32.vlgmr.msra.gmra.mxu0 %v457_v44  ;;  %v415_v53 = vadd.f32 %v411_v37, %v376_v42 }
 0x174   :  { %v436_v32 = vpop.permute.xlu1 %435  ;;  %4607 = vmatprep.mubr.msk.f32.mxu0 %vm68_vm0, %v5627_v13 }
 0x178   :  { %v420_v16 = vpop.permute.xlu1 %419 }
 0x179   :  { %v430_v60 = vsel %vm427_vm5, %v420_v16, 0.0  ;;  %vm1282_vm5 = vcmp.eq.s32.totalorder %v5637_v55, 3 }
 0x17a   :  { %v450_v39 = vmul.f32 %v436_v32, %v430_v60 }
 0x17c   :  { %v454_v33 = vadd.f32 %v450_v39, %v415_v53 }
 0x17e   :  { %4577 = vmatprep.subr.mxu1 %v454_v33  ;;  %4579 = vmatprep.mubr.f32.mxu1 %v454_v33 }
 0x17f   :  { %4578 = vmatpush3.xpose.msra.mxu1 %v454_v33 }
 0x182   :  { %4580 = vmatmul.mubr.f32.vlgmr.msra.gmra.mxu1 %v455_v31 }
 0x183   :  { %4595 = vmatprep.mubr.msk.f32.mxu1 %vm68_vm0, %v5627_v13 }
 0x233   :  { %v5639_v48 = vpop.f32.mrf.mxu0 }
 0x235   :  { %v599_v38 = vpop.f32.mrf.mxu0 }
 0x236   :  { %v610_v44 = vmul.f32 0.007874016, %v599_v38 }
 0x238   :  { %4589 = vmatprep.subr.msk.mxu1 %vm6938_vm7, %v610_v44 }
 0x239   :  { %4590 = vmatpush3.msk.msra.mxu1 %vm6938_vm7, %v610_v44  ;;  %vm1822_vm7 = vcmp.ge.s32.totalorder %v5637_v55, 5 }
 0x23a   :  { %4591 = vmatprep.subr.mxu1 %v6945_v61 }
 0x23b   :  { %4592 = vmatpush3.msra.mxu1 %v6945_v61 }
 0x242   :  { %v5651_v9 = vpop.f32.mrf.mxu1 }
 0x244   :  { %v524_v50 = vpop.f32.mrf.mxu1 }
 0x245   :  { %v608_v34 = vmul.f32 0.007874016, %v524_v50 }
 0x247   :  { %4593 = vmatprep.subr.msk.mxu1 %vm6937_vm8, %v608_v34 }
 0x248   :  { %4594 = vmatpush3.msk.msra.mxu1 %vm6937_vm8, %v608_v34  ;;  %vm1652_vm8 = vcmp.ge.s32.totalorder %v5529_v14, 4 }
 0x249   :  { %4596 = vmatmul.mubr.msk.f32.vlgmr.msra.gmra.mxu1 %vm68_vm0, %v5657_v8 }
 0x24a   :  { %4598 = vmatprep.mubr.msk.f32.mxu1 %vm68_vm0, %v5664_v30 }
 0x24d   :  { %4599 = vmatmul.mubr.msk.f32.gmra.mxu1 %vm68_vm0, %v5675_v40 }
 0x24e   :  { %4619 = vmatprep.mubr.msk.f32.mxu1 %vm68_vm0, %v5627_v13 }
 0x309   :  { %v5681_v43 = vpop.f32.mrf.mxu1 }
 0x30b   :  { %v5683_v41 = vpop.f32.mrf.mxu1 }
 0x30c   :  { %5074 = vrsqrt.f32 %v5683_v41 }
 0x30d   :  { %v5685_v2 = vpop.f32.mrf.mxu1 }
 0x30f   :  { %v5688_v12 = vpop.f32.mrf.mxu1 }
 0x310   :  { %5076 = vrsqrt.f32 %v5688_v12 }
 0x319   :  { %v5075_v54 = vpop.eup %5074 }
 0x31a   :  { %v798_v7 = vmul.f32 %v5075_v54, %v608_v34 }
 0x31d   :  { %v5077_v59 = vpop.eup %5076 }
 0x31e   :  { %846 = vperm.xlu0 %4900, %v5077_v59   ;;  %v800_v52 = vmul.f32 %v5077_v59, %v610_v44 }
 0x320   :  { %821 = vperm.xlu1 %4903, %v800_v52  }
 0x322   :  { %811 = vperm.xlu0 %4900, %v798_v7  }
 0x324   :  { %836 = vperm.xlu1 %4903, %v5075_v54  }
 0x326   :  { %4905 = vset.pattern.permute.xlu0 %v5234_v19 }
 0x328   :  { %4904 = vset.pattern.permute.xlu1 %v5234_v19 }
 0x399   :  { %v847_v18 = vpop.permute.xlu0 %846 }
 0x39a   :  { %v856_v25 = vmul.f32 %v847_v18, %v5688_v12 }
 0x39b   :  { %v5694_v63 = vpop.permute.xlu1 %821 }
 0x39c   :  { %v866_v23 = vmul.f32 %v856_v25, %v5694_v63 }
 0x39d   :  { %v5701_v28 = vpop.permute.xlu0 %811 }
 0x39e   :  { %v870_v26 = vsub.f32 %v610_v44, %v866_v23 }
 0x39f   :  { %v837_v58 = vpop.permute.xlu1 %836 }
 0x3a0   :  { %v854_v27 = vmul.f32 %v837_v58, %v5683_v41  ;;  %4601 = vmatprep.subr.msk.mxu0 %vm874_vm9, %v870_v26 }
 0x3a1   :  { %4602 = vmatpush3.msk.msra.mxu0 %vm874_vm9, %v870_v26 }
 0x3a2   :  { %v864_v56 = vmul.f32 %v854_v27, %v5701_v28  ;;  %4603 = vmatprep.subr.mxu0 %v6945_v61 }
 0x3a3   :  { %4604 = vmatpush3.msra.mxu0 %v6945_v61 }
 0x3a4   :  { %v868_v29 = vsub.f32 %v608_v34, %v864_v56 }
 0x3a6   :  { %4605 = vmatprep.subr.msk.mxu0 %vm872_vm10, %v868_v29 }
 0x3a7   :  { %4606 = vmatpush3.msk.msra.mxu0 %vm872_vm10, %v868_v29 }
 0x3a8   :  { %4608 = vmatmul.mubr.msk.f32.vlgmr.msra.gmra.mxu0 %vm68_vm0, %v5657_v8 }
 0x3a9   :  { %4610 = vmatprep.mubr.msk.f32.mxu0 %vm68_vm0, %v5664_v30 }
 0x3ac   :  { %4611 = vmatmul.mubr.msk.f32.gmra.mxu0 %vm68_vm0, %v5675_v40 }
 0x3ad   :  { %4631 = vmatprep.mubr.msk.f32.mxu0 %vm68_vm0, %v5627_v13 }
 0x468   :  { %v5721_v10 = vpop.f32.mrf.mxu0 }
 0x46a   :  { %v5723_v31 = vpop.f32.mrf.mxu0 }
 0x46c   :  { %v5725_v45 = vpop.f32.mrf.mxu0 }
 0x46e   :  { %v5727_v47 = vpop.f32.mrf.mxu0 }
 0x46f   :  { %5078 = vrsqrt.f32 %v5727_v47 }
 0x470   :  { %5080 = vrsqrt.f32 %v5723_v31 }
 0x47c   :  { %v5079_v62 = vpop.eup %5078 }
 0x47d   :  { %v5081_v17 = vpop.eup %5080  ;;  %1052 = vperm.xlu1 %4904, %v5079_v62   ;;  %v1007_v4 = vmul.f32 %v5079_v62, %v870_v26 }
 0x47e   :  { %v1005_v46 = vmul.f32 %v5081_v17, %v868_v29 }
 0x47f   :  { %v1011_v36 = vsel %vm1003_vm11, %v1007_v4, 0.0  ;;  %vm1411_vm11 = vcmp.ge.s32.totalorder %v5637_v55, 3 }
 0x480   :  { %1028 = vperm.xlu0 %4905, %v1011_v36   ;;  %v1009_v0 = vsel %vm1001_vm12, %v1005_v46, 0.0  ;;  %vm1409_vm12 = vcmp.ge.s32.totalorder %v5649_v11, 3 }
 0x481   :  { %1042 = vperm.xlu1 %4904, %v5081_v17  }
 0x484   :  { %4906 = vset.pattern.permute.xlu0 %v5236_v22 }
 0x485   :  { %1018 = vperm.xlu1 %4904, %v1009_v0  }
 0x489   :  { %4907 = vset.pattern.permute.xlu1 %v5236_v22 }
 0x4f8   :  { %v1053_v20 = vpop.permute.xlu1 %1052 }
 0x4f9   :  { %v1062_v49 = vmul.f32 %v1053_v20, %v5727_v47 }
 0x4fb   :  { %v1066_v5 = vsel %vm310_vm3, %v1062_v49, 0.0  ;;  %v5738_v35 = vpop.permute.xlu0 %1028 }
 0x4fc   :  { %v1070_v51 = vmul.f32 %v1066_v5, %v5738_v35  ;;  %v1043_v32 = vpop.permute.xlu1 %1042 }
 0x4fd   :  { %v1060_v57 = vmul.f32 %v1043_v32, %v5723_v31 }
 0x4fe   :  { %v1074_v37 = vsub.f32 %v870_v26, %v1070_v51 }
 0x4ff   :  { %v1064_v42 = vsel %vm310_vm3, %v1060_v57, 0.0 }
 0x500   :  { %v5745_v16 = vpop.permute.xlu1 %1018  ;;  %4613 = vmatprep.subr.msk.mxu1 %vm1078_vm13, %v1074_v37 }
 0x501   :  { %v1068_v60 = vmul.f32 %v1064_v42, %v5745_v16  ;;  %4614 = vmatpush3.msk.msra.mxu1 %vm1078_vm13, %v1074_v37 }
 0x502   :  { %4615 = vmatprep.subr.mxu1 %v6945_v61 }
 0x503   :  { %v1072_v53 = vsub.f32 %v868_v29, %v1068_v60  ;;  %4616 = vmatpush3.msra.mxu1 %v6945_v61 }
 0x505   :  { %4617 = vmatprep.subr.msk.mxu1 %vm1076_vm14, %v1072_v53 }
 0x506   :  { %4618 = vmatpush3.msk.msra.mxu1 %vm1076_vm14, %v1072_v53 }
 0x507   :  { %4620 = vmatmul.mubr.msk.f32.vlgmr.msra.gmra.mxu1 %vm68_vm0, %v5657_v8 }
 0x508   :  { %4622 = vmatprep.mubr.msk.f32.mxu1 %vm68_vm0, %v5664_v30 }
 0x50b   :  { %4623 = vmatmul.mubr.msk.f32.gmra.mxu1 %vm68_vm0, %v5675_v40 }
 0x50c   :  { %4643 = vmatprep.mubr.msk.f32.mxu1 %vm68_vm0, %v5627_v13 }
 0x5c7   :  { %v5767_v39 = vpop.f32.mrf.mxu1 }
 0x5c9   :  { %v5769_v33 = vpop.f32.mrf.mxu1 }
 0x5ca   :  { %5082 = vrsqrt.f32 %v5769_v33 }
 0x5cb   :  { %v5772_v6 = vpop.f32.mrf.mxu1 }
 0x5cd   :  { %v5774_v38 = vpop.f32.mrf.mxu1 }
 0x5ce   :  { %5084 = vrsqrt.f32 %v5774_v38 }
 0x5d7   :  { %v5083_v44 = vpop.eup %5082 }
 0x5d8   :  { %v1209_v34 = vmul.f32 %v5083_v44, %v1072_v53 }
 0x5da   :  { %v1213_v52 = vsel %vm1205_vm4, %v1209_v34, 0.0  ;;  %vm1484_vm4 = vcmp.eq.s32.totalorder %v5649_v11, 4 }
 0x5db   :  { %v5085_v50 = vpop.eup %5084 }
 0x5dc   :  { %1256 = vperm.xlu0 %4906, %v5085_v50   ;;  %v1211_v54 = vmul.f32 %v5085_v50, %v1074_v37 }
 0x5de   :  { %v1215_v59 = vsel %vm1207_vm15, %v1211_v54, 0.0  ;;  %vm6940_vm15 = vcmp.eq.s32.totalorder %v5637_v55, 4 }
 0x5df   :  { %1232 = vperm.xlu1 %4907, %v1215_v59  }
 0x5e0   :  { %1222 = vperm.xlu0 %4906, %v1213_v52  }
 0x5e3   :  { %1246 = vperm.xlu1 %4907, %v5083_v44  }
 0x5e4   :  { %4909 = vset.pattern.permute.xlu0 %v5233_v15 }
 0x5e7   :  { %4908 = vset.pattern.permute.xlu1 %v5233_v15 }
 0x657   :  { %v1257_v7 = vpop.permute.xlu0 %1256 }
 0x658   :  { %v1266_v18 = vmul.f32 %v1257_v7, %v5774_v38 }
 0x65a   :  { %v1270_v25 = vsel %vm271_vm2, %v1266_v18, 0.0  ;;  %v5784_v23 = vpop.permute.xlu1 %1232 }
 0x65b   :  { %v1274_v26 = vmul.f32 %v1270_v25, %v5784_v23  ;;  %v5793_v29 = vpop.permute.xlu0 %1222 }
 0x65d   :  { %v1278_v58 = vsub.f32 %v1074_v37, %v1274_v26 }
 0x65e   :  { %v1247_v27 = vpop.permute.xlu1 %1246 }
 0x65f   :  { %v1264_v56 = vmul.f32 %v1247_v27, %v5769_v33  ;;  %4625 = vmatprep.subr.msk.mxu0 %vm1282_vm5, %v1278_v58 }
 0x660   :  { %4626 = vmatpush3.msk.msra.mxu0 %vm1282_vm5, %v1278_v58 }
 0x661   :  { %v1268_v62 = vsel %vm271_vm2, %v1264_v56, 0.0  ;;  %4627 = vmatprep.subr.mxu0 %v6945_v61 }
 0x662   :  { %v1272_v17 = vmul.f32 %v1268_v62, %v5793_v29  ;;  %4628 = vmatpush3.msra.mxu0 %v6945_v61 }
 0x664   :  { %v1276_v4 = vsub.f32 %v1072_v53, %v1272_v17 }
 0x666   :  { %4629 = vmatprep.subr.msk.mxu0 %vm1280_vm6, %v1276_v4 }
 0x667   :  { %4630 = vmatpush3.msk.msra.mxu0 %vm1280_vm6, %v1276_v4 }
 0x668   :  { %4632 = vmatmul.mubr.msk.f32.vlgmr.msra.gmra.mxu0 %vm68_vm0, %v5657_v8 }
 0x669   :  { %4634 = vmatprep.mubr.msk.f32.mxu0 %vm68_vm0, %v5664_v30 }
 0x66c   :  { %4635 = vmatmul.mubr.msk.f32.gmra.mxu0 %vm68_vm0, %v5675_v40 }
 0x66d   :  { %4655 = vmatprep.mubr.msk.f32.mxu0 %vm68_vm0, %v5627_v13 }
 0x728   :  { %v5813_v36 = vpop.f32.mrf.mxu0 }
 0x72a   :  { %v5815_v46 = vpop.f32.mrf.mxu0 }
 0x72c   :  { %v5817_v0 = vpop.f32.mrf.mxu0 }
 0x72e   :  { %v5819_v20 = vpop.f32.mrf.mxu0 }
 0x72f   :  { %5086 = vrsqrt.f32 %v5819_v20 }
 0x730   :  { %5088 = vrsqrt.f32 %v5815_v46 }
 0x73c   :  { %v5087_v49 = vpop.eup %5086 }
 0x73d   :  { %v5089_v5 = vpop.eup %5088  ;;  %1460 = vperm.xlu1 %4908, %v5087_v49   ;;  %v1415_v51 = vmul.f32 %v5087_v49, %v1278_v58 }
 0x73e   :  { %v1413_v57 = vmul.f32 %v5089_v5, %v1276_v4 }
 0x73f   :  { %v1419_v32 = vsel %vm1411_vm11, %v1415_v51, 0.0  ;;  %vm1615_vm11 = vcmp.ge.s32.totalorder %v5637_v55, 4 }
 0x740   :  { %1436 = vperm.xlu0 %4909, %v1419_v32   ;;  %v1417_v37 = vsel %vm1409_vm12, %v1413_v57, 0.0  ;;  %vm1613_vm12 = vcmp.ge.s32.totalorder %v5649_v11, 4 }
 0x741   :  { %1450 = vperm.xlu1 %4908, %v5089_v5  }
 0x744   :  { %4910 = vset.pattern.permute.xlu0 %v6948_v21 }
 0x745   :  { %1426 = vperm.xlu1 %4908, %v1417_v37  }
 0x749   :  { %4911 = vset.pattern.permute.xlu1 %v6948_v21 }
 0x7b8   :  { %v1461_v42 = vpop.permute.xlu1 %1460 }
 0x7b9   :  { %v1470_v60 = vmul.f32 %v1461_v42, %v5819_v20 }
 0x7bb   :  { %v1474_v53 = vsel %vm232_vm1, %v1470_v60, 0.0  ;;  %v5830_v44 = vpop.permute.xlu0 %1436 }
 0x7bc   :  { %v1478_v50 = vmul.f32 %v1474_v53, %v5830_v44  ;;  %v1451_v34 = vpop.permute.xlu1 %1450 }
 0x7bd   :  { %v1468_v54 = vmul.f32 %v1451_v34, %v5815_v46 }
 0x7be   :  { %v1482_v59 = vsub.f32 %v1278_v58, %v1478_v50 }
 0x7bf   :  { %v1472_v52 = vsel %vm232_vm1, %v1468_v54, 0.0 }
 0x7c0   :  { %v5837_v7 = vpop.permute.xlu1 %1426  ;;  %4637 = vmatprep.subr.msk.mxu1 %vm6940_vm15, %v1482_v59 }
 0x7c1   :  { %v1476_v18 = vmul.f32 %v1472_v52, %v5837_v7  ;;  %4638 = vmatpush3.msk.msra.mxu1 %vm6940_vm15, %v1482_v59  ;;  %vm1898_vm15 = vcmp.eq.s32.totalorder %v5649_v11, 6 }
 0x7c2   :  { %4639 = vmatprep.subr.mxu1 %v6945_v61 }
 0x7c3   :  { %v1480_v25 = vsub.f32 %v1276_v4, %v1476_v18  ;;  %4640 = vmatpush3.msra.mxu1 %v6945_v61 }
 0x7c5   :  { %4641 = vmatprep.subr.msk.mxu1 %vm1484_vm4, %v1480_v25 }
 0x7c6   :  { %4642 = vmatpush3.msk.msra.mxu1 %vm1484_vm4, %v1480_v25 }
 0x7c7   :  { %4644 = vmatmul.mubr.msk.f32.vlgmr.msra.gmra.mxu1 %vm68_vm0, %v5657_v8 }
 0x7c8   :  { %4646 = vmatprep.mubr.msk.f32.mxu1 %vm68_vm0, %v5664_v30 }
 0x7cb   :  { %4647 = vmatmul.mubr.msk.f32.gmra.mxu1 %vm68_vm0, %v5675_v40 }
 0x7cc   :  { %4667 = vmatprep.mubr.msk.f32.mxu1 %vm68_vm0, %v5627_v13 }
 0x887   :  { %v5859_v26 = vpop.f32.mrf.mxu1 }
 0x889   :  { %v5861_v58 = vpop.f32.mrf.mxu1 }
 0x88a   :  { %5090 = vrsqrt.f32 %v5861_v58 }
 0x88b   :  { %v5864_v27 = vpop.f32.mrf.mxu1 }
 0x88d   :  { %v5866_v56 = vpop.f32.mrf.mxu1 }
 0x88e   :  { %5092 = vrsqrt.f32 %v5866_v56 }
 0x897   :  { %v5091_v62 = vpop.eup %5090 }
 0x898   :  { %v1617_v4 = vmul.f32 %v5091_v62, %v1480_v25 }
 0x89a   :  { %v1621_v51 = vsel %vm1613_vm12, %v1617_v4, 0.0  ;;  %vm1691_vm12 = vcmp.eq.s32.totalorder %v5649_v11, 5 }
 0x89b   :  { %v5093_v17 = vpop.eup %5092 }
 0x89c   :  { %1665 = vperm.xlu0 %4910, %v5093_v17   ;;  %v1619_v49 = vmul.f32 %v5093_v17, %v1482_v59 }
 0x89e   :  { %v1623_v5 = vsel %vm1615_vm11, %v1619_v49, 0.0  ;;  %vm6939_vm11 = vcmp.eq.s32.totalorder %v5637_v55, 5 }
 0x89f   :  { %1640 = vperm.xlu1 %4911, %v1623_v5  }
 0x8a0   :  { %1630 = vperm.xlu0 %4910, %v1621_v51  }
 0x8a3   :  { %1655 = vperm.xlu1 %4911, %v5091_v62  }
 0x8a4   :  { %4913 = vset.pattern.permute.xlu0 %v6943_v24 }
 0x8a7   :  { %4912 = vset.pattern.permute.xlu1 %v6943_v24 }
 0x917   :  { %v1666_v32 = vpop.permute.xlu0 %1665 }
 0x918   :  { %v1675_v57 = vmul.f32 %v1666_v32, %v5866_v56 }
 0x91a   :  { %v1681_v37 = vsel %vm1652_vm8, %v1675_v57, 0.0  ;;  %v5877_v42 = vpop.permute.xlu1 %1640 }
 0x91b   :  { %v1685_v60 = vmul.f32 %v1681_v37, %v5877_v42  ;;  %v5890_v54 = vpop.permute.xlu0 %1630 }
 0x91c   :  { %7001 = vst [vmem:[#allocation5_spill] sm:$0xff] %v5890_v54 }
 0x91d   :  { %v5881_v53 = vsub.f32 %v1482_v59, %v1685_v60 }
 0x91e   :  { %v1656_v50 = vpop.permute.xlu1 %1655 }
 0x91f   :  { %v1673_v34 = vmul.f32 %v1656_v50, %v5861_v58  ;;  %4649 = vmatprep.subr.msk.mxu0 %vm6939_vm11, %v5881_v53 }
 0x920   :  { %4650 = vmatpush3.msk.msra.mxu0 %vm6939_vm11, %v5881_v53  ;;  %vm1820_vm11 = vcmp.ge.s32.totalorder %v5649_v11, 5 }
 0x921   :  { %v1679_v52 = vsel %vm1652_vm8, %v1673_v34, 0.0  ;;  %4651 = vmatprep.subr.mxu0 %v6945_v61  ;;  %v609_v34 = vmul.f32 0.007874016, %v5651_v9 }
 0x922   :  { %v1683_v59 = vmul.f32 %v1679_v52, %v5890_v54  ;;  %4652 = vmatpush3.msra.mxu0 %v6945_v61  ;;  %v611_v52 = vmul.f32 0.007874016, %v5639_v48 }
 0x924   :  { %v5898_v18 = vsub.f32 %v1480_v25, %v1683_v59 }
 0x926   :  { %4653 = vmatprep.subr.msk.mxu0 %vm1691_vm12, %v5898_v18 }
 0x927   :  { %4654 = vmatpush3.msk.msra.mxu0 %vm1691_vm12, %v5898_v18 }
 0x928   :  { %4656 = vmatmul.mubr.msk.f32.vlgmr.msra.gmra.mxu0 %vm68_vm0, %v5657_v8 }
 0x929   :  { %4658 = vmatprep.mubr.msk.f32.mxu0 %vm68_vm0, %v5664_v30 }
 0x92c   :  { %4659 = vmatmul.mubr.msk.f32.gmra.mxu0 %vm68_vm0, %v5675_v40 }
 0x92d   :  { %4679 = vmatprep.mubr.msk.f32.mxu0 %vm68_vm0, %v5627_v13 }
 0x9e8   :  { %v5914_v25 = vpop.f32.mrf.mxu0 }
 0x9ea   :  { %v5916_v62 = vpop.f32.mrf.mxu0 }
 0x9ec   :  { %v5918_v17 = vpop.f32.mrf.mxu0 }
 0x9ee   :  { %v5920_v4 = vpop.f32.mrf.mxu0 }
 0x9ef   :  { %5094 = vrsqrt.f32 %v5920_v4 }
 0x9f0   :  { %5096 = vrsqrt.f32 %v5916_v62 }
 0x9f1   :  { %5098 = vrsqrt.f32 %v5681_v43 }
 0x9f2   :  { %5100 = vrsqrt.f32 %v5685_v2 }
 0x9f3   :  { %5102 = vrsqrt.f32 %v5725_v45 }
 0x9f4   :  { %5104 = vrsqrt.f32 %v5721_v10 }
 0x9f5   :  { %5106 = vrsqrt.f32 %v5772_v6 }
 0x9f6   :  { %5108 = vrsqrt.f32 %v5767_v39 }
 0x9fc   :  { %v5095_v49 = vpop.eup %5094 }
 0x9fd   :  { %v5097_v5 = vpop.eup %5096  ;;  %1872 = vperm.xlu1 %4912, %v5095_v49   ;;  %v1826_v51 = vmul.f32 %v5095_v49, %v5881_v53 }
 0x9fe   :  { %v1824_v57 = vmul.f32 %v5097_v5, %v5898_v18  ;;  %v5099_v37 = vpop.eup %5098 }
 0x9ff   :  { %v1830_v32 = vsel %vm1822_vm7, %v1826_v51, 0.0  ;;  %v5101_v60 = vpop.eup %5100  ;;  %v799_v59 = vmul.f32 %v5099_v37, %v609_v34  ;;  %vm1859_vm7 = vcmp.ge.s32.totalorder %v5529_v14, 5 }
 0xa00   :  { %1847 = vperm.xlu0 %4913, %v1830_v32   ;;  %v1828_v50 = vsel %vm1820_vm11, %v1824_v57, 0.0  ;;  %v801_v49 = vmul.f32 %v5101_v60, %v611_v52  ;;  %vm6947_vm11 = vcmp.eq.s32.totalorder %v5637_v55, 6 }
 0xa01   :  { %1862 = vperm.xlu1 %4912, %v5097_v5   ;;  %v5103_v5 = vpop.eup %5102 }
 0xa02   :  { %v5105_v9 = vpop.eup %5104 }
 0xa04   :  { %4914 = vset.pattern.permute.xlu0 %v6941_v3 }
 0xa05   :  { %1837 = vperm.xlu1 %4912, %v1828_v50   ;;  %851 = vperm.xlu0 %4914, %v5101_v60  }
 0xa09   :  { %4915 = vset.pattern.permute.xlu1 %v6941_v3  ;;  %816 = vperm.xlu0 %4914, %v799_v59  }
 0xa0a   :  { %826 = vperm.xlu1 %4915, %v801_v49  }
 0xa0d   :  { %4917 = vset.pattern.permute.xlu0 %v5234_v19 }
 0xa0e   :  { %841 = vperm.xlu1 %4915, %v5099_v37  }
 0xa12   :  { %4916 = vset.pattern.permute.xlu1 %v5234_v19 }
 0xa13   :  { %1057 = vperm.xlu1 %4916, %v5103_v5  }
 0xa17   :  { %1047 = vperm.xlu1 %4916, %v5105_v9  }
 0xa78   :  { %v1873_v48 = vpop.permute.xlu1 %1872 }
 0xa79   :  { %v1882_v51 = vmul.f32 %v1873_v48, %v5920_v4 }
 0xa7b   :  { %v1888_v32 = vsel %vm1859_vm7, %v1882_v51, 0.0  ;;  %v5942_v57 = vpop.permute.xlu0 %1847 }
 0xa7c   :  { %7002 = vst [vmem:[#allocation6_spill] sm:$0xff] %v5942_v57  ;;  %v1892_v60 = vmul.f32 %v1888_v32, %v5942_v57  ;;  %v1863_v50 = vpop.permute.xlu1 %1862 }
 0xa7d   :  { %v1880_v37 = vmul.f32 %v1863_v50, %v5916_v62 }
 0xa7e   :  { %v5948_v19 = vsub.f32 %v5881_v53, %v1892_v60 }
 0xa7f   :  { %v1886_v59 = vsel %vm1859_vm7, %v1880_v37, 0.0 }
 0xa80   :  { %v5952_v49 = vpop.permute.xlu1 %1837  ;;  %4661 = vmatprep.subr.msk.mxu1 %vm6947_vm11, %v5948_v19  ;;  %v852_v51 = vpop.permute.xlu0 %851 }
 0xa81   :  { %7003 = vst [vmem:[#allocation7_spill] sm:$0xff] %v5952_v49  ;;  %v1890_v48 = vmul.f32 %v1886_v59, %v5952_v49  ;;  %4662 = vmatpush3.msk.msra.mxu1 %vm6947_vm11, %v5948_v19  ;;  %v857_v32 = vmul.f32 %v5685_v2, %v852_v51  ;;  %vm2027_vm11 = vcmp.ge.s32.totalorder %v5649_v11, 6 }
 0xa82   :  { %4663 = vmatprep.subr.mxu1 %v6945_v61 }
 0xa83   :  { %v5965_v53 = vsub.f32 %v5898_v18, %v1890_v48  ;;  %4664 = vmatpush3.msra.mxu1 %v6945_v61  ;;  %v7005_v61 = vmov 6  }
 0xa84   :  { %v5983_v48 = vpop.permute.xlu0 %816 }
 0xa85   :  { %v5969_v60 = vpop.permute.xlu1 %826  ;;  %4665 = vmatprep.subr.msk.mxu1 %vm1898_vm15, %v5965_v53 }
 0xa86   :  { %v867_v50 = vmul.f32 %v857_v32, %v5969_v60  ;;  %4666 = vmatpush3.msk.msra.mxu1 %vm1898_vm15, %v5965_v53 }
 0xa87   :  { %4668 = vmatmul.mubr.msk.f32.vlgmr.msra.gmra.mxu1 %vm68_vm0, %v5657_v8 }
 0xa88   :  { %v871_v18 = vsub.f32 %v611_v52, %v867_v50  ;;  %4670 = vmatprep.mubr.msk.f32.mxu1 %vm68_vm0, %v5664_v30  ;;  %v5107_v52 = vpop.eup %5106 }
 0xa89   :  { %v842_v2 = vpop.permute.xlu1 %841  ;;  %v5109_v24 = vpop.eup %5108 }
 0xa8a   :  { %v855_v37 = vmul.f32 %v5681_v43, %v842_v2  ;;  %v1008_v59 = vmul.f32 %v5103_v5, %v871_v18 }
 0xa8b   :  { %4671 = vmatmul.mubr.msk.f32.gmra.mxu1 %vm68_vm0, %v5675_v40 }
 0xa8c   :  { %v865_v51 = vmul.f32 %v855_v37, %v5983_v48  ;;  %1033 = vperm.xlu0 %4917, %v1008_v59   ;;  %4693 = vmatprep.mubr.msk.f32.mxu1 %vm68_vm0, %v5627_v13 }
 0xa8e   :  { %v869_v32 = vsub.f32 %v609_v34, %v865_v51  ;;  %v1058_v43 = vpop.permute.xlu1 %1057 }
 0xa8f   :  { %v1063_v5 = vmul.f32 %v5725_v45, %v1058_v43 }
 0xa90   :  { %4918 = vset.pattern.permute.xlu0 %v5236_v22  ;;  %v1006_v50 = vmul.f32 %v5105_v9, %v869_v32 }
 0xa91   :  { %1261 = vperm.xlu0 %4918, %v5107_v52   ;;  %v1067_v37 = vsel %vm310_vm3, %v1063_v5, 0.0 }
 0xa92   :  { %1023 = vperm.xlu1 %4916, %v1006_v50   ;;  %v1048_v2 = vpop.permute.xlu1 %1047 }
 0xa93   :  { %v1061_v51 = vmul.f32 %v5721_v10, %v1048_v2 }
 0xa96   :  { %4919 = vset.pattern.permute.xlu1 %v5236_v22  ;;  %v1065_v22 = vsel %vm310_vm3, %v1061_v51, 0.0  ;;  %vm2029_vm3 = vcmp.ge.s32.totalorder %v5637_v55, 6 }
 0xb07   :  { %v5996_v59 = vpop.permute.xlu0 %1033 }
 0xb08   :  { %v1071_v34 = vmul.f32 %v1067_v37, %v5996_v59 }
 0xb0a   :  { %v1075_v9 = vsub.f32 %v871_v18, %v1071_v34 }
 0xb0c   :  { %v1212_v3 = vmul.f32 %v5107_v52, %v1075_v9 }
 0xb0d   :  { %v6002_v50 = vpop.permute.xlu1 %1023 }
 0xb0e   :  { %7004 = vst [vmem:[#allocation8_spill] sm:$0xff] %v6002_v50  ;;  %v1069_v45 = vmul.f32 %v1065_v22, %v6002_v50  ;;  %1237 = vperm.xlu1 %4919, %v1212_v3  }
 0xb10   :  { %v1073_v43 = vsub.f32 %v869_v32, %v1069_v45  ;;  %v1262_v45 = vpop.permute.xlu0 %1261 }
 0xb12   :  { %1251 = vperm.xlu1 %4919, %v5109_v24   ;;  %v1210_v5 = vmul.f32 %v5109_v24, %v1073_v43 }
 0xb14   :  { %1227 = vperm.xlu0 %4918, %v1210_v5   ;;  %v1267_v5 = vmul.f32 %v5772_v6, %v1262_v45 }
 0xb16   :  { %4920 = vset.pattern.permute.xlu1 %v7005_v61 }
 0xb18   :  { %4921 = vset.pattern.permute.xlu0 %v7005_v61 }
 0xb47   :  { %v6007_v10 = vpop.f32.mrf.mxu1 }
 0xb49   :  { %v6009_v18 = vpop.f32.mrf.mxu1 }
 0xb4b   :  { %v6011_v52 = vpop.f32.mrf.mxu1 }
 0xb4d   :  { %v6013_v2 = vpop.f32.mrf.mxu1 }
 0xb4e   :  { %5110 = vrsqrt.f32 %v6013_v2 }
 0xb4f   :  { %5112 = vrsqrt.f32 %v6009_v18 }
 0xb50   :  { %5114 = vrsqrt.f32 %v5817_v0 }
 0xb51   :  { %5116 = vrsqrt.f32 %v5813_v36 }
 0xb52   :  { %5118 = vrsqrt.f32 %v5864_v27 }
 0xb53   :  { %5120 = vrsqrt.f32 %v5859_v26 }
 0xb54   :  { %5122 = vrsqrt.f32 %v5918_v17 }
 0xb55   :  { %5124 = vrsqrt.f32 %v5914_v25 }
 0xb56   :  { %5126 = vrsqrt.f32 %v6011_v52 }
 0xb57   :  { %5128 = vrsqrt.f32 %v6007_v10 }
 0xb5b   :  { %v5111_v3 = vpop.eup %5110 }
 0xb5c   :  { %v5113_v24 = vpop.eup %5112  ;;  %2079 = vperm.xlu1 %4920, %v5111_v3   ;;  %v2033_v32 = vmul.f32 %v5111_v3, %v5948_v19  ;;  %v1271_v3 = vsel %vm271_vm2, %v1267_v5, 0.0 }
 0xb5d   :  { %v2031_v34 = vmul.f32 %v5113_v24, %v5965_v53  ;;  %v5115_v51 = vpop.eup %5114 }
 0xb5e   :  { %v2037_v37 = vsel %vm2029_vm3, %v2033_v32, 0.0  ;;  %v5117_v5 = vpop.eup %5116  ;;  %vm6956_vm3 = vcmp.eq.s32.totalorder %v5649_v11, 7 }
 0xb5f   :  { %2054 = vperm.xlu0 %4921, %v2037_v37   ;;  %v2035_v22 = vsel %vm2027_vm11, %v2031_v34, 0.0  ;;  %vm2066_vm11 = vcmp.ge.s32.totalorder %v5529_v14, 6 }
 0xb60   :  { %2069 = vperm.xlu1 %4920, %v5113_v24  }
 0xb63   :  { %4922 = vset.pattern.permute.xlu0 %v5233_v15 }
 0xb64   :  { %1465 = vperm.xlu0 %4922, %v5115_v51   ;;  %2044 = vperm.xlu1 %4920, %v2035_v22  }
 0xb68   :  { %4923 = vset.pattern.permute.xlu1 %v5233_v15 }
 0xb89   :  { %v6028_v32 = vpop.permute.xlu1 %1237 }
 0xb8a   :  { %v1275_v24 = vmul.f32 %v1271_v3, %v6028_v32 }
 0xb8c   :  { %v1279_v37 = vsub.f32 %v1075_v9, %v1275_v24  ;;  %v5119_v9 = vpop.eup %5118  ;;  %v7007_v24 = vmov 4  }
 0xb8d   :  { %v1252_v34 = vpop.permute.xlu1 %1251 }
 0xb8e   :  { %v1265_v22 = vmul.f32 %v5767_v39, %v1252_v34  ;;  %v1416_v21 = vmul.f32 %v5115_v51, %v1279_v37  ;;  %v5121_v39 = vpop.eup %5120 }
 0xb8f   :  { %v6034_v15 = vpop.permute.xlu0 %1227 }
 0xb90   :  { %7006 = vst [vmem:[#allocation9_spill] sm:$0xff] %v6034_v15  ;;  %v1269_v6 = vsel %vm271_vm2, %v1265_v22, 0.0  ;;  %1441 = vperm.xlu1 %4923, %v1416_v21   ;;  %vm6955_vm2 = vcmp.eq.s32.totalorder %v5637_v55, 7 }
 0xb91   :  { %v1273_v45 = vmul.f32 %v1269_v6, %v6034_v15 }
 0xb93   :  { %v1277_v49 = vsub.f32 %v1073_v43, %v1273_v45 }
 0xb94   :  { %1455 = vperm.xlu1 %4923, %v5117_v5  }
 0xb95   :  { %v1414_v3 = vmul.f32 %v5117_v5, %v1277_v49 }
 0xb97   :  { %1431 = vperm.xlu0 %4922, %v1414_v3  }
 0xb98   :  { %4924 = vset.pattern.permute.xlu1 %v7007_v24 }
 0xb99   :  { %1670 = vperm.xlu1 %4924, %v5119_v9  }
 0xb9b   :  { %4925 = vset.pattern.permute.xlu0 %v7007_v24 }
 0xb9d   :  { %1660 = vperm.xlu1 %4924, %v5121_v39  }
 0xbd7   :  { %v2080_v51 = vpop.permute.xlu1 %2079 }
 0xbd8   :  { %v2089_v21 = vmul.f32 %v2080_v51, %v6013_v2 }
 0xbda   :  { %v2095_v34 = vsel %vm2066_vm11, %v2089_v21, 0.0  ;;  %v6045_v43 = vpop.permute.xlu0 %2054  ;;  %v7010_v21 = vmov 0.0  }
 0xbdb   :  { %7008 = vst [vmem:[#allocation10_spill] sm:$0xff] %v6045_v43  ;;  %v2099_v22 = vmul.f32 %v2095_v34, %v6045_v43  ;;  %v2070_v6 = vpop.permute.xlu1 %2069  ;;  %v5123_v43 = vpop.eup %5122 }
 0xbdc   :  { %v2087_v45 = vmul.f32 %v2070_v6, %v6009_v18 }
 0xbdd   :  { %v6051_v5 = vsub.f32 %v5948_v19, %v2099_v22 }
 0xbde   :  { %v2093_v3 = vsel %vm2066_vm11, %v2087_v45, 0.0 }
 0xbdf   :  { %v6055_v24 = vpop.permute.xlu1 %2044  ;;  %4673 = vmatprep.subr.msk.mxu0 %vm6955_vm2, %v6051_v5 }
 0xbe0   :  { %7009 = vst [vmem:[#allocation11_spill] sm:$0xff] %v6055_v24  ;;  %v2097_v51 = vmul.f32 %v2093_v3, %v6055_v24  ;;  %4674 = vmatpush3.msk.msra.mxu0 %vm6955_vm2, %v6051_v5  ;;  %vm6962_vm2 = vcmp.eq.s32.totalorder %v5529_v14, 3 }
 0xbe1   :  { %4675 = vmatprep.subr.mxu0 %v7010_v21 }
 0xbe2   :  { %v6067_v19 = vsub.f32 %v5965_v53, %v2097_v51  ;;  %4676 = vmatpush3.msra.mxu0 %v7010_v21  ;;  %v1466_v53 = vpop.permute.xlu0 %1465 }
 0xbe3   :  { %v1471_v34 = vmul.f32 %v5817_v0, %v1466_v53 }
 0xbe4   :  { %4677 = vmatprep.subr.msk.mxu0 %vm6956_vm3, %v6067_v19 }
 0xbe5   :  { %4678 = vmatpush3.msk.msra.mxu0 %vm6956_vm3, %v6067_v19  ;;  %v1475_v22 = vsel %vm232_vm1, %v1471_v34, 0.0  ;;  %v7012_v34 = vmov 5   ;;  %vm6961_vm3 = vcmp.eq.s32.totalorder %v5529_v14, 4 }
 0xbe6   :  { %4680 = vmatmul.mubr.msk.f32.vlgmr.msra.gmra.mxu0 %vm68_vm0, %v5657_v8 }
 0xbe7   :  { %4682 = vmatprep.mubr.msk.f32.mxu0 %vm68_vm0, %v5664_v30 }
 0xbea   :  { %4683 = vmatmul.mubr.msk.f32.gmra.mxu0 %vm68_vm0, %v5675_v40 }
 0xbeb   :  { %4707 = vmatprep.mubr.msk.f32.mxu0 %vm68_vm0, %v5627_v13 }
 0xc0b   :  { %v6088_v6 = vpop.permute.xlu1 %1441 }
 0xc0c   :  { %v1479_v8 = vmul.f32 %v1475_v22, %v6088_v6 }
 0xc0e   :  { %v1483_v45 = vsub.f32 %v1279_v37, %v1479_v8 }
 0xc0f   :  { %v1456_v30 = vpop.permute.xlu1 %1455 }
 0xc10   :  { %v1469_v3 = vmul.f32 %v5813_v36, %v1456_v30  ;;  %v1620_v40 = vmul.f32 %v5119_v9, %v1483_v45 }
 0xc12   :  { %1645 = vperm.xlu0 %4925, %v1620_v40   ;;  %v1473_v13 = vsel %vm232_vm1, %v1469_v3, 0.0  ;;  %v6094_v51 = vpop.permute.xlu0 %1431  ;;  %vm6957_vm1 = vcmp.eq.s32.totalorder %v5529_v14, 0 }
 0xc13   :  { %7011 = vst [vmem:[#allocation12_spill] sm:$0xff] %v6094_v51  ;;  %v1477_v0 = vmul.f32 %v1473_v13, %v6094_v51  ;;  %v5125_v13 = vpop.eup %5124  ;;  %v6965_v51 = vmov 7  }
 0xc14   :  { %v1671_v37 = vpop.permute.xlu1 %1670 }
 0xc15   :  { %v1481_v53 = vsub.f32 %v1277_v49, %v1477_v0  ;;  %v1676_v36 = vmul.f32 %v5864_v27, %v1671_v37  ;;  %v5127_v37 = vpop.eup %5126 }
 0xc16   :  { %4926 = vset.pattern.permute.xlu0 %v7012_v34 }
 0xc17   :  { %v1618_v24 = vmul.f32 %v5121_v39, %v1481_v53  ;;  %1877 = vperm.xlu0 %4926, %v5123_v43   ;;  %v1682_v22 = vsel %vm1652_vm8, %v1676_v36, 0.0 }
 0xc18   :  { %v1661_v9 = vpop.permute.xlu1 %1660 }
 0xc19   :  { %1635 = vperm.xlu1 %4924, %v1618_v24   ;;  %v1674_v49 = vmul.f32 %v5859_v26, %v1661_v9  ;;  %v5129_v26 = vpop.eup %5128 }
 0xc1b   :  { %v1680_v24 = vsel %vm1652_vm8, %v1674_v49, 0.0  ;;  %vm6958_vm8 = vcmp.eq.s32.totalorder %v5529_v14, 1 }
 0xc1d   :  { %4927 = vset.pattern.permute.xlu1 %v7012_v34 }
 0xc8d   :  { %v1646_v8 = vpop.permute.xlu0 %1645 }
 0xc8e   :  { %v1686_v30 = vmul.f32 %v1682_v22, %v1646_v8 }
 0xc90   :  { %v1690_v39 = vsub.f32 %v1483_v45, %v1686_v30 }
 0xc92   :  { %v1827_v3 = vmul.f32 %v5123_v43, %v1690_v39  ;;  %v1878_v36 = vpop.permute.xlu0 %1877 }
 0xc93   :  { %v1883_v22 = vmul.f32 %v5918_v17, %v1878_v36 }
 0xc94   :  { %v6108_v27 = vpop.permute.xlu1 %1635  ;;  %1852 = vperm.xlu1 %4927, %v1827_v3  }
 0xc95   :  { %7013 = vst [vmem:[#allocation13_spill] sm:$0xff] %v6108_v27  ;;  %v1684_v40 = vmul.f32 %v1680_v24, %v6108_v27 }
 0xc97   :  { %v1688_v0 = vsub.f32 %v1481_v53, %v1684_v40  ;;  %v1889_v53 = vsel %vm1859_vm7, %v1883_v22, 0.0 }
 0xc98   :  { %1867 = vperm.xlu1 %4927, %v5125_v13  }
 0xc99   :  { %v1825_v34 = vmul.f32 %v5125_v13, %v1688_v0 }
 0xc9b   :  { %1842 = vperm.xlu0 %4926, %v1825_v34  }
 0xc9c   :  { %4928 = vset.pattern.permute.xlu1 %v7005_v61 }
 0xc9d   :  { %2084 = vperm.xlu1 %4928, %v5127_v37  }
 0xc9f   :  { %4929 = vset.pattern.permute.xlu0 %v7005_v61 }
 0xca1   :  { %2074 = vperm.xlu1 %4928, %v5129_v26  }
 0xca6   :  { %v6113_v43 = vpop.f32.mrf.mxu0 }
 0xca8   :  { %v6115_v45 = vpop.f32.mrf.mxu0 }
 0xcaa   :  { %v4684_v9 = vpop.f32.mrf.mxu0 }
 0xcab   :  { %5130 = vrsqrt.f32 %v4684_v9 }
 0xcac   :  { %5132 = vrsqrt.f32 %v6113_v43 }
 0xcb8   :  { %v5131_v17 = vpop.eup %5130 }
 0xd0f   :  { %v1853_v30 = vpop.permute.xlu1 %1852 }
 0xd10   :  { %v1893_v49 = vmul.f32 %v1889_v53, %v1853_v30 }
 0xd12   :  { %v1897_v3 = vsub.f32 %v1690_v39, %v1893_v49  ;;  %v832_v39 = vsel %vm6957_vm1, %v5969_v60, 0.0  ;;  %vm6960_vm1 = vcmp.eq.s32.totalorder %v5529_v14, 5 }
 0xd13   :  { %v1868_v24 = vpop.permute.xlu1 %1867 }
 0xd14   :  { %v1881_v61 = vmul.f32 %v5914_v25, %v1868_v24  ;;  %v2034_v40 = vmul.f32 %v5127_v37, %v1897_v3 }
 0xd16   :  { %2059 = vperm.xlu0 %4929, %v2034_v40   ;;  %v1887_v13 = vsel %vm1859_vm7, %v1881_v61, 0.0  ;;  %v6123_v34 = vpop.permute.xlu0 %1842  ;;  %vm6963_vm7 = vcmp.eq.s32.totalorder %v5529_v14, 2 }
 0xd17   :  { %7014 = vst [vmem:[#allocation14_spill] sm:$0xff] %v6123_v34  ;;  %v1891_v27 = vmul.f32 %v1887_v13, %v6123_v34 }
 0xd18   :  { %v2085_v25 = vpop.permute.xlu1 %2084 }
 0xd19   :  { %v1895_v36 = vsub.f32 %v1688_v0, %v1891_v27  ;;  %v1039_v27 = vsel %vm6958_vm8, %v5996_v59, %v832_v39  ;;  %v2090_v0 = vmul.f32 %v6011_v52, %v2085_v25  ;;  %vm6959_vm8 = vcmp.eq.s32.totalorder %v5529_v14, 6 }
 0xd1a   :  { %4930 = vset.pattern.permute.xlu0 %v6965_v51  ;;  %v1243_v37 = vsel %vm6963_vm7, %v6028_v32, %v1039_v27 }
 0xd1b   :  { %v2032_v22 = vmul.f32 %v5129_v26, %v1895_v36  ;;  %2291 = vperm.xlu0 %4930, %v5131_v17   ;;  %v1447_v60 = vsel %vm6962_vm2, %v6088_v6, %v1243_v37  ;;  %v2096_v32 = vsel %vm2066_vm11, %v2090_v0, 0.0  ;;  %v616_v0 = vadd.s32 24, %v5634_v1 }
 0xd1c   :  { %v1651_v59 = vsel %vm6961_vm3, %v1646_v8, %v1447_v60  ;;  %v2075_v26 = vpop.permute.xlu1 %2074 }
 0xd1d   :  { %2049 = vperm.xlu1 %4928, %v2032_v22   ;;  %v1858_v52 = vsel %vm6960_vm1, %v1853_v30, %v1651_v59  ;;  %v2088_v24 = vmul.f32 %v6007_v10, %v2075_v26  ;;  %v5133_v22 = vpop.eup %5132  ;;  %v6167_v10 = vand.u32 15, %v616_v0  ;;  %v614_v59 = vadd.s32 8, %v5634_v1 }
 0xd1f   :  { %v2094_v8 = vsel %vm2066_vm11, %v2088_v24, 0.0  ;;  %vm6968_vm11 = vcmp.eq.s32.totalorder %v6167_v10, 8  ;;  %v6203_v24 = vld [vmem:[%s6929_s5 + $0x10] sm:$0xff]  ;;  %vm6967_vm3 = vcmp.eq.s32.totalorder %v6167_v10, 9 }
 0xd21   :  { %4931 = vset.pattern.permute.xlu1 %v6965_v51 }
 0xd91   :  { %v2060_v53 = vpop.permute.xlu0 %2059 }
 0xd92   :  { %v6157_v49 = vsel %vm6959_vm8, %v2060_v53, %v1858_v52  ;;  %v2100_v6 = vmul.f32 %v2096_v32, %v2060_v53  ;;  %vm2273_vm8 = vcmp.ge.s32.totalorder %v5529_v14, 7 }
 0xd94   :  { %v2104_v61 = vsub.f32 %v1897_v3, %v2100_v6  ;;  %v6196_v6 = vld [vmem:[%s6929_s5 + $0x8] sm:$0xff] }
 0xd96   :  { %v2241_v40 = vmul.f32 %v5131_v17, %v2104_v61  ;;  %v2292_v27 = vpop.permute.xlu0 %2291 }
 0xd97   :  { %v2297_v37 = vmul.f32 %v4684_v9, %v2292_v27  ;;  %v6177_v9 = vand.u32 15, %v614_v59 }
 0xd98   :  { %v6162_v13 = vpop.permute.xlu1 %2049  ;;  %2266 = vperm.xlu1 %4931, %v2241_v40   ;;  %v6217_v40 = vld [vmem:[%s6929_s5] sm:$0xff] }
 0xd99   :  { %7015 = vst [vmem:[#allocation15_spill] sm:$0xff] %v6162_v13  ;;  %v2098_v30 = vmul.f32 %v2094_v8, %v6162_v13  ;;  %v2303_v3 = vsel %vm2273_vm8, %v2297_v37, 0.0  ;;  %vm6970_vm1 = vcmp.eq.s32.totalorder %v6177_v9, 8  ;;  %v6971_v8 = vmov 8  }
 0xd9a   :  { %vm6969_vm2 = vcmp.eq.s32.totalorder %v6177_v9, 9  ;;  %vm2649_vm7 = vcmp.ge.s32.totalorder %v6177_v9, 9 }
 0xd9b   :  { %v2102_v25 = vsub.f32 %v1895_v36, %v2098_v30 }
 0xd9c   :  { %2281 = vperm.xlu1 %4931, %v5133_v22  }
 0xd9d   :  { %v2239_v39 = vmul.f32 %v5133_v22, %v2102_v25 }
 0xd9f   :  { %2256 = vperm.xlu0 %4930, %v2239_v39  }
 0xda0   :  { %4932 = vset.pattern.permute.xlu1 %v6971_v8 }
 0xda3   :  { %4933 = vset.pattern.permute.xlu0 %v6971_v8 }
 0xe13   :  { %v6169_v17 = vpop.permute.xlu1 %2266 }
 0xe14   :  { %v2307_v60 = vmul.f32 %v2303_v3, %v6169_v17 }
 0xe16   :  { %v2311_v36 = vsub.f32 %v2104_v61, %v2307_v60  ;;  %v6210_v61 = vld [vmem:[%s6929_s5 + $0x18] sm:$0xff]  ;;  %s5254_s5 = smov 124  }
 0xe17   :  { %v2282_v52 = vpop.permute.xlu1 %2281 }
 0xe18   :  { %v2295_v26 = vmul.f32 %v6113_v43, %v2282_v52  ;;  %4685 = vmatprep.subr.msk.mxu1 %vm6968_vm11, %v2311_v36 }
 0xe19   :  { %4686 = vmatpush3.msk.msra.mxu1 %vm6968_vm11, %v2311_v36  ;;  %vm6974_vm11 = vcmp.eq.s32.totalorder %v5529_v14, 8 }
 0xe1a   :  { %v2301_v32 = vsel %vm2273_vm8, %v2295_v26, 0.0  ;;  %v6181_v53 = vpop.permute.xlu0 %2256  ;;  %4687 = vmatprep.subr.mxu1 %v7010_v21  ;;  %vm2480_vm8 = vcmp.ge.s32.totalorder %v5529_v14, 8 }
 0xe1b   :  { %7016 = vst [vmem:[#allocation16_spill] sm:$0xff] %v6181_v53  ;;  %v2305_v1 = vmul.f32 %v2301_v32, %v6181_v53  ;;  %4688 = vmatpush3.msra.mxu1 %v7010_v21 }
 0xe1d   :  { %v2309_v43 = vsub.f32 %v2102_v25, %v2305_v1 }
 0xe1f   :  { %4689 = vmatprep.subr.msk.mxu1 %vm6970_vm1, %v2309_v43 }
 0xe20   :  { %4690 = vmatpush3.msk.msra.mxu1 %vm6970_vm1, %v2309_v43  ;;  %vm6973_vm1 = vcmp.eq.s32.totalorder %v5529_v14, 9 }
 0xe21   :  { %4691 = vmatprep.subr.mxu1 %v7010_v21 }
 0xe22   :  { %4692 = vmatpush3.msra.mxu1 %v7010_v21 }
 0xe23   :  { %4694 = vmatmul.mubr.msk.f32.vlgmr.msra.gmra.mxu1 %vm68_vm0, %v6196_v6 }
 0xe24   :  { %4696 = vmatprep.mubr.msk.f32.mxu1 %vm68_vm0, %v6203_v24 }
 0xe27   :  { %4697 = vmatmul.mubr.msk.f32.gmra.mxu1 %vm68_vm0, %v6210_v61 }
 0xe28   :  { %4721 = vmatprep.mubr.msk.f32.mxu1 %vm68_vm0, %v6217_v40 }
 0xee3   :  { %v6223_v30 = vpop.f32.mrf.mxu1 }
 0xee5   :  { %v2394_v22 = vpop.f32.mrf.mxu1 }
 0xee7   :  { %v6225_v25 = vpop.f32.mrf.mxu1 }
 0xee8   :  { %5134 = vrsqrt.f32 %v6225_v25 }
 0xee9   :  { %v2404_v39 = vpop.f32.mrf.mxu1  ;;  %5136 = vrsqrt.f32 %v6223_v30 }
 0xef5   :  { %v5135_v27 = vpop.eup %5134 }
 0xef6   :  { %2498 = vperm.xlu1 %4932, %v5135_v27   ;;  %v2448_v0 = vmul.f32 %v5135_v27, %v2311_v36  ;;  %v5137_v37 = vpop.eup %5136 }
 0xef7   :  { %v2446_v3 = vmul.f32 %v5137_v37, %v2309_v43 }
 0xef8   :  { %2473 = vperm.xlu0 %4933, %v2448_v0  }
 0xefa   :  { %2488 = vperm.xlu1 %4932, %v5137_v37  }
 0xefe   :  { %2463 = vperm.xlu1 %4932, %v2446_v3  }
 0xf71   :  { %v2499_v60 = vpop.permute.xlu1 %2498 }
 0xf72   :  { %v2504_v59 = vmul.f32 %v6225_v25, %v2499_v60 }
 0xf73   :  { %v2474_v52 = vpop.permute.xlu0 %2473 }
 0xf74   :  { %v2510_v26 = vsel %vm2480_vm8, %v2504_v59, 0.0 }
 0xf75   :  { %v2514_v32 = vmul.f32 %v2510_v26, %v2474_v52  ;;  %v2489_v1 = vpop.permute.xlu1 %2488 }
 0xf76   :  { %v2502_v22 = vmul.f32 %v6223_v30, %v2489_v1 }
 0xf77   :  { %v2518_v39 = vsub.f32 %v2311_v36, %v2514_v32  ;;  %v6964_v36 = vmov 9  }
 0xf78   :  { %v2508_v27 = vsel %vm2480_vm8, %v2502_v22, 0.0  ;;  %4934 = vset.pattern.permute.xlu0 %v6964_v36  ;;  %4935 = vset.pattern.permute.xlu1 %v6964_v36  ;;  %vm2651_vm8 = vcmp.ge.s32.totalorder %v6167_v10, 9 }
 0xf79   :  { %v6233_v0 = vpop.permute.xlu1 %2463  ;;  %4699 = vmatprep.subr.msk.mxu0 %vm6967_vm3, %v2518_v39 }
 0xf7a   :  { %7017 = vst [vmem:[#allocation17_spill] sm:$0xff] %v6233_v0  ;;  %v2512_v37 = vmul.f32 %v2508_v27, %v6233_v0  ;;  %4700 = vmatpush3.msk.msra.mxu0 %vm6967_vm3, %v2518_v39  ;;  %vm6980_vm3 = vcmp.eq.s32.totalorder %v5529_v14, 7 }
 0xf7b   :  { %4701 = vmatprep.subr.mxu0 %v7010_v21 }
 0xf7c   :  { %v2516_v3 = vsub.f32 %v2309_v43, %v2512_v37  ;;  %4702 = vmatpush3.msra.mxu0 %v7010_v21  ;;  %v6259_v43 = vpop.f32.mrf.mxu0 }
 0xf7e   :  { %4703 = vmatprep.subr.msk.mxu0 %vm6969_vm2, %v2516_v3 }
 0xf7f   :  { %4704 = vmatpush3.msk.msra.mxu0 %vm6969_vm2, %v2516_v3  ;;  %vm2687_vm2 = vcmp.ge.s32.totalorder %v5529_v14, 9 }
 0xf80   :  { %4705 = vmatprep.subr.mxu0 %v7010_v21 }
 0xf81   :  { %4706 = vmatpush3.msra.mxu0 %v7010_v21 }
 0xf82   :  { %4708 = vmatmul.mubr.msk.f32.vlgmr.msra.gmra.mxu0 %vm68_vm0, %v6196_v6 }
 0xf83   :  { %4710 = vmatprep.mubr.msk.f32.mxu0 %vm68_vm0, %v6203_v24 }
 0xf86   :  { %4711 = vmatmul.mubr.msk.f32.gmra.mxu0 %vm68_vm0, %v6210_v61 }
 0xf87   :  { %4735 = vmatprep.mubr.msk.f32.mxu0 %vm68_vm0, %v6217_v40 }
0x1042   :  { %v6261_v60 = vpop.f32.mrf.mxu0 }
0x1043   :  { %5138 = vrsqrt.f32 %v6261_v60 }
0x1044   :  { %v2601_v59 = vpop.f32.mrf.mxu0 }
0x1046   :  { %v6264_v26 = vpop.f32.mrf.mxu0 }
0x1047   :  { %5140 = vrsqrt.f32 %v6264_v26 }
0x1048   :  { %v2611_v32 = vpop.f32.mrf.mxu0 }
0x1050   :  { %v5139_v1 = vpop.eup %5138 }
0x1051   :  { %v2653_v27 = vmul.f32 %v5139_v1, %v2516_v3 }
0x1053   :  { %v2657_v51 = vsel %vm2649_vm7, %v2653_v27, 0.0  ;;  %vm6982_vm7 = vcmp.eq.s32.totalorder %v6167_v10, 10 }
0x1054   :  { %v5141_v22 = vpop.eup %5140 }
0x1055   :  { %2705 = vperm.xlu0 %4934, %v5141_v22   ;;  %v2655_v37 = vmul.f32 %v5141_v22, %v2518_v39  ;;  %v2272_v22 = vsel %vm6980_vm3, %v6169_v17, %v6157_v49  ;;  %vm3063_vm3 = vcmp.ge.s32.totalorder %v6177_v9, 11 }
0x1057   :  { %v2659_v36 = vsel %vm2651_vm8, %v2655_v37, 0.0  ;;  %vm2727_vm8 = vcmp.eq.s32.totalorder %v6177_v9, 10 }
0x1058   :  { %2680 = vperm.xlu1 %4935, %v2659_v36  }
0x1059   :  { %2670 = vperm.xlu0 %4934, %v2657_v51   ;;  %v2479_v51 = vsel %vm6974_vm11, %v2474_v52, %v2272_v22  ;;  %vm2894_vm11 = vcmp.ge.s32.totalorder %v5529_v14, 10 }
0x105c   :  { %2695 = vperm.xlu1 %4935, %v5139_v1  }
0x10d0   :  { %v2706_v59 = vpop.permute.xlu0 %2705 }
0x10d1   :  { %v2711_v32 = vmul.f32 %v6264_v26, %v2706_v59 }
0x10d3   :  { %v2717_v36 = vsel %vm2687_vm2, %v2711_v32, 0.0  ;;  %v2681_v1 = vpop.permute.xlu1 %2680 }
0x10d4   :  { %v6284_v27 = vsel %vm6973_vm1, %v2681_v1, %v2479_v51  ;;  %v2721_v37 = vmul.f32 %v2717_v36, %v2681_v1  ;;  %v6292_v49 = vpop.permute.xlu0 %2670  ;;  %vm2856_vm1 = vcmp.ge.s32.totalorder %v6177_v9, 10 }
0x10d5   :  { %7018 = vst [vmem:[#allocation18_spill] sm:$0xff] %v6292_v49 }
0x10d6   :  { %v2725_v59 = vsub.f32 %v2518_v39, %v2721_v37  ;;  %v6975_v39 = vmov 10  }
0x10d7   :  { %v2696_v8 = vpop.permute.xlu1 %2695  ;;  %4936 = vset.pattern.permute.xlu1 %v6975_v39  ;;  %4937 = vset.pattern.permute.xlu0 %v6975_v39 }
0x10d8   :  { %v2709_v0 = vmul.f32 %v6261_v60, %v2696_v8  ;;  %4713 = vmatprep.subr.msk.mxu1 %vm6982_vm7, %v2725_v59 }
0x10d9   :  { %4714 = vmatpush3.msk.msra.mxu1 %vm6982_vm7, %v2725_v59  ;;  %vm3101_vm7 = vcmp.ge.s32.totalorder %v5529_v14, 11 }
0x10da   :  { %v2715_v17 = vsel %vm2687_vm2, %v2709_v0, 0.0  ;;  %4715 = vmatprep.subr.mxu1 %v7010_v21  ;;  %vm2858_vm2 = vcmp.ge.s32.totalorder %v6167_v10, 10 }
0x10db   :  { %v2719_v52 = vmul.f32 %v2715_v17, %v6292_v49  ;;  %4716 = vmatpush3.msra.mxu1 %v7010_v21 }
0x10dd   :  { %v2723_v8 = vsub.f32 %v2516_v3, %v2719_v52 }
0x10df   :  { %4717 = vmatprep.subr.msk.mxu1 %vm2727_vm8, %v2723_v8 }
0x10e0   :  { %4718 = vmatpush3.msk.msra.mxu1 %vm2727_vm8, %v2723_v8 }
0x10e1   :  { %4719 = vmatprep.subr.mxu1 %v7010_v21 }
0x10e2   :  { %4720 = vmatpush3.msra.mxu1 %v7010_v21 }
0x10e3   :  { %4722 = vmatmul.mubr.msk.f32.vlgmr.msra.gmra.mxu1 %vm68_vm0, %v6196_v6 }
0x10e4   :  { %4724 = vmatprep.mubr.msk.f32.mxu1 %vm68_vm0, %v6203_v24 }
0x10e7   :  { %4725 = vmatmul.mubr.msk.f32.gmra.mxu1 %vm68_vm0, %v6210_v61 }
0x10e8   :  { %4749 = vmatprep.mubr.msk.f32.mxu1 %vm68_vm0, %v6217_v40 }
0x11a3   :  { %v6316_v0 = vpop.f32.mrf.mxu1 }
0x11a5   :  { %v2808_v3 = vpop.f32.mrf.mxu1 }
0x11a7   :  { %v6318_v32 = vpop.f32.mrf.mxu1 }
0x11a8   :  { %5142 = vrsqrt.f32 %v6318_v32 }
0x11a9   :  { %5144 = vrsqrt.f32 %v6316_v0  ;;  %v2818_v22 = vpop.f32.mrf.mxu1 }
0x11b5   :  { %v5143_v51 = vpop.eup %5142 }
0x11b6   :  { %v5145_v36 = vpop.eup %5144  ;;  %2912 = vperm.xlu1 %4936, %v5143_v51   ;;  %v2862_v1 = vmul.f32 %v5143_v51, %v2725_v59 }
0x11b7   :  { %v2860_v17 = vmul.f32 %v5145_v36, %v2723_v8 }
0x11b8   :  { %v2866_v37 = vsel %vm2858_vm2, %v2862_v1, 0.0  ;;  %vm6981_vm2 = vcmp.eq.s32.totalorder %v6167_v10, 11 }
0x11b9   :  { %2887 = vperm.xlu0 %4937, %v2866_v37   ;;  %v2864_v52 = vsel %vm2856_vm1, %v2860_v17, 0.0  ;;  %vm6983_vm1 = vcmp.eq.s32.totalorder %v6177_v9, 11 }
0x11ba   :  { %2902 = vperm.xlu1 %4936, %v5145_v36  }
0x11be   :  { %2877 = vperm.xlu1 %4936, %v2864_v52  }
0x1231   :  { %v2913_v3 = vpop.permute.xlu1 %2912 }
0x1232   :  { %v2918_v39 = vmul.f32 %v6318_v32, %v2913_v3 }
0x1234   :  { %v2924_v22 = vsel %vm2894_vm11, %v2918_v39, 0.0  ;;  %v2888_v49 = vpop.permute.xlu0 %2887 }
0x1235   :  { %v2928_v53 = vmul.f32 %v2924_v22, %v2888_v49  ;;  %v2903_v13 = vpop.permute.xlu1 %2902 }
0x1236   :  { %v2916_v34 = vmul.f32 %v6316_v0, %v2903_v13 }
0x1237   :  { %v2932_v51 = vsub.f32 %v2725_v59, %v2928_v53 }
0x1238   :  { %v2922_v1 = vsel %vm2894_vm11, %v2916_v34, 0.0  ;;  %v6984_v34 = vmov 11   ;;  %vm3065_vm11 = vcmp.ge.s32.totalorder %v6167_v10, 11 }
0x1239   :  { %v6328_v36 = vpop.permute.xlu1 %2877  ;;  %4727 = vmatprep.subr.msk.mxu0 %vm6981_vm2, %v2932_v51  ;;  %4938 = vset.pattern.permute.xlu0 %v6984_v34 }
0x123a   :  { %7019 = vst [vmem:[#allocation19_spill] sm:$0xff] %v6328_v36  ;;  %v2926_v37 = vmul.f32 %v2922_v1, %v6328_v36  ;;  %4728 = vmatpush3.msk.msra.mxu0 %vm6981_vm2, %v2932_v51  ;;  %4939 = vset.pattern.permute.xlu1 %v6984_v34  ;;  %vm6987_vm2 = vcmp.eq.s32.totalorder %v5529_v14, 10 }
0x123b   :  { %4729 = vmatprep.subr.mxu0 %v7010_v21 }
0x123c   :  { %v2930_v39 = vsub.f32 %v2723_v8, %v2926_v37  ;;  %4730 = vmatpush3.msra.mxu0 %v7010_v21 }
0x123e   :  { %4731 = vmatprep.subr.msk.mxu0 %vm6983_vm1, %v2930_v39 }
0x123f   :  { %4732 = vmatpush3.msk.msra.mxu0 %vm6983_vm1, %v2930_v39  ;;  %vm6986_vm1 = vcmp.eq.s32.totalorder %v5529_v14, 11 }
0x1240   :  { %4733 = vmatprep.subr.mxu0 %v7010_v21 }
0x1241   :  { %4734 = vmatpush3.msra.mxu0 %v7010_v21 }
0x1242   :  { %4736 = vmatmul.mubr.msk.f32.vlgmr.msra.gmra.mxu0 %vm68_vm0, %v6196_v6 }
0x1243   :  { %4738 = vmatprep.mubr.msk.f32.mxu0 %vm68_vm0, %v6203_v24 }
0x1246   :  { %4739 = vmatmul.mubr.msk.f32.gmra.mxu0 %vm68_vm0, %v6210_v61 }
0x1247   :  { %4763 = vmatprep.mubr.msk.f32.mxu0 %vm68_vm0, %v6217_v40 }
0x1302   :  { %v6354_v13 = vpop.f32.mrf.mxu0 }
0x1303   :  { %5146 = vrsqrt.f32 %v6354_v13 }
0x1304   :  { %v3015_v53 = vpop.f32.mrf.mxu0 }
0x1306   :  { %v6357_v59 = vpop.f32.mrf.mxu0 }
0x1307   :  { %5148 = vrsqrt.f32 %v6357_v59 }
0x1308   :  { %v3025_v8 = vpop.f32.mrf.mxu0 }
0x1310   :  { %v5147_v17 = vpop.eup %5146 }
0x1311   :  { %v3067_v3 = vmul.f32 %v5147_v17, %v2930_v39 }
0x1313   :  { %v3071_v37 = vsel %vm3063_vm3, %v3067_v3, 0.0  ;;  %vm6995_vm3 = vcmp.eq.s32.totalorder %v6167_v10, 12 }
0x1314   :  { %v5149_v52 = vpop.eup %5148 }
0x1315   :  { %3119 = vperm.xlu0 %4938, %v5149_v52   ;;  %v3069_v22 = vmul.f32 %v5149_v52, %v2932_v51  ;;  %v2893_v52 = vsel %vm6987_vm2, %v2888_v49, %v6284_v27  ;;  %vm3308_vm2 = vcmp.ge.s32.totalorder %v5529_v14, 12 }
0x1317   :  { %v3073_v1 = vsel %vm3065_vm11, %v3069_v22, 0.0  ;;  %vm6997_vm11 = vcmp.eq.s32.totalorder %v6177_v9, 12 }
0x1318   :  { %3094 = vperm.xlu1 %4939, %v3073_v1  }
0x1319   :  { %3084 = vperm.xlu0 %4938, %v3071_v37  }
0x131c   :  { %3109 = vperm.xlu1 %4939, %v5147_v17  }
0x1390   :  { %v3120_v53 = vpop.permute.xlu0 %3119 }
0x1391   :  { %v3125_v8 = vmul.f32 %v6357_v59, %v3120_v53 }
0x1393   :  { %v3131_v22 = vsel %vm3101_vm7, %v3125_v8, 0.0  ;;  %v3095_v1 = vpop.permute.xlu1 %3094 }
0x1394   :  { %v6373_v17 = vsel %vm6986_vm1, %v3095_v1, %v2893_v52  ;;  %v3135_v3 = vmul.f32 %v3131_v22, %v3095_v1  ;;  %v6381_v27 = vpop.permute.xlu0 %3084  ;;  %vm3270_vm1 = vcmp.ge.s32.totalorder %v6177_v9, 12 }
0x1395   :  { %7020 = vst [vmem:[#allocation20_spill] sm:$0xff] %v6381_v27 }
0x1396   :  { %v3139_v37 = vsub.f32 %v2932_v51, %v3135_v3 }
0x1397   :  { %v3110_v34 = vpop.permute.xlu1 %3109 }
0x1398   :  { %v3123_v53 = vmul.f32 %v6354_v13, %v3110_v34  ;;  %4741 = vmatprep.subr.msk.mxu1 %vm6995_vm3, %v3139_v37 }
0x1399   :  { %4742 = vmatpush3.msk.msra.mxu1 %vm6995_vm3, %v3139_v37  ;;  %vm3281_vm3 = vcmp.eq.s32.totalorder %v5529_v14, 12 }
0x139a   :  { %v3129_v49 = vsel %vm3101_vm7, %v3123_v53, 0.0  ;;  %4743 = vmatprep.subr.mxu1 %v7010_v21  ;;  %vm3272_vm7 = vcmp.ge.s32.totalorder %v6167_v10, 12 }
0x139b   :  { %v3133_v8 = vmul.f32 %v3129_v49, %v6381_v27  ;;  %4744 = vmatpush3.msra.mxu1 %v7010_v21 }
0x139d   :  { %v3137_v51 = vsub.f32 %v2930_v39, %v3133_v8  ;;  %v6988_v39 = vmov 12  }
0x139e   :  { %4940 = vset.pattern.permute.xlu1 %v6988_v39  ;;  %4941 = vset.pattern.permute.xlu0 %v6988_v39 }
0x139f   :  { %4745 = vmatprep.subr.msk.mxu1 %vm6997_vm11, %v3137_v51 }
0x13a0   :  { %4746 = vmatpush3.msk.msra.mxu1 %vm6997_vm11, %v3137_v51  ;;  %vm6999_vm11 = vcmp.eq.s32.totalorder %v5529_v14, 13 }
0x13a1   :  { %4747 = vmatprep.subr.mxu1 %v7010_v21 }
0x13a2   :  { %4748 = vmatpush3.msra.mxu1 %v7010_v21 }
0x13a3   :  { %4750 = vmatmul.mubr.msk.f32.vlgmr.msra.gmra.mxu1 %vm68_vm0, %v6196_v6 }
0x13a4   :  { %4752 = vmatprep.mubr.msk.f32.mxu1 %vm68_vm0, %v6203_v24 }
0x13a7   :  { %4753 = vmatmul.mubr.msk.f32.gmra.mxu1 %vm68_vm0, %v6210_v61 }
0x13a8   :  { %4777 = vmatprep.mubr.msk.f32.mxu1 %vm68_vm0, %v6217_v40 }
0x1463   :  { %v6405_v34 = vpop.f32.mrf.mxu1 }
0x1465   :  { %v3222_v52 = vpop.f32.mrf.mxu1 }
0x1467   :  { %v6407_v22 = vpop.f32.mrf.mxu1 }
0x1468   :  { %5150 = vrsqrt.f32 %v6407_v22 }
0x1469   :  { %5152 = vrsqrt.f32 %v6405_v34  ;;  %v3232_v1 = vpop.f32.mrf.mxu1 }
0x1475   :  { %v5151_v3 = vpop.eup %5150 }
0x1476   :  { %v5153_v53 = vpop.eup %5152  ;;  %3326 = vperm.xlu1 %4940, %v5151_v3   ;;  %v3276_v49 = vmul.f32 %v5151_v3, %v3139_v37 }
0x1477   :  { %v3274_v27 = vmul.f32 %v5153_v53, %v3137_v51 }
0x1478   :  { %v3280_v8 = vsel %vm3272_vm7, %v3276_v49, 0.0  ;;  %vm6994_vm7 = vcmp.eq.s32.totalorder %v6167_v10, 13 }
0x1479   :  { %3301 = vperm.xlu0 %4941, %v3280_v8   ;;  %v3278_v52 = vsel %vm3270_vm1, %v3274_v27, 0.0  ;;  %vm6996_vm1 = vcmp.eq.s32.totalorder %v6177_v9, 13 }
0x147a   :  { %3316 = vperm.xlu1 %4940, %v5153_v53  }
0x147e   :  { %3291 = vperm.xlu1 %4940, %v3278_v52  }
0x14f1   :  { %v3327_v39 = vpop.permute.xlu1 %3326 }
0x14f2   :  { %v3332_v36 = vmul.f32 %v6407_v22, %v3327_v39 }
0x14f4   :  { %v3338_v1 = vsel %vm3308_vm2, %v3332_v36, 0.0  ;;  %v3302_v15 = vpop.permute.xlu0 %3301 }
0x14f5   :  { %v3342_v50 = vmul.f32 %v3338_v1, %v3302_v15  ;;  %v3317_v57 = vpop.permute.xlu1 %3316 }
0x14f6   :  { %v3330_v54 = vmul.f32 %v6405_v34, %v3317_v57 }
0x14f7   :  { %v3346_v3 = vsub.f32 %v3139_v37, %v3342_v50 }
0x14f8   :  { %v3336_v49 = vsel %vm3308_vm2, %v3330_v54, 0.0  ;;  %v6998_v54 = vmov 13   ;;  %vm3479_vm2 = vcmp.ge.s32.totalorder %v6167_v10, 13 }
0x14f9   :  { %v6417_v53 = vpop.permute.xlu1 %3291  ;;  %4755 = vmatprep.subr.msk.mxu0 %vm6994_vm7, %v3346_v3  ;;  %4942 = vset.pattern.permute.xlu0 %v6998_v54 }
0x14fa   :  { %v3340_v27 = vmul.f32 %v3336_v49, %v6417_v53  ;;  %4756 = vmatpush3.msk.msra.mxu0 %vm6994_vm7, %v3346_v3  ;;  %4943 = vset.pattern.permute.xlu1 %v6998_v54  ;;  %vm3477_vm7 = vcmp.ge.s32.totalorder %v6177_v9, 13 }
0x14fb   :  { %4757 = vmatprep.subr.mxu0 %v7010_v21 }
0x14fc   :  { %v3344_v36 = vsub.f32 %v3137_v51, %v3340_v27  ;;  %4758 = vmatpush3.msra.mxu0 %v7010_v21 }
0x14fe   :  { %4759 = vmatprep.subr.msk.mxu0 %vm6996_vm1, %v3344_v36 }
0x14ff   :  { %4760 = vmatpush3.msk.msra.mxu0 %vm6996_vm1, %v3344_v36  ;;  %vm3515_vm1 = vcmp.ge.s32.totalorder %v5529_v14, 13 }
0x1500   :  { %4761 = vmatprep.subr.mxu0 %v7010_v21 }
0x1501   :  { %4762 = vmatpush3.msra.mxu0 %v7010_v21 }
0x1502   :  { %4764 = vmatmul.mubr.msk.f32.vlgmr.msra.gmra.mxu0 %vm68_vm0, %v6196_v6 }
0x1503   :  { %4766 = vmatprep.mubr.msk.f32.mxu0 %vm68_vm0, %v6203_v24 }
0x1506   :  { %4767 = vmatmul.mubr.msk.f32.gmra.mxu0 %vm68_vm0, %v6210_v61 }
0x1507   :  { %4791 = vmatprep.mubr.msk.f32.mxu0 %vm68_vm0, %v6217_v40 }
0x15c2   :  { %v6443_v57 = vpop.f32.mrf.mxu0 }
0x15c3   :  { %5154 = vrsqrt.f32 %v6443_v57 }
0x15c4   :  { %v3429_v50 = vpop.f32.mrf.mxu0 }
0x15c6   :  { %v6446_v37 = vpop.f32.mrf.mxu0 }
0x15c7   :  { %5156 = vrsqrt.f32 %v6446_v37 }
0x15c8   :  { %v3439_v51 = vpop.f32.mrf.mxu0 }
0x15c9   :  { %v3307_v51 = vsel %vm3281_vm3, %v3302_v15, %v6373_v17 }
0x15d0   :  { %v5155_v39 = vpop.eup %5154 }
0x15d1   :  { %v3481_v40 = vmul.f32 %v5155_v39, %v3344_v36 }
0x15d3   :  { %v3485_v49 = vsel %vm3477_vm7, %v3481_v40, 0.0  ;;  %vm3557_vm7 = vcmp.eq.s32.totalorder %v6167_v10, 14 }
0x15d4   :  { %v5157_v8 = vpop.eup %5156 }
0x15d5   :  { %3533 = vperm.xlu0 %4942, %v5157_v8   ;;  %v3483_v52 = vmul.f32 %v5157_v8, %v3346_v3 }
0x15d7   :  { %v3487_v1 = vsel %vm3479_vm2, %v3483_v52, 0.0  ;;  %vm3555_vm2 = vcmp.eq.s32.totalorder %v6177_v9, 14 }
0x15d8   :  { %3508 = vperm.xlu1 %4943, %v3487_v1  }
0x15d9   :  { %3498 = vperm.xlu0 %4942, %v3485_v49  }
0x15dc   :  { %3523 = vperm.xlu1 %4943, %v5155_v39  }
0x1650   :  { %v3534_v27 = vpop.permute.xlu0 %3533 }
0x1651   :  { %v3539_v50 = vmul.f32 %v6446_v37, %v3534_v27 }
0x1653   :  { %v3545_v8 = vsel %vm3515_vm1, %v3539_v50, 0.0  ;;  %v3509_v52 = vpop.permute.xlu1 %3508 }
0x1654   :  { %v6462_v39 = vsel %vm6999_vm11, %v3509_v52, %v3307_v51  ;;  %v3549_v40 = vmul.f32 %v3545_v8, %v3509_v52  ;;  %v6474_v15 = vpop.permute.xlu0 %3498  ;;  %vm3684_vm11 = vcmp.ge.s32.totalorder %v6177_v9, 14 }
0x1656   :  { %v6465_v1 = vsub.f32 %v3346_v3, %v3549_v40 }
0x1657   :  { %v3524_v49 = vpop.permute.xlu1 %3523 }
0x1658   :  { %v3537_v27 = vmul.f32 %v6443_v57, %v3524_v49  ;;  %4769 = vmatprep.subr.msk.mxu1 %vm3557_vm7, %v6465_v1 }
0x1659   :  { %4770 = vmatpush3.msk.msra.mxu1 %vm3557_vm7, %v6465_v1 }
0x165a   :  { %v3543_v17 = vsel %vm3515_vm1, %v3537_v27, 0.0  ;;  %4771 = vmatprep.subr.mxu1 %v7010_v21  ;;  %vm3686_vm1 = vcmp.ge.s32.totalorder %v6167_v10, 14 }
0x165b   :  { %v3547_v3 = vmul.f32 %v3543_v17, %v6474_v15  ;;  %4772 = vmatpush3.msra.mxu1 %v7010_v21 }
0x165d   :  { %v6482_v50 = vsub.f32 %v3344_v36, %v3547_v3  ;;  %v7000_v36 = vmov 14  }
0x165e   :  { %4944 = vset.pattern.permute.xlu1 %v7000_v36  ;;  %4945 = vset.pattern.permute.xlu0 %v7000_v36  ;;  %v7021_v36 = vmov 8  }
0x165f   :  { %4773 = vmatprep.subr.msk.mxu1 %vm3555_vm2, %v6482_v50 }
0x1660   :  { %4774 = vmatpush3.msk.msra.mxu1 %vm3555_vm2, %v6482_v50 }
0x1661   :  { %4775 = vmatprep.subr.mxu1 %v7010_v21 }
0x1662   :  { %4776 = vmatpush3.msra.mxu1 %v7010_v21 }
0x1663   :  { %4778 = vmatmul.mubr.msk.f32.vlgmr.msra.gmra.mxu1 %vm68_vm0, %v6196_v6 }
0x1664   :  { %4780 = vmatprep.mubr.msk.f32.mxu1 %vm68_vm0, %v6203_v24 }
0x1667   :  { %4781 = vmatmul.mubr.msk.f32.gmra.mxu1 %vm68_vm0, %v6210_v61 }
0x1723   :  { %v6500_v51 = vpop.f32.mrf.mxu1 }
0x1725   :  { %v3636_v8 = vpop.f32.mrf.mxu1 }
0x1726   :  { %v977_v8 = vsel %vm872_vm10, %v5723_v31, 0.0  ;;  %v979_v31 = vsel %vm874_vm9, %v5727_v47, 0.0  ;;  %v1183_v47 = vsel %vm1078_vm13, %v5774_v38, 0.0  ;;  %v2003_v38 = vsel %vm1898_vm15, %v6009_v18, 0.0 }
0x1727   :  { %v6502_v52 = vpop.f32.mrf.mxu1  ;;  %vm7023_vm9 = vcmp.eq.s32.totalorder %v5637_v55, 4  ;;  %vm7024_vm10 = vcmp.eq.s32.totalorder %v5637_v55, 5  ;;  %vm7025_vm13 = vcmp.eq.s32.totalorder %v5649_v11, 7  ;;  %vm7029_vm15 = vcmp.eq.s32.totalorder %v6177_v9, 9 }
0x1728   :  { %5158 = vrsqrt.f32 %v6502_v52 }
0x1729   :  { %5160 = vrsqrt.f32 %v6500_v51  ;;  %v3646_v40 = vpop.f32.mrf.mxu1 }
0x172a   :  { %5162 = vrsqrt.f32 %v6115_v45 }
0x1735   :  { %v5159_v49 = vpop.eup %5158 }
0x1736   :  { %v5161_v27 = vpop.eup %5160  ;;  %3740 = vperm.xlu1 %4944, %v5159_v49   ;;  %v3690_v17 = vmul.f32 %v5159_v49, %v6465_v1  ;;  %v1181_v49 = vsel %vm1076_vm14, %v5769_v33, 0.0  ;;  %v1385_v33 = vsel %vm1280_vm6, %v5815_v46, 0.0  ;;  %v1796_v46 = vsel %vm1691_vm12, %v5916_v62, 0.0 }
0x1737   :  { %v3688_v54 = vmul.f32 %v5161_v27, %v6482_v50  ;;  %v2210_v62 = vsel %vm7025_vm13, %v6115_v45, 0.0  ;;  %vm7026_vm14 = vcmp.eq.s32.totalorder %v5637_v55, 6  ;;  %vm7028_vm6 = vcmp.eq.s32.totalorder %v6177_v9, 8 }
0x1738   :  { %v3694_v3 = vsel %vm3686_vm1, %v3690_v17, 0.0  ;;  %v2418_v18 = vsel %vm7028_vm6, %v6223_v30, 0.0  ;;  %v2625_v17 = vsel %vm7029_vm15, %v6261_v60, 0.0  ;;  %v2832_v30 = vsel %vm2727_vm8, %v6316_v0, 0.0 }
0x1739   :  { %3715 = vperm.xlu0 %4945, %v3694_v3   ;;  %v3692_v40 = vsel %vm3684_vm11, %v3688_v54, 0.0  ;;  %v1589_v54 = vsel %vm1484_vm4, %v5861_v58, 0.0  ;;  %v1798_v58 = vsel %vm7024_vm10, %v5920_v4, 0.0  ;;  %vm7030_vm4 = vcmp.eq.s32.totalorder %v6167_v10, 8 }
0x173a   :  { %3730 = vperm.xlu1 %4944, %v5161_v27   ;;  %v7022_v27 = vmov 7   ;;  %vm7031_vm12 = vcmp.eq.s32.totalorder %v6177_v9, 11  ;;  %vm7032_vm11 = vcmp.eq.s32.totalorder %v6167_v10, 9  ;;  %vm7033_vm1 = vcmp.eq.s32.totalorder %v6167_v10, 10 }
0x173b   :  { %v3039_v60 = vsel %vm7031_vm12, %v6354_v13, 0.0  ;;  %v2834_v3 = vsel %vm7033_vm1, %v6318_v32, 0.0  ;;  %vm7034_vm8 = vcmp.eq.s32.totalorder %v6177_v9, 12  ;;  %vm7036_vm10 = vcmp.eq.s32.totalorder %v6167_v10, 11 }
0x173c   :  { %v3246_v0 = vsel %vm7034_vm8, %v6405_v34, 0.0  ;;  %v3041_v32 = vsel %vm7036_vm10, %v6357_v59, 0.0  ;;  %vm7037_vm13 = vcmp.eq.s32.totalorder %v6167_v10, 12  ;;  %v3660_v34 = vsel %vm3555_vm2, %v6500_v51, 0.0  ;;  %v5163_v59 = vpop.eup %5162 }
0x173d   :  { %985 = vrot.lane.b32.xlu0 %v977_v8, %s5241_s30  ;;  %v3248_v13 = vsel %vm7037_vm13, %v6407_v22, 0.0  ;;  %v3662_v22 = vsel %vm3557_vm7, %v6502_v52, 0.0  ;;  %vm2234_vm2 = vcmp.ge.s32.totalorder %v5649_v11, 7  ;;  %vm3722_vm7 = vcmp.ge.s32.totalorder %v5529_v14, 14 }
0x173e   :  { %3705 = vperm.xlu1 %4944, %v3692_v40   ;;  %5022 = vset.pattern.permute.xlu0 %v7021_v36  ;;  %v1387_v36 = vsel %vm1282_vm5, %v5819_v20, 0.0  ;;  %v1591_v20 = vsel %vm7023_vm9, %v5866_v56, 0.0  ;;  %v2005_v56 = vsel %vm7026_vm14, %v6013_v2, 0.0  ;;  %vm7027_vm5 = vcmp.eq.s32.totalorder %v5637_v55, 7 }
0x173f   :  { %v2212_v4 = vsel %vm7027_vm5, %v6259_v43, 0.0  ;;  %v2420_v2 = vsel %vm7030_vm4, %v6225_v25, 0.0  ;;  %v2627_v25 = vsel %vm7032_vm11, %v6264_v26, 0.0  ;;  %vm7035_vm9 = vcmp.eq.s32.totalorder %v6177_v9, 13 }
0x1740   :  { %v3453_v26 = vsel %vm7035_vm9, %v6443_v57, 0.0  ;;  %vm7038_vm14 = vcmp.eq.s32.totalorder %v6167_v10, 13  ;;  %v2238_v57 = vmul.f32 %v5163_v59, %v6067_v19  ;;  %v7039_v40 = vmov 9  }
0x1741   :  { %4947 = vrot.lane.b32.xlu0 %v7010_v21, %s5241_s30  ;;  %v3455_v45 = vsel %vm7038_vm14, %v6446_v37, 0.0  ;;  %v7041_v37 = vmov 11   ;;  %vm3695_vm5 = vcmp.eq.s32.totalorder %v5529_v14, 14  ;;  %vm3764_vm6 = vcmp.eq.s32.totalorder %v6167_v10, 15 }
0x1742   :  { %1189 = vrot.lane.b32.xlu1 %v1181_v49, %s5243_s11  ;;  %v2242_v8 = vsel %vm2234_vm2, %v2238_v57, 0.0  ;;  %v7040_v49 = vmov 10   ;;  %vm3762_vm15 = vcmp.eq.s32.totalorder %v6177_v9, 15  ;;  %vm7045_vm4 = vcmp.eq.s32.totalorder %v5637_v55, 0 }
0x1743   :  { %5021 = vset.pattern.permute.xlu1 %v7022_v27  ;;  %vm7046_vm12 = vcmp.eq.s32.totalorder %v5649_v11, 0  ;;  %vm2236_vm11 = vcmp.ge.s32.totalorder %v5637_v55, 7  ;;  %vm3891_vm1 = vcmp.ge.s32.totalorder %v6177_v9, 15  ;;  %vm3893_vm8 = vcmp.ge.s32.totalorder %v6167_v10, 15 }
0x1744   :  { %vm7048_vm9 = vcmp.eq.s32.totalorder %v5529_v14, 0  ;;  %vm7050_vm13 = vcmp.eq.s32.totalorder %v5529_v14, 1  ;;  %vm7052_vm2 = vcmp.eq.s32.totalorder %v5529_v14, 2 }
0x1745   :  { %989 = vrot.lane.b32.xlu0 %v979_v31, %s5241_s30  ;;  %s5260_s30 = smov 118   ;;  %v7042_v31 = vmov 12   ;;  %vm7049_vm10 = vmmov %vm7048_vm9 }
0x1746   :  { %4952 = vrot.lane.b32.xlu1 %v7010_v21, %s5243_s11  ;;  %vm7051_vm14 = vmmov %vm7050_vm13 }
0x1749   :  { %4957 = vrot.lane.b32.xlu0 %v7010_v21, %s5244_s12 }
0x174a   :  { %1393 = vrot.lane.b32.xlu1 %v1385_v33, %s5244_s12 }
0x174d   :  { %1597 = vrot.lane.b32.xlu0 %v1589_v54, %s5254_s5  ;;  %v7043_v54 = vmov 14  }
0x174e   :  { %1193 = vrot.lane.b32.xlu1 %v1183_v47, %s5243_s11  ;;  %s5262_s11 = smov 116  }
0x1751   :  { %1397 = vrot.lane.b32.xlu0 %v1387_v36, %s5244_s12  ;;  %s5263_s12 = smov 115  }
0x1752   :  { %4962 = vrot.lane.b32.xlu1 %v7010_v21, %s5254_s5 }
0x1755   :  { %4967 = vrot.lane.b32.xlu0 %v7010_v21, %s5255_s27 }
0x1756   :  { %1804 = vrot.lane.b32.xlu1 %v1796_v46, %s5255_s27 }
0x1759   :  { %2011 = vrot.lane.b32.xlu0 %v2003_v38, %s5256_s3 }
0x175a   :  { %1601 = vrot.lane.b32.xlu1 %v1591_v20, %s5254_s5 }
0x175d   :  { %1808 = vrot.lane.b32.xlu0 %v1798_v58, %s5255_s27 }
0x175e   :  { %4972 = vrot.lane.b32.xlu1 %v7010_v21, %s5256_s3 }
0x1761   :  { %4977 = vrot.lane.b32.xlu0 %v7010_v21, %s5257_s28 }
0x1762   :  { %2218 = vrot.lane.b32.xlu1 %v2210_v62, %s5257_s28  ;;  %v5266_v62 = vmov 15  }
0x1765   :  { %4982 = vrot.lane.b32.xlu0 %v7010_v21, %s5258_s4 }
0x1766   :  { %2015 = vrot.lane.b32.xlu1 %v2005_v56, %s5256_s3 }
0x1769   :  { %2222 = vrot.lane.b32.xlu0 %v2212_v4, %s5257_s28 }
0x176a   :  { %2427 = vrot.lane.b32.xlu1 %v2418_v18, %s5258_s4 }
0x176d   :  { %2634 = vrot.lane.b32.xlu0 %v2625_v17, %s5259_s29  ;;  %v7044_v17 = vmov 0  }
0x176e   :  { %4987 = vrot.lane.b32.xlu1 %v7010_v21, %s5259_s29 }
0x1771   :  { %2431 = vrot.lane.b32.xlu0 %v2420_v2, %s5258_s4 }
0x1772   :  { %4992 = vrot.lane.b32.xlu1 %v7010_v21, %s5260_s30 }
0x1775   :  { %4997 = vrot.lane.b32.xlu0 %v7010_v21, %s5261_s0 }
0x1776   :  { %2841 = vrot.lane.b32.xlu1 %v2832_v30, %s5260_s30 }
0x1779   :  { %3048 = vrot.lane.b32.xlu0 %v3039_v60, %s5261_s0 }
0x177a   :  { %2638 = vrot.lane.b32.xlu1 %v2627_v25, %s5259_s29 }
0x177d   :  { %2845 = vrot.lane.b32.xlu0 %v2834_v3, %s5260_s30 }
0x177e   :  { %5002 = vrot.lane.b32.xlu1 %v7010_v21, %s5262_s11 }
0x1781   :  { %5007 = vrot.lane.b32.xlu0 %v7010_v21, %s5263_s12 }
0x1782   :  { %3255 = vrot.lane.b32.xlu1 %v3246_v0, %s5262_s11 }
0x1785   :  { %3462 = vrot.lane.b32.xlu0 %v3453_v26, %s5263_s12 }
0x1786   :  { %3052 = vrot.lane.b32.xlu1 %v3041_v32, %s5261_s0 }
0x1789   :  { %3259 = vrot.lane.b32.xlu0 %v3248_v13, %s5262_s11  ;;  %v788_v13 = vsel %vm7045_vm4, %v5688_v12, 0.0  ;;  %vm7056_vm4 = vcmp.eq.s32.totalorder %v5529_v14, 4  ;;  %s5268_s11 = smov [#allocation2]  }
0x178a   :  { %5012 = vrot.lane.b32.xlu1 %v7010_v21, %s5264_s13 }
0x178d   :  { %5017 = vrot.lane.b32.xlu0 %v7010_v21, %s5265_s14 }
0x178e   :  { %3669 = vrot.lane.b32.xlu1 %v3660_v34, %s5264_s13 }
0x1792   :  { %3466 = vrot.lane.b32.xlu1 %v3455_v45, %s5263_s12  ;;  %s4284_s12 = sshll.u32 %s5268_s11, 4  ;;  %s4285_s12 = int_to_ptr.vmem [resolvable:$true] %s4284_s12 }
0x1793   :  { %p5215_p1 = scmp.lt.s32.totalorder %s4285_s12, %s4285_s12 }
0x1796   :  { %3673 = vrot.lane.b32.xlu1 %v3662_v22, %s5264_s13  ;;  %s5210_s13 = scalar_lea.vmem %s4285_s12, 32 }
0x1797   :  { %p5211_p0 = scmp.ne.s32.totalorder %s4285_s12, %s5210_s13  ;;  %p5216_p2 = scmp.lt.s32.totalorder %s5210_s13, %s5210_s13 }
0x1799   :  { %p5217_p3 = por %p5216_p2, %p5215_p1 }
0x179a   :  { %2251 = vperm.xlu1 %5021, %v2242_v8  }
0x179b   :  { %p5218_p4 = pnand %p5217_p3, %p5211_p0 }
0x179e   :  { %5028 = vset.pattern.permute.xlu1 %v7039_v40 }
0x179f   :  { %5030 = vperm.xlu1 %5028, %v7010_v21  }
0x17a3   :  { %5034 = vset.pattern.permute.xlu1 %v7040_v49 }
0x17a4   :  { %5036 = vperm.xlu1 %5034, %v7010_v21  }
0x17a8   :  { %5041 = vset.pattern.permute.xlu1 %v7041_v37 }
0x17a9   :  { %5043 = vperm.xlu1 %5041, %v7010_v21  }
0x17ad   :  { %5047 = vset.pattern.permute.xlu1 %v7042_v31 }
0x17ae   :  { %5049 = vperm.xlu1 %5047, %v7010_v21  }
0x17b1   :  { %v3741_v19 = vpop.permute.xlu1 %3740 }
0x17b2   :  { %v3746_v33 = vmul.f32 %v6502_v52, %v3741_v19  ;;  %5059 = vset.pattern.permute.xlu1 %v7043_v54 }
0x17b3   :  { %5061 = vperm.xlu1 %5059, %v7010_v21  }
0x17b4   :  { %v3752_v47 = vsel %vm3722_vm7, %v3746_v33, 0.0  ;;  %v3716_v36 = vpop.permute.xlu0 %3715 }
0x17b5   :  { %v6642_v46 = vsel %vm3695_vm5, %v3716_v36, %v6462_v39  ;;  %v3756_v38 = vmul.f32 %v3752_v47, %v3716_v36  ;;  %v3731_v20 = vpop.permute.xlu1 %3730 }
0x17b6   :  { %v3744_v58 = vmul.f32 %v6500_v51, %v3731_v20 }
0x17b7   :  { %v6647_v52 = vsub.f32 %v6465_v1, %v3756_v38  ;;  %5065 = vset.pattern.permute.xlu1 %v5266_v62 }
0x17b8   :  { %v3750_v56 = vsel %vm3722_vm7, %v3744_v58, 0.0  ;;  %v6652_v4 = vpop.permute.xlu0 %985  ;;  %5067 = vperm.xlu1 %5065, %v7010_v21   ;;  %vm7053_vm7 = vmmov %vm7052_vm2 }
0x17b9   :  { %v6655_v39 = vpop.permute.xlu1 %3705  ;;  %4783 = vmatprep.subr.msk.mxu0 %vm3764_vm6, %v6647_v52 }
0x17ba   :  { %v3754_v51 = vmul.f32 %v3750_v56, %v6655_v39  ;;  %4784 = vmatpush3.msk.msra.mxu0 %vm3764_vm6, %v6647_v52 }
0x17bb   :  { %4785 = vmatprep.subr.mxu0 %v7010_v21 }
0x17bc   :  { %v6667_v1 = vsub.f32 %v6482_v50, %v3754_v51  ;;  %v4948_v18 = vpop.permute.xlu0 %4947  ;;  %4786 = vmatpush3.msra.mxu0 %v7010_v21  ;;  %5071 = vset.pattern.permute.xlu1 %v7044_v17 }
0x17bd   :  { %v1190_v2 = vpop.permute.xlu1 %1189 }
0x17be   :  { %4787 = vmatprep.subr.msk.mxu0 %vm3762_vm15, %v6667_v1 }
0x17bf   :  { %4788 = vmatpush3.msk.msra.mxu0 %vm3762_vm15, %v6667_v1 }
0x17c0   :  { %4789 = vmatprep.subr.mxu0 %v7010_v21  ;;  %v990_v30 = vpop.permute.xlu0 %989 }
0x17c1   :  { %v4953_v60 = vpop.permute.xlu1 %4952  ;;  %4790 = vmatpush3.msra.mxu0 %v7010_v21  ;;  %v999_v59 = vadd.f32 %v990_v30, %v788_v13 }
0x17c2   :  { %v4955_v50 = vunpack.i.h.bf16 %v4953_v60  ;;  %v4954_v25 = vunpack.i.l.bf16 %v4953_v60  ;;  %4792 = vmatmul.mubr.msk.f32.vlgmr.msra.gmra.mxu0 %vm68_vm0, %v6196_v6 }
0x17c3   :  { %4794 = vmatprep.mubr.msk.f32.mxu0 %vm68_vm0, %v6203_v24 }
0x17c4   :  { %v5182_v3 = vadd.low.f32.bf16 %v4954_v25, %v4948_v18  ;;  %v5183_v0 = vadd.high.f32.bf16 %v4955_v50, %v4948_v18  ;;  %v4958_v26 = vpop.permute.xlu0 %4957 }
0x17c5   :  { %v1394_v32 = vpop.permute.xlu1 %1393 }
0x17c6   :  { %4795 = vmatmul.mubr.msk.f32.gmra.mxu0 %vm68_vm0, %v6210_v61  ;;  %v5184_v34 = vadd.low.f32.bf16 %v5182_v3, %v4958_v26  ;;  %v5185_v45 = vadd.high.f32.bf16 %v5183_v0, %v4958_v26  ;;  %v786_v26 = vsel %vm7046_vm12, %v5683_v41, 0.0  ;;  %vm7057_vm12 = vmmov %vm7048_vm9 }
0x17c8   :  { %v1598_v22 = vpop.permute.xlu0 %1597 }
0x17c9   :  { %v1194_v57 = vpop.permute.xlu1 %1193 }
0x17ca   :  { %v1203_v6 = vadd.f32 %v1194_v57, %v999_v59 }
0x17cc   :  { %v1398_v8 = vpop.permute.xlu0 %1397 }
0x17cd   :  { %v1407_v40 = vadd.f32 %v1398_v8, %v1203_v6  ;;  %v4963_v24 = vpop.permute.xlu1 %4962 }
0x17ce   :  { %v5186_v49 = vadd.low.f32.bf16 %v5184_v34, %v4963_v24  ;;  %v5187_v37 = vadd.high.f32.bf16 %v5185_v45, %v4963_v24  ;;  %v997_v45 = vadd.f32 %v6652_v4, %v786_v26 }
0x17d0   :  { %v4968_v31 = vpop.permute.xlu0 %4967  ;;  %v1201_v6 = vadd.f32 %v1190_v2, %v997_v45 }
0x17d1   :  { %v1805_v19 = vpop.permute.xlu1 %1804  ;;  %v5188_v33 = vadd.low.f32.bf16 %v5186_v49, %v4968_v31  ;;  %v5189_v54 = vadd.high.f32.bf16 %v5187_v37, %v4968_v31 }
0x17d2   :  { %v1405_v49 = vadd.f32 %v1394_v32, %v1201_v6 }
0x17d4   :  { %v2012_v61 = vpop.permute.xlu0 %2011 }
0x17d5   :  { %v1602_v47 = vpop.permute.xlu1 %1601 }
0x17d6   :  { %v1611_v36 = vadd.f32 %v1602_v47, %v1407_v40  ;;  %v1609_v47 = vadd.f32 %v1598_v22, %v1405_v49 }
0x17d8   :  { %v1809_v38 = vpop.permute.xlu0 %1808 }
0x17d9   :  { %v1818_v12 = vadd.f32 %v1809_v38, %v1611_v36  ;;  %v4973_v20 = vpop.permute.xlu1 %4972  ;;  %v1816_v36 = vadd.f32 %v1805_v19, %v1609_v47 }
0x17da   :  { %v5190_v58 = vadd.low.f32.bf16 %v5188_v33, %v4973_v20  ;;  %v5191_v56 = vadd.high.f32.bf16 %v5189_v54, %v4973_v20 }
0x17dc   :  { %v4978_v51 = vpop.permute.xlu0 %4977 }
0x17dd   :  { %v2219_v18 = vpop.permute.xlu1 %2218  ;;  %v5192_v30 = vadd.low.f32.bf16 %v5190_v58, %v4978_v51  ;;  %v5193_v60 = vadd.high.f32.bf16 %v5191_v56, %v4978_v51  ;;  %v2023_v56 = vadd.f32 %v2012_v61, %v1816_v36 }
0x17df   :  { %v2230_v2 = vadd.f32 %v2219_v18, %v2023_v56 }
0x17e0   :  { %v4983_v50 = vpop.permute.xlu0 %4982 }
0x17e1   :  { %v2016_v25 = vpop.permute.xlu1 %2015 }
0x17e2   :  { %v2025_v3 = vadd.f32 %v2016_v25, %v1818_v12 }
0x17e4   :  { %v2223_v0 = vpop.permute.xlu0 %2222 }
0x17e5   :  { %v2232_v13 = vadd.f32 %v2223_v0, %v2025_v3  ;;  %v2428_v34 = vpop.permute.xlu1 %2427  ;;  %v5198_v3 = vadd.low.f32.bf16 %v2230_v2, %v4983_v50 }
0x17e6   :  { %v2438_v59 = vadd.f32 %v5192_v30, %v2428_v34 }
0x17e7   :  { %v5194_v57 = vadd.high.f32.bf16 %v2232_v13, %v4983_v50 }
0x17e8   :  { %v2635_v8 = vpop.permute.xlu0 %2634 }
0x17e9   :  { %v2645_v40 = vadd.f32 %v2635_v8, %v2438_v59  ;;  %v4988_v24 = vpop.permute.xlu1 %4987 }
0x17ea   :  { %v5195_v37 = vadd.high.f32.bf16 %v5194_v57, %v4988_v24  ;;  %v5199_v13 = vadd.low.f32.bf16 %v5198_v3, %v4988_v24  ;;  %v7047_v3 = vmov 13  }
0x17ec   :  { %v2432_v31 = vpop.permute.xlu0 %2431 }
0x17ed   :  { %v2440_v33 = vadd.f32 %v5193_v60, %v2432_v31  ;;  %v4993_v54 = vpop.permute.xlu1 %4992 }
0x17ee   :  { %v5196_v38 = vadd.high.f32.bf16 %v5195_v37, %v4993_v54  ;;  %v5200_v60 = vadd.low.f32.bf16 %v5199_v13, %v4993_v54  ;;  %v3969_v13 = vld [vmem:[%s6930_s6] sm:$0xff] }
0x17f0   :  { %v4998_v12 = vpop.permute.xlu0 %4997 }
0x17f1   :  { %v2842_v41 = vpop.permute.xlu1 %2841  ;;  %v5197_v58 = vadd.high.f32.bf16 %v5196_v38, %v4998_v12  ;;  %v5203_v57 = vadd.low.f32.bf16 %v5200_v60, %v4998_v12 }
0x17f2   :  { %v2852_v20 = vadd.f32 %v2842_v41, %v2645_v40 }
0x17f4   :  { %v3049_v4 = vpop.permute.xlu0 %3048 }
0x17f5   :  { %v3059_v51 = vadd.f32 %v3049_v4, %v2852_v20  ;;  %v2639_v30 = vpop.permute.xlu1 %2638 }
0x17f6   :  { %v2647_v25 = vadd.f32 %v2639_v30, %v2440_v33 }
0x17f8   :  { %v2846_v0 = vpop.permute.xlu0 %2845 }
0x17f9   :  { %v2854_v32 = vadd.f32 %v2846_v0, %v2647_v25  ;;  %v5003_v26 = vpop.permute.xlu1 %5002 }
0x17fa   :  { %v5201_v34 = vadd.high.f32.bf16 %v5197_v58, %v5003_v26  ;;  %v5204_v40 = vadd.low.f32.bf16 %v5203_v57, %v5003_v26 }
0x17fc   :  { %v5008_v22 = vpop.permute.xlu0 %5007 }
0x17fd   :  { %v3256_v19 = vpop.permute.xlu1 %3255  ;;  %v6692_v59 = vadd.high.f32.bf16 %v5201_v34, %v5008_v22  ;;  %v5205_v31 = vadd.low.f32.bf16 %v5204_v40, %v5008_v22 }
0x17fe   :  { %v3266_v45 = vadd.f32 %v3256_v19, %v3059_v51 }
0x1800   :  { %v3463_v6 = vpop.permute.xlu0 %3462 }
0x1801   :  { %v3473_v61 = vadd.f32 %v3463_v6, %v3266_v45  ;;  %v3053_v8 = vpop.permute.xlu1 %3052 }
0x1802   :  { %v3061_v49 = vadd.f32 %v3053_v8, %v2854_v32 }
0x1804   :  { %v3260_v18 = vpop.permute.xlu0 %3259 }
0x1805   :  { %v3268_v37 = vadd.f32 %v3260_v18, %v3061_v49  ;;  %v5013_v50 = vpop.permute.xlu1 %5012 }
0x1806   :  { %v5206_v33 = vadd.low.f32.bf16 %v5205_v31, %v5013_v50  ;;  %v5207_v24 = vadd.high.f32.bf16 %v6692_v59, %v5013_v50  ;;  %v831_v50 = vsel %vm7048_vm9, %v5694_v63, 0.0 }
0x1808   :  { %v5018_v54 = vpop.permute.xlu0 %5017 }
0x1809   :  { %v5208_v47 = vadd.low.f32.bf16 %v5206_v33, %v5018_v54  ;;  %v5209_v19 = vadd.high.f32.bf16 %v5207_v24, %v5018_v54 }
0x180b   :  { %5164 = vlog2.f32 %v5208_v47  ;;  %v7058_v47 = vld [vmem:[#allocation5_spill] sm:$0xff] }
0x180c   :  { %5166 = vrsqrt.f32 %v6259_v43 }
0x1818   :  { %v5165_v36 = vpop.eup %5164 }
0x1819   :  { %v3930_v38 = vmul.f32 0.6931472, %v5165_v36  ;;  %v5167_v30 = vpop.eup %5166  ;;  %v7060_v36 = vld [vmem:[#allocation6_spill] sm:$0xff] }
0x181a   :  { %v2240_v43 = vmul.f32 %v5167_v30, %v6051_v5 }
0x181b   :  { %v3937_v41 = vmul.f32 0.5, %v3930_v38 }
0x181c   :  { %v2244_v2 = vsel %vm2236_vm11, %v2240_v43, 0.0  ;;  %vm7059_vm11 = vmmov %vm7056_vm4  ;;  %v7070_v43 = vld [vmem:[#allocation12_spill] sm:$0xff] }
0x181d   :  { %3947 = vperm.xlu1 %5071, %v3937_v41   ;;  %v7062_v41 = vld [vmem:[#allocation8_spill] sm:$0xff] }
0x1882   :  { %v4793_v12 = vpop.f32.mrf.mxu0 }
0x1883   :  { %v3867_v20 = vsel %vm3762_vm15, %v4793_v12, 0.0  ;;  %5168 = vrsqrt.f32 %v4793_v12  ;;  %v7064_v12 = vld [vmem:[#allocation7_spill] sm:$0xff] }
0x1884   :  { %3876 = vrot.lane.b32.xlu0 %v3867_v20, %s5265_s14  ;;  %v3843_v58 = vpop.f32.mrf.mxu0  ;;  %v7066_v20 = vld [vmem:[#allocation9_spill] sm:$0xff] }
0x1886   :  { %v4796_v56 = vpop.f32.mrf.mxu0 }
0x1887   :  { %v3869_v4 = vsel %vm3764_vm6, %v4796_v56, 0.0  ;;  %5170 = vrsqrt.f32 %v4796_v56  ;;  %vm7054_vm6 = vcmp.eq.s32.totalorder %v5529_v14, 3 }
0x1888   :  { %3880 = vrot.lane.b32.xlu0 %v3869_v4, %s5265_s14  ;;  %v3853_v51 = vpop.f32.mrf.mxu0  ;;  %5172 = vlog2.f32 %v5209_v19  ;;  %vm7055_vm15 = vmmov %vm7054_vm6 }
0x1889   :  { %v7068_v51 = vld [vmem:[#allocation11_spill] sm:$0xff] }
0x188c   :  { %5024 = vperm.xlu0 %5022, %v7010_v21  }
0x1890   :  { %5040 = vset.pattern.permute.xlu0 %v7022_v27  ;;  %v5169_v25 = vpop.eup %5168  ;;  %v3970_v27 = vld [vmem:[%s6930_s6 + $0x8] sm:$0xff] }
0x1891   :  { %2261 = vperm.xlu0 %5040, %v2244_v2   ;;  %v3895_v0 = vmul.f32 %v5169_v25, %v6667_v1  ;;  %4797 = vmatprep.subr.mxu1 %v3970_v27 }
0x1892   :  { %4798 = vmatpush3.msra.mxu1 %v3970_v27 }
0x1893   :  { %v3899_v26 = vsel %vm3891_vm1, %v3895_v0, 0.0  ;;  %4799 = vmatprep.subr.mxu1 %v3969_v13  ;;  %vm7061_vm1 = vcmp.eq.s32.totalorder %v5529_v14, 5  ;;  %v7072_v0 = vld [vmem:[#allocation13_spill] sm:$0xff] }
0x1894   :  { %v5171_v32 = vpop.eup %5170  ;;  %4800 = vmatpush3.msra.mxu1 %v3969_v13  ;;  %vm7065_vm9 = vmmov %vm7061_vm1 }
0x1895   :  { %5053 = vset.pattern.permute.xlu0 %v7047_v3  ;;  %v3897_v5 = vmul.f32 %v5171_v32, %v6647_v52  ;;  %4829 = vmatprep.subr.mxu1 %v7010_v21  ;;  %v3670_v52 = vpop.permute.xlu1 %3669  ;;  %v5173_v54 = vpop.eup %5172 }
0x1896   :  { %5055 = vperm.xlu0 %5053, %v7010_v21   ;;  %v3680_v45 = vadd.f32 %v3670_v52, %v3473_v61  ;;  %v829_v61 = vsel %vm7049_vm10, %v5701_v28, 0.0  ;;  %vm7067_vm10 = vmmov %vm7052_vm2  ;;  %v3934_v25 = vmul.f32 0.6931472, %v5173_v54 }
0x1897   :  { %v3901_v1 = vsel %vm3893_vm8, %v3897_v5, 0.0  ;;  %v1036_v31 = vsel %vm7051_vm14, %v5745_v16, %v829_v61  ;;  %vm7063_vm8 = vmmov %vm7050_vm13 }
0x1898   :  { %v1240_v63 = vsel %vm7053_vm7, %v5793_v29, %v1036_v31  ;;  %vm7071_vm14 = vmmov %vm7054_vm6  ;;  %vm7074_vm7 = vcmp.eq.s32.totalorder %v5529_v14, 7 }
0x189a   :  { %5072 = vset.pattern.permute.xlu0 %v5266_v62  ;;  %v3467_v62 = vpop.permute.xlu1 %3466 }
0x189b   :  { %3912 = vperm.xlu0 %5072, %v3899_v26   ;;  %v3475_v57 = vadd.f32 %v3467_v62, %v3268_v37  ;;  %v1038_v37 = vsel %vm7050_vm13, %v5738_v35, %v831_v50  ;;  %v1444_v35 = vsel %vm7055_vm15, %v5837_v7, %v1240_v63  ;;  %vm7069_vm13 = vcmp.eq.s32.totalorder %v5529_v14, 6  ;;  %v7077_v62 = vld [vmem:[#allocation14_spill] sm:$0xff]  ;;  %vm7078_vm15 = vmmov %vm7061_vm1 }
0x189c   :  { %v1242_v33 = vsel %vm7052_vm2, %v5784_v23, %v1038_v37  ;;  %v830_v23 = vsel %vm7057_vm12, %v5983_v48, 0.0  ;;  %vm7073_vm2 = vmmov %vm7056_vm4 }
0x189d   :  { %v1446_v28 = vsel %vm7054_vm6, %v5830_v44, %v1242_v33  ;;  %v1648_v44 = vsel %vm7059_vm11, %v7058_v47, %v1444_v35  ;;  %v1037_v7 = vsel %vm7063_vm8, %v7062_v41, %v830_v23  ;;  %vm7076_vm6 = vmmov %vm7069_vm13  ;;  %vm7082_vm11 = vcmp.eq.s32.totalorder %v5529_v14, 9  ;;  %v4096_v35 = vld [vmem:[%s6931_s7 + $0x38] sm:$0xff]  ;;  %v7090_v47 = vld [vmem:[#allocation18_spill] sm:$0xff] }
0x189e   :  { %v3674_v60 = vpop.permute.xlu1 %3673  ;;  %v1650_v16 = vsel %vm7056_vm4, %v5877_v42, %v1446_v28  ;;  %v1855_v42 = vsel %vm7065_vm9, %v7064_v12, %v1648_v44  ;;  %v1241_v48 = vsel %vm7067_vm10, %v7066_v20, %v1037_v7  ;;  %vm7079_vm4 = vcmp.eq.s32.totalorder %v5529_v14, 8  ;;  %vm7081_vm12 = vmmov %vm7076_vm6  ;;  %4807 = vmatprep.subr.mxu0 %v4096_v35  ;;  %v7093_v41 = vld [vmem:[#allocation19_spill] sm:$0xff] }
0x189f   :  { %3922 = vperm.xlu0 %5072, %v3901_v1   ;;  %v3682_v40 = vadd.f32 %v3674_v60, %v3475_v57  ;;  %v1857_v38 = vsel %vm7061_vm1, %v7060_v36, %v1650_v16  ;;  %v2062_v30 = vsel %vm7069_vm13, %v7068_v51, %v1855_v42  ;;  %v1445_v2 = vsel %vm7071_vm14, %v7070_v43, %v1241_v48  ;;  %v7075_v1 = vld [vmem:[#allocation10_spill] sm:$0xff]  ;;  %v7080_v57 = vld [vmem:[#allocation15_spill] sm:$0xff]  ;;  %vm7084_vm1 = vmmov %vm7074_vm7 }
0x18a0   :  { %v1649_v32 = vsel %vm7073_vm2, %v7072_v0, %v1445_v2  ;;  %v2064_v52 = vsel %vm7076_vm6, %v7075_v1, %v1857_v38  ;;  %v3939_v33 = vmul.f32 0.5, %v3934_v25  ;;  %vm7085_vm8 = vcmp.eq.s32.totalorder %v5529_v14, 10  ;;  %vm7086_vm9 = vmmov %vm7084_vm1  ;;  %v7087_v16 = vld [vmem:[#allocation17_spill] sm:$0xff]  ;;  %4808 = vmatpush3.msra.mxu0 %v4096_v35  ;;  %v7098_v0 = vld [vmem:[#allocation20_spill] sm:$0xff] }
0x18a1   :  { %v1856_v60 = vsel %vm7078_vm15, %v7077_v62, %v1649_v32  ;;  %vm7088_vm10 = vmmov %vm7079_vm4  ;;  %vm7096_vm15 = vcmp.eq.s32.totalorder %v5529_v14, 11  ;;  %v4092_v1 = vld [vmem:[%s6931_s7 + $0x18] sm:$0xff] }
0x18a2   :  { %v2252_v34 = vpop.permute.xlu1 %2251  ;;  %vm7089_vm13 = vmmov %vm7079_vm4 }
0x18a3   :  { %5073 = vset.pattern.permute.xlu0 %v7044_v17  ;;  %v2269_v26 = vsel %vm7074_vm7, %v2252_v34, %v2062_v30  ;;  %v2063_v34 = vsel %vm7081_vm12, %v7080_v57, %v1856_v60  ;;  %vm7091_vm14 = vmmov %vm7082_vm11  ;;  %v4091_v57 = vld [vmem:[%s6931_s7 + $0x10] sm:$0xff] }
0x18a4   :  { %vm7092_vm2 = vmmov %vm7082_vm11 }
0x18a5   :  { %vm7094_vm7 = vmmov %vm7085_vm8 }
0x18a6   :  { %v6721_v22 = vpop.permute.xlu1 %5030  ;;  %vm7095_vm6 = vmmov %vm7094_vm7 }
0x18a7   :  { %v5032_v58 = vunpack.i.l.bf16 %v6721_v22 }
0x18aa   :  { %v6723_v8 = vpop.permute.xlu1 %5036 }
0x18ab   :  { %v5038_v5 = vunpack.i.l.bf16 %v6723_v8  ;;  %v5039_v61 = vunpack.i.h.bf16 %v6723_v8 }
0x18ae   :  { %v6725_v17 = vpop.permute.xlu1 %5043 }
0x18af   :  { %v5045_v37 = vunpack.i.l.bf16 %v6725_v17  ;;  %v5046_v63 = vunpack.i.h.bf16 %v6725_v17 }
0x18b2   :  { %v6748_v24 = vpop.permute.xlu1 %5049 }
0x18b3   :  { %v5052_v23 = vunpack.i.h.bf16 %v6748_v24  ;;  %v5051_v36 = vunpack.i.l.bf16 %v6748_v24  ;;  %v4094_v24 = vld [vmem:[%s6931_s7 + $0x28] sm:$0xff] }
0x18b6   :  { %v5062_v19 = vpop.permute.xlu1 %5061 }
0x18b7   :  { %v5064_v48 = vunpack.i.h.bf16 %v5062_v19 }
0x18ba   :  { %v5068_v12 = vpop.permute.xlu1 %5067 }
0x18bb   :  { %v5069_v30 = vunpack.i.l.bf16 %v5068_v12 }
0x18f6   :  { %v3877_v59 = vpop.permute.xlu0 %3876 }
0x18f7   :  { %v3887_v6 = vadd.f32 %v3877_v59, %v3680_v45 }
0x18f9   :  { %5174 = vlog2.f32 %v3887_v6  ;;  %v5033_v6 = vunpack.i.h.bf16 %v6721_v22 }
0x18fa   :  { %v3881_v49 = vpop.permute.xlu0 %3880 }
0x18fb   :  { %v3889_v18 = vadd.f32 %v3881_v49, %v3682_v40 }
0x18fd   :  { %5176 = vlog2.f32 %v3889_v18  ;;  %v7083_v18 = vld [vmem:[#allocation16_spill] sm:$0xff] }
0x18fe   :  { %v2270_v50 = vsel %vm7084_vm1, %v7083_v18, %v2063_v34  ;;  %vm7100_vm1 = vcmp.eq.s32.totalorder %v5529_v14, 13 }
0x18ff   :  { %v2477_v8 = vsel %vm7088_vm10, %v7087_v16, %v2270_v50  ;;  %vm7102_vm10 = vmmov %vm7100_vm1 }
0x1900   :  { %v2684_v44 = vsel %vm7091_vm14, %v7090_v47, %v2477_v8  ;;  %vm3943_vm14 = vcmp.eq.s32.totalorder %v5529_v14, %v5637_v55 }
0x1901   :  { %v2891_v7 = vsel %vm7094_vm7, %v7093_v41, %v2684_v44 }
0x1906   :  { %v5175_v29 = vpop.eup %5174 }
0x1907   :  { %v3932_v56 = vmul.f32 0.6931472, %v5175_v29  ;;  %v5025_v4 = vpop.permute.xlu0 %5024  ;;  %v4095_v29 = vld [vmem:[%s6931_s7 + $0x30] sm:$0xff] }
0x1908   :  { %v5026_v3 = vunpack.i.l.bf16 %v5025_v4  ;;  %v5027_v45 = vunpack.i.h.bf16 %v5025_v4  ;;  %4809 = vmatprep.subr.mxu0 %v4095_v29 }
0x1909   :  { %v3938_v27 = vmul.f32 0.5, %v3932_v56  ;;  %v5070_v56 = vunpack.i.h.bf16 %v5068_v12  ;;  %4810 = vmatpush3.msra.mxu0 %v4095_v29 }
0x190a   :  { %v5177_v13 = vpop.eup %5176  ;;  %v2476_v59 = vsel %vm7079_vm4, %v5026_v3, %v2269_v26  ;;  %vm7097_vm4 = vmmov %vm7096_vm15  ;;  %v4093_v3 = vld [vmem:[%s6931_s7 + $0x20] sm:$0xff]  ;;  %4811 = vmatprep.subr.mxu0 %v4094_v24 }
0x190b   :  { %v3936_v40 = vmul.f32 0.6931472, %v5177_v13  ;;  %v2683_v49 = vsel %vm7082_vm11, %v5032_v58, %v2476_v59  ;;  %3952 = vperm.xlu1 %5071, %v3938_v27   ;;  %v5063_v58 = vunpack.i.l.bf16 %v5062_v19  ;;  %vm7099_vm12 = vmmov %vm7097_vm4  ;;  %vm3902_vm11 = vcmp.eq.s32.totalorder %v5529_v14, 15  ;;  %4812 = vmatpush3.msra.mxu0 %v4094_v24  ;;  %v3948_v19 = vpop.permute.xlu1 %3947 }
0x190c   :  { %v2262_v31 = vpop.permute.xlu0 %2261  ;;  %v2890_v22 = vsel %vm7085_vm8, %v5038_v5, %v2683_v49  ;;  %v3098_v32 = vsel %vm7099_vm12, %v7098_v0, %v2891_v7  ;;  %vm7101_vm8 = vmmov %vm7100_vm1  ;;  %4813 = vmatprep.subr.mxu0 %v4093_v3  ;;  %vm5267_vm12 = vmmov 0  }
0x190d   :  { %v3940_v28 = vmul.f32 0.5, %v3936_v40  ;;  %v2271_v54 = vsel %vm7086_vm9, %v2262_v31, %v2064_v52  ;;  %v3097_v20 = vsel %vm7096_vm15, %v5045_v37, %v2890_v22  ;;  %v3305_v5 = vsel %vm3281_vm3, %v6417_v53, %v3098_v32  ;;  %4814 = vmatpush3.msra.mxu0 %v4093_v3 }
0x190e   :  { %v2478_v17 = vsel %vm7089_vm13, %v5027_v45, %v2271_v54  ;;  %v3304_v26 = vsel %vm3281_vm3, %v5051_v36, %v3097_v20  ;;  %vm3941_vm9 = vcmp.eq.s32.totalorder %v5529_v14, %v5649_v11  ;;  %v3512_v52 = vsel %vm7102_vm10, %v6474_v15, %v3305_v5  ;;  %4815 = vmatprep.subr.mxu0 %v4092_v1 }
0x190f   :  { %v2685_v38 = vsel %vm7092_vm2, %v5033_v6, %v2478_v17  ;;  %3962 = vperm.xlu0 %5073, %v3940_v28   ;;  %3957 = vperm.xlu1 %5071, %v3939_v33   ;;  %v3719_v60 = vsel %vm3695_vm5, %v6655_v39, %v3512_v52  ;;  %vm3944_vm13 = vcmp.eq.s32.totalorder %v5529_v14, %v6167_v10  ;;  %v4089_v33 = vld [vmem:[%s6931_s7] sm:$0xff] }
0x1910   :  { %v2892_v42 = vsel %vm7095_vm6, %v5039_v61, %v2685_v38  ;;  %4816 = vmatpush3.msra.mxu0 %v4092_v1  ;;  %vm4097_vm6 = vcmask 523264  }
0x1911   :  { %v5056_v4 = vpop.permute.xlu0 %5055  ;;  %v3099_v51 = vsel %vm7097_vm4, %v5046_v63, %v2892_v42  ;;  %4817 = vmatprep.subr.mxu0 %v4091_v57  ;;  %v4073_v63 = vand.u32 15, %v5529_v14 }
0x1912   :  { %v5058_v43 = vunpack.i.h.bf16 %v5056_v4  ;;  %v5057_v2 = vunpack.i.l.bf16 %v5056_v4  ;;  %v3306_v25 = vsel %vm3281_vm3, %v5052_v23, %v3099_v51  ;;  %vm3971_vm3 = vcmask 130048   ;;  %4818 = vmatpush3.msra.mxu0 %v4091_v57 }
0x1913   :  { %vm4081_vm2 = vcmp.eq.s32.totalorder %v5649_v11, %v4073_v63  ;;  %vm4082_vm7 = vcmp.eq.s32.totalorder %v6177_v9, %v4073_v63  ;;  %vm4083_vm15 = vcmp.eq.s32.totalorder %v5637_v55, %v4073_v63  ;;  %vm4084_vm4 = vcmp.eq.s32.totalorder %v6167_v10, %v4073_v63  ;;  %v4195_v55 = vld [vmem:[%s6932_s8] sm:$0x3] }
0x1914   :  { %v3511_v27 = vsel %vm7100_vm1, %v5057_v2, %v3304_v26  ;;  %v3513_v13 = vsel %vm7101_vm8, %v5058_v43, %v3306_v25  ;;  %v4400_v10 = vld [vmem:[%s6933_s9] ss:$0 sm:$0xff] }
0x1915   :  { %v3718_v53 = vsel %vm3695_vm5, %v5063_v58, %v3511_v27  ;;  %v3720_v62 = vsel %vm3695_vm5, %v5064_v48, %v3513_v13  ;;  %vm3942_vm5 = vcmp.eq.s32.totalorder %v5529_v14, %v6177_v9 }
0x1916   :  { %v3913_v45 = vpop.permute.xlu0 %3912  ;;  %v3925_v59 = vsel %vm3902_vm11, %v5069_v30, %v3718_v53  ;;  %v3927_v15 = vsel %vm3902_vm11, %v5070_v56, %v3720_v62 }
0x1917   :  { %v3926_v34 = vsel %vm3902_vm11, %v3913_v45, %v3719_v60  ;;  %v3965_v39 = vsel %vm3941_vm9, %v3948_v19, %v3925_v59 }
0x1918   :  { %4801 = vmatprep.mubr.msk.f32.mxu1 %vm3971_vm3, %v3965_v39 }
0x191a   :  { %v3923_v6 = vpop.permute.xlu0 %3922 }
0x191b   :  { %v3928_v40 = vsel %vm3902_vm11, %v3923_v6, %v6642_v46  ;;  %v4090_v46 = vld [vmem:[%s6931_s7 + $0x8] sm:$0xff]  ;;  %vm4276_vm11 = vcmask 25600  }
0x191c   :  { %4819 = vmatprep.subr.mxu0 %v4090_v46 }
0x191d   :  { %4820 = vmatpush3.msra.mxu0 %v4090_v46 }
0x191e   :  { %4821 = vmatprep.subr.mxu0 %v4089_v33 }
0x191f   :  { %4822 = vmatpush3.msra.mxu0 %v4089_v33 }
0x1986   :  { %v3953_v49 = vpop.permute.xlu1 %3952 }
0x1987   :  { %v3966_v18 = vsel %vm3942_vm5, %v3953_v49, %v3926_v34 }
0x1988   :  { %4802 = vmatmul.mubr.msk.f32.vlgmr.msra.gmra.mxu1 %vm3971_vm3, %v3966_v18 }
0x198a   :  { %v3963_v50 = vpop.permute.xlu0 %3962  ;;  %v3958_v61 = vpop.permute.xlu1 %3957 }
0x198b   :  { %v3968_v37 = vsel %vm3944_vm13, %v3963_v50, %v3928_v40  ;;  %v3967_v31 = vsel %vm3943_vm14, %v3958_v61, %v3927_v15 }
0x198c   :  { %4804 = vmatprep.mubr.msk.f32.mxu1 %vm3971_vm3, %v3967_v31 }
0x198d   :  { %4805 = vmatmul.mubr.msk.f32.gmra.mxu1 %vm3971_vm3, %v3968_v37 }
0x198e   :  { %4837 = vmatprep.mubr.msk.f32.mxu1 %vm5267_vm12, %v7010_v21 }
0x1a48   :  { %v4803_v28 = vpop.f32.mrf.mxu1 }
0x1a49   :  { %v4086_v35 = vsel %vm4082_vm7, %v4803_v28, 0.0 }
0x1a4a   :  { %v4050_v22 = vpop.f32.mrf.mxu1 }
0x1a4b   :  { %v4085_v54 = vsel %vm4081_vm2, %v4050_v22, 0.0 }
0x1a4c   :  { %4823 = vmatprep.mubr.msk.f32.mxu0 %vm4097_vm6, %v4085_v54 }
0x1a4d   :  { %v4806_v16 = vpop.f32.mrf.mxu1  ;;  %4824 = vmatmul.mubr.msk.f32.vlgmr.msra.gmra.mxu0 %vm4097_vm6, %v4086_v35 }
0x1a4e   :  { %v4088_v17 = vsel %vm4084_vm4, %v4806_v16, 0.0 }
0x1a4f   :  { %v4060_v8 = vpop.f32.mrf.mxu1 }
0x1a50   :  { %v4087_v23 = vsel %vm4083_vm15, %v4060_v8, 0.0 }
0x1a51   :  { %4826 = vmatprep.mubr.msk.f32.mxu0 %vm4097_vm6, %v4087_v23 }
0x1a52   :  { %4827 = vmatmul.mubr.msk.f32.gmra.mxu0 %vm4097_vm6, %v4088_v17 }
0x1b0d   :  { %v4825_v14 = vpop.f32.mrf.mxu0 }
0x1b0f   :  { %v4176_v11 = vpop.f32.mrf.mxu0 }
0x1b12   :  { %v4828_v9 = vpop.f32.mrf.mxu0 }
0x1b13   :  { %4830 = vmatpush3.msra.mxu1 %v4828_v9 }
0x1b14   :  { %v4186_v29 = vpop.f32.mrf.mxu0  ;;  %4831 = vmatprep.subr.mxu1 %v7010_v21 }
0x1b15   :  { %4832 = vmatpush3.msra.mxu1 %v4186_v29 }
0x1b16   :  { %4833 = vmatprep.subr.mxu1 %v7010_v21 }
0x1b17   :  { %4834 = vmatpush3.msra.mxu1 %v4825_v14 }
0x1b18   :  { %4835 = vmatprep.subr.mxu1 %v7010_v21 }
0x1b19   :  { %4836 = vmatpush3.msra.mxu1 %v4176_v11 }
0x1b1a   :  { %4838 = vmatmul.mubr.msk.f32.vlgmr.msra.gmra.mxu1 %vm68_vm0, %v4195_v55 }
0x1bda   :  { %v4272_v47 = vpop.f32.mrf.mxu1 }
0x1bdb   :  { %v4273_v44 = vadd.f32 %v4400_v10, %v4272_v47 }
0x1bdc   :  { %v4839_v36 = vpop.f32.mrf.mxu1 }
0x1bdd   :  { %4277 = vst.msk [vmem:[#allocation2] sm:$0x3] %vm4276_vm11, %v4273_v44 }
0x1bde   :  { %5221 = shalt.err (!%p5218_p4)
}
0x1bdf   :  { %4287 = dma.vmem_to_hbm [thread:$0]  %s4285_s12, 32, %s6934_s10, [#allocation3]  }
0x1be0   :  { %5230 = dma.done.wait [#allocation3], 32  }
0x1be1   :  { %5231 = vsyncadd [#allocation3], 4294967264 }
0x1be2   :  { %4291 = vsyncpa [#allocation3], 1 }

</bundles_post_ra>
